<compile_context>
chip_gen: v6e
topology: v6e:2x2x1
jax: 0.10.0
libtpu: 0.0.40
codegen_flags: <defaults>
</compile_context>

<pallas_src>
import numpy as np
import jax
import jax.numpy as jnp
from jax.experimental import pallas as pl
from jax.experimental.pallas import tpu as pltpu

# ---- hyperparameters implied by the PyTorch __init__ ----
D_MODEL = 128
N_HEADS = 4
N_LAYERS = 2
NUM_CLASSES = 8
DIM_FF = 256
HEAD_DIM = D_MODEL // N_HEADS
LN_EPS = 1e-5


def _residual_layer_norm(x, delta, gamma, beta):
    """LayerNorm(x + delta) with fused residual and single-pass statistics."""
    y = x + delta
    inv_d = 1.0 / D_MODEL
    mu = jnp.sum(y, axis=-1, keepdims=True) * inv_d
    ex2 = jnp.sum(y * y, axis=-1, keepdims=True) * inv_d
    var = ex2 - mu * mu
    return (y - mu) * jax.lax.rsqrt(var + LN_EPS) * gamma + beta


# ---------------- generation-aware tiling helpers ----------------
def _vmem_capacity_bytes():
    try:
        return int(pltpu.get_tpu_info().vmem_capacity_bytes)
    except Exception:
        pass
    try:
        kind = jax.devices()[0].device_kind.lower()
        if "v5" in kind or "v6" in kind:
            return 128 << 20
    except Exception:
        pass
    return 64 << 20  # conservative (v7x per-core VMEM)


def _ceil_div(a, b):
    return -(-a // b)


def _choose_tiling(B, T, max_tokens):
    """Return (BB, B_pad): per-step batch tile and padded batch, B_pad % BB == 0.

    BB is a multiple of 8 (tile-legal output blocks) unless the whole batch fits
    in a single step.  When B >= 16 we force >= 2 grid steps so megacore parts
    (v7x) can shard the 'parallel' grid axis across both TensorCores.
    """
    cap_tokens = max(1, max_tokens // max(T, 1))
    cap_scores = max(1, (8 << 20) // max(4 * T * T, 1))  # keep [BB,T,T] slabs modest
    cap = min(cap_tokens, cap_scores)
    if B < 16 and B <= cap:
        return B, B                                       # tiny batch: one step
    cap8 = max(8, (cap // 8) * 8)
    min_steps = 2 if B >= 16 else 1
    nb = max(min_steps, _ceil_div(B, cap8))
    BB = min(_ceil_div(_ceil_div(B, nb), 8) * 8, cap8)
    if BB >= B:
        return B, B                                       # padding would only inflate M
    B_pad = _ceil_div(B, BB) * BB
    return BB, B_pad


# ---------------- the kernel ----------------
def _make_encoder_kernel(BB, T):
    D, H, hd, FF, L = D_MODEL, N_HEADS, HEAD_DIM, DIM_FF, N_LAYERS
    M = BB * T  # tokens per grid step

    def kernel(x_ref,                    # [BB, T, D]   f32
               w_in_ref, b_in_ref,       # [L, D, 3D] bf16 (Q-scale folded), [L, 1, 3D] f32
               w_out_ref, b_out_ref,     # [L, D, D] bf16, [L, 1, D] f32
               w1_ref, b1_ref,           # [L, D, FF] bf16, [L, 1, FF] f32
               w2_ref, b2_ref,           # [L, FF, D] bf16, [L, 1, D] f32
               g1_ref, be1_ref,          # [L, 1, D] f32
               g2_ref, be2_ref,          # [L, 1, D] f32
               pooled_ref):              # out: [BB, D] f32  (lane-dense, 128 lanes)
        x = x_ref[...].astype(jnp.float32).reshape(M, D)           # token matrix

        for l in range(L):                                          # static unroll (L=2)
            # ---- QKV projection: one [M, D] @ [D, 3D] MXU call ----
            qkv = jnp.dot(x.astype(jnp.bfloat16), w_in_ref[l],
                          preferred_element_type=jnp.float32) + b_in_ref[l]   # [M, 3D] f32
            qkv_b = qkv.astype(jnp.bfloat16).reshape(BB, T, 3 * D)  # single bf16 cast

            # ---- attention: batched over the batch tile; static 4-head loop ----
            head_outs = []
            for h in range(H):
                c0 = h * hd
                qh = qkv_b[:, :, c0:c0 + hd]                         # [BB, T, hd] bf16
                kh = qkv_b[:, :, D + c0:D + c0 + hd]
                vh = qkv_b[:, :, 2 * D + c0:2 * D + c0 + hd]
                # scores = qh @ kh^T ; 1/sqrt(hd) already folded into Wq/bq
                s = jnp.einsum("bqd,bkd->bqk", qh, kh,
                               preferred_element_type=jnp.float32)   # [BB, T, T] f32
                s = s - jnp.max(s, axis=-1, keepdims=True)
                p = jnp.exp(s)
                inv = pl.reciprocal(jnp.sum(p, axis=-1, keepdims=True), approx=True)
                o_h = jnp.einsum("bqk,bkd->bqd", p.astype(jnp.bfloat16), vh,
                                 preferred_element_type=jnp.float32) * inv    # [BB, T, hd]
                head_outs.append(o_h)
            attn = jnp.concatenate(head_outs, axis=-1).reshape(M, D)          # [M, D]

            # ---- fused output projection: single [M, D] @ [D, D] (K = 128) ----
            attn = jnp.dot(attn.astype(jnp.bfloat16), w_out_ref[l],
                           preferred_element_type=jnp.float32) + b_out_ref[l]

            # ---- residual + LayerNorm 1 (post-norm, fused stats) ----
            x = _residual_layer_norm(x, attn, g1_ref[l], be1_ref[l])

            # ---- feed-forward (relu), batched over all tokens ----
            h1 = jnp.maximum(
                jnp.dot(x.astype(jnp.bfloat16), w1_ref[l],
                        preferred_element_type=jnp.float32) + b1_ref[l], 0.0)  # [M, FF]
            ff = jnp.dot(h1.astype(jnp.bfloat16), w2_ref[l],
                         preferred_element_type=jnp.float32) + b2_ref[l]       # [M, D]
            x = _residual_layer_norm(x, ff, g2_ref[l], be2_ref[l])

        # ---- mean pool over time; classifier runs outside the kernel ----
        pooled_ref[...] = jnp.mean(x.reshape(BB, T, D), axis=1).astype(pooled_ref.dtype)

    return kernel


def transformer_encoder(x_tbd, params):
    """x_tbd: [T, B, D] -> logits [B, NUM_CLASSES] (squeezed if B == 1)."""
    T, B, D = x_tbd.shape
    assert D == D_MODEL
    H, hd, L, FF, C = N_HEADS, HEAD_DIM, N_LAYERS, DIM_FF, NUM_CLASSES

    x_btd = jnp.transpose(x_tbd, (1, 0, 2))                          # [B, T, D]

    # ---- host-side weight prep: fold Q scale, flat W_out, bf16 MXU operands ----
    scale = 1.0 / float(np.sqrt(hd))
    w_in = params["w_in"].at[:, :, :D].multiply(scale).astype(jnp.bfloat16)
    b_in = params["b_in"].at[:, :, :D].multiply(scale)               # bias stays f32
    w_out = params["w_out"].astype(jnp.bfloat16)                     # [L, D, D], used fused
    w1 = params["w1"].astype(jnp.bfloat16)
    w2 = params["w2"].astype(jnp.bfloat16)

    # ---- generation-aware tiling + batch padding ----
    vmem_cap = _vmem_capacity_bytes()
    max_tokens = 2048 if vmem_cap <= (64 << 20) else 4096
    BB, B_pad = _choose_tiling(B, T, max_tokens)
    nb = B_pad // BB
    if B_pad > B:
        x_btd = jnp.pad(x_btd, ((0, B_pad - B), (0, 0), (0, 0)))

    args = (x_btd,
            w_in, b_in, w_out, params["b_out"],
            w1, params["b1"], w2, params["b2"],
            params["g1"], params["be1"], params["g2"], params["be2"])

    def const(shape):
        return pl.BlockSpec(shape, lambda i: (0,) * len(shape))

    in_specs = [
        pl.BlockSpec((BB, T, D), lambda i: (i, 0, 0)),               # x tile over batch
        const((L, D, 3 * D)), const((L, 1, 3 * D)),
        const((L, D, D)), const((L, 1, D)),
        const((L, D, FF)), const((L, 1, FF)),
        const((L, FF, D)), const((L, 1, D)),
        const((L, 1, D)), const((L, 1, D)),
        const((L, 1, D)), const((L, 1, D)),
    ]

    # ---- per-step VMEM footprint -> scoped limit; advisory cost estimate ----
    M = BB * T
    weight_bytes = sum(int(np.prod(a.shape)) * a.dtype.itemsize for a in args[1:])
    io_bytes = 2 * (BB * T * D * 4) + 2 * (BB * D * 4)               # double-buffered tiles
    inter_bytes = M * (4 * D * 4 + 3 * D * 6 + FF * 6) + 10 * BB * T * T
    vmem_limit = int(min(max(io_bytes + weight_bytes + inter_bytes + (8 << 20), 16 << 20),
                         max(vmem_cap - (16 << 20), 16 << 20)))

    flops = int(2 * B * T * L * (D * 3 * D + D * D + 2 * D * FF)
                + 4 * L * B * H * T * T * hd)
    transcendentals = int(L * B * H * T * T)
    bytes_accessed = int(sum(int(np.prod(a.shape)) * a.dtype.itemsize for a in args)
                         + B_pad * D * 4)

    pooled = pl.pallas_call(
        _make_encoder_kernel(BB, T),
        out_shape=jax.ShapeDtypeStruct((B_pad, D), jnp.float32),
        grid_spec=pltpu.PrefetchScalarGridSpec(
            num_scalar_prefetch=0,
            grid=(nb,),
            in_specs=in_specs,
            out_specs=pl.BlockSpec((BB, D), lambda i: (i, 0))),
        compiler_params=pltpu.CompilerParams(
            dimension_semantics=("parallel",),
            vmem_limit_bytes=vmem_limit),
        cost_estimate=pl.CostEstimate(
            flops=flops,
            transcendentals=transcendentals,
            bytes_accessed=bytes_accessed),
    )(*args)

    # tiny classifier in plain XLA (keeps the kernel output lane-dense, drops wc/bc
    # from the kernel's input set)
    logits = pooled[:B] @ params["wc"] + params["bc"]
    # mirrors `logits.squeeze(0)` in the PyTorch forward
    return logits[0] if B == 1 else logits


# ---------------- deterministic parameter init ----------------
def init_params(key):
    L, D, FF, C = N_LAYERS, D_MODEL, DIM_FF, NUM_CLASSES
    ks = jax.random.split(key, 10)
    s = 0.05

    def nrm(k, shape):
        return jax.random.normal(k, shape, jnp.float32) * s

    return dict(
        w_in=nrm(ks[0], (L, D, 3 * D)),      # in_proj_weight.T per layer
        b_in=nrm(ks[1], (L, 1, 3 * D)),
        w_out=nrm(ks[2], (L, D, D)),         # out_proj.weight.T
        b_out=nrm(ks[3], (L, 1, D)),
        w1=nrm(ks[4], (L, D, FF)),           # linear1.weight.T
        b1=nrm(ks[5], (L, 1, FF)),
        w2=nrm(ks[6], (L, FF, D)),           # linear2.weight.T
        b2=nrm(ks[7], (L, 1, D)),
        g1=jnp.ones((L, 1, D), jnp.float32),
        be1=jnp.zeros((L, 1, D), jnp.float32),
        g2=jnp.ones((L, 1, D), jnp.float32),
        be2=jnp.zeros((L, 1, D), jnp.float32),
        wc=nrm(ks[8], (D, C)),               # classifier.weight.T
        bc=nrm(ks[9], (1, C)),
    )


# ---------------- pure-JAX f32 reference (matches PyTorch eval semantics) ----------------
def reference_forward(x_tbd, params):
    T, B, D = x_tbd.shape
    H, hd = N_HEADS, HEAD_DIM
    x = jnp.transpose(x_tbd, (1, 0, 2))                             # [B, T, D]
    for l in range(N_LAYERS):
        qkv = jnp.einsum("btd,de->bte", x, params["w_in"][l]) + params["b_in"][l][0]
        q, k, v = jnp.split(qkv, 3, axis=-1)
        q = q.reshape(B, T, H, hd).transpose(0, 2, 1, 3)
        k = k.reshape(B, T, H, hd).transpose(0, 2, 1, 3)
        v = v.reshape(B, T, H, hd).transpose(0, 2, 1, 3)
        s = jnp.einsum("bhtd,bhsd->bhts", q, k) / np.sqrt(hd)
        p = jax.nn.softmax(s, axis=-1)
        a = jnp.einsum("bhts,bhsd->bhtd", p, v).transpose(0, 2, 1, 3).reshape(B, T, D)
        a = jnp.einsum("btd,de->bte", a, params["w_out"][l]) + params["b_out"][l][0]
        x = _residual_layer_norm(x, a, params["g1"][l][0], params["be1"][l][0])
        h1 = jax.nn.relu(jnp.einsum("btd,df->btf", x, params["w1"][l]) + params["b1"][l][0])
        ff = jnp.einsum("btf,fd->btd", h1, params["w2"][l]) + params["b2"][l][0]
        x = _residual_layer_norm(x, ff, params["g2"][l][0], params["be2"][l][0])
    pooled = jnp.mean(x, axis=1)                                     # [B, D]
    logits = pooled @ params["wc"] + params["bc"][0]
    return logits[0] if B == 1 else logits


if __name__ == "__main__":
    T, B = 8, 2                                                      # small seq / batch
    key = jax.random.PRNGKey(0)
    kx, kp = jax.random.split(key)
    x = jax.random.normal(kx, (T, B, D_MODEL), jnp.float32)          # [T, B, D]
    params = init_params(kp)

    logits = jax.block_until_ready(transformer_encoder(x, params))
    ref = jax.block_until_ready(reference_forward(x, params))

    assert logits.shape == (B, NUM_CLASSES), logits.shape
    assert np.all(np.isfinite(np.asarray(logits)))
    # bf16 MXU operands (f32 accumulation) + approx reciprocal vs f32 reference
    assert np.allclose(np.asarray(logits), np.asarray(ref), rtol=5e-2, atol=5e-2)
    print("KERNEL_OK")
</pallas_src>

<mosaic_0001>
module attributes {stable_mosaic.version = 11 : i64} {
  func.func @kernel(%arg0: i32, %arg1: memref<2x8x128xf32, #tpu.memory_space<vmem>>, %arg2: memref<2x128x384xbf16, #tpu.memory_space<vmem>>, %arg3: memref<2x1x384xf32, #tpu.memory_space<vmem>>, %arg4: memref<2x128x128xbf16, #tpu.memory_space<vmem>>, %arg5: memref<2x1x128xf32, #tpu.memory_space<vmem>>, %arg6: memref<2x128x256xbf16, #tpu.memory_space<vmem>>, %arg7: memref<2x1x256xf32, #tpu.memory_space<vmem>>, %arg8: memref<2x256x128xbf16, #tpu.memory_space<vmem>>, %arg9: memref<2x1x128xf32, #tpu.memory_space<vmem>>, %arg10: memref<2x1x128xf32, #tpu.memory_space<vmem>>, %arg11: memref<2x1x128xf32, #tpu.memory_space<vmem>>, %arg12: memref<2x1x128xf32, #tpu.memory_space<vmem>>, %arg13: memref<2x1x128xf32, #tpu.memory_space<vmem>>, %arg14: memref<2x128xf32, #tpu.memory_space<vmem>>) attributes {dimension_semantics = [#tpu.dimension_semantics<parallel>], iteration_bounds = array<i64: 1>, scalar_prefetch = 0 : i64, scratch_operands = 0 : i64, tpu.core_type = #tpu.core_type<tc>, window_params = [{transform_indices = @transform_0, window_bounds = array<i64: 2, 8, 128>}, {pipeline_mode = #tpu.pipeline_mode<synchronous>, transform_indices = @transform_1, window_bounds = array<i64: 2, 128, 384>}, {pipeline_mode = #tpu.pipeline_mode<synchronous>, transform_indices = @transform_2, window_bounds = array<i64: 2, 1, 384>}, {pipeline_mode = #tpu.pipeline_mode<synchronous>, transform_indices = @transform_3, window_bounds = array<i64: 2, 128, 128>}, {pipeline_mode = #tpu.pipeline_mode<synchronous>, transform_indices = @transform_4, window_bounds = array<i64: 2, 1, 128>}, {pipeline_mode = #tpu.pipeline_mode<synchronous>, transform_indices = @transform_5, window_bounds = array<i64: 2, 128, 256>}, {pipeline_mode = #tpu.pipeline_mode<synchronous>, transform_indices = @transform_6, window_bounds = array<i64: 2, 1, 256>}, {pipeline_mode = #tpu.pipeline_mode<synchronous>, transform_indices = @transform_7, window_bounds = array<i64: 2, 256, 128>}, {pipeline_mode = #tpu.pipeline_mode<synchronous>, transform_indices = @transform_8, window_bounds = array<i64: 2, 1, 128>}, {pipeline_mode = #tpu.pipeline_mode<synchronous>, transform_indices = @transform_9, window_bounds = array<i64: 2, 1, 128>}, {pipeline_mode = #tpu.pipeline_mode<synchronous>, transform_indices = @transform_10, window_bounds = array<i64: 2, 1, 128>}, {pipeline_mode = #tpu.pipeline_mode<synchronous>, transform_indices = @transform_11, window_bounds = array<i64: 2, 1, 128>}, {pipeline_mode = #tpu.pipeline_mode<synchronous>, transform_indices = @transform_12, window_bounds = array<i64: 2, 1, 128>}, {transform_indices = @transform_13, window_bounds = array<i64: 2, 128>}]} {
    %c0 = arith.constant 0 : index
    %c0_0 = arith.constant 0 : index
    %c0_1 = arith.constant 0 : index
    %0 = vector.load %arg1[%c0, %c0_0, %c0_1] : memref<2x8x128xf32, #tpu.memory_space<vmem>>, vector<2x8x128xf32>
    %1 = vector.shape_cast %0 : vector<2x8x128xf32> to vector<16x128xf32>
    %2 = arith.truncf %1 : vector<16x128xf32> to vector<16x128xbf16>
    %c0_2 = arith.constant 0 : index
    %c0_3 = arith.constant 0 : index
    %c0_4 = arith.constant 0 : index
    %3 = vector.load %arg2[%c0_2, %c0_3, %c0_4] : memref<2x128x384xbf16, #tpu.memory_space<vmem>>, vector<1x128x384xbf16>
    %4 = vector.shape_cast %3 : vector<1x128x384xbf16> to vector<128x384xbf16>
    %cst = arith.constant dense<0.000000e+00> : vector<16x384xf32>
    %5 = tpu.matmul %2, %4, %cst {dimension_numbers = #tpu.dot_dimension_numbers<[1], [0], [0], [1], [0, 0, 1, 1], [], []>} : vector<16x128xbf16>, vector<128x384xbf16>, vector<16x384xf32> -> vector<16x384xf32>
    %c0_5 = arith.constant 0 : index
    %c0_6 = arith.constant 0 : index
    %c0_7 = arith.constant 0 : index
    %6 = vector.load %arg3[%c0_5, %c0_6, %c0_7] : memref<2x1x384xf32, #tpu.memory_space<vmem>>, vector<1x1x384xf32>
    %7 = vector.shape_cast %6 : vector<1x1x384xf32> to vector<1x384xf32>
    %8 = vector.broadcast %7 : vector<1x384xf32> to vector<16x384xf32>
    %9 = arith.addf %5, %8 : vector<16x384xf32>
    %10 = arith.truncf %9 : vector<16x384xf32> to vector<16x384xbf16>
    %11 = vector.shape_cast %10 : vector<16x384xbf16> to vector<2x8x384xbf16>
    %12 = vector.extract_strided_slice %11 {offsets = [0, 0, 0], sizes = [2, 8, 32], strides = [1, 1, 1]} : vector<2x8x384xbf16> to vector<2x8x32xbf16>
    %13 = vector.extract_strided_slice %11 {offsets = [0, 0, 128], sizes = [2, 8, 32], strides = [1, 1, 1]} : vector<2x8x384xbf16> to vector<2x8x32xbf16>
    %14 = vector.extract_strided_slice %11 {offsets = [0, 0, 256], sizes = [2, 8, 32], strides = [1, 1, 1]} : vector<2x8x384xbf16> to vector<2x8x32xbf16>
    "tpu.trace_start"() <{level = 10 : i32, message = "bqd,bkd->bqk"}> : () -> ()
    %cst_8 = arith.constant dense<0.000000e+00> : vector<2x8x8xf32>
    %15 = tpu.matmul %12, %13, %cst_8 {dimension_numbers = #tpu.dot_dimension_numbers<[2], [2], [1], [1], [0, 0, 0, 1, 1, 1], [0], [0]>} : vector<2x8x32xbf16>, vector<2x8x32xbf16>, vector<2x8x8xf32> -> vector<2x8x8xf32>
    "tpu.trace_stop"() : () -> ()
    %cst_9 = arith.constant dense<0xFF800000> : vector<2x8xf32>
    %16 = vector.multi_reduction <maximumf>, %15, %cst_9 [2] : vector<2x8x8xf32> to vector<2x8xf32>
    %17 = vector.shape_cast %16 : vector<2x8xf32> to vector<2x8x1xf32>
    %18 = vector.broadcast %17 : vector<2x8x1xf32> to vector<2x8x8xf32>
    %19 = arith.subf %15, %18 : vector<2x8x8xf32>
    %20 = math.exp %19 : vector<2x8x8xf32>
    %cst_10 = arith.constant dense<0.000000e+00> : vector<2x8xf32>
    %21 = vector.multi_reduction <add>, %20, %cst_10 [2] : vector<2x8x8xf32> to vector<2x8xf32>
    %22 = vector.shape_cast %21 : vector<2x8xf32> to vector<2x8x1xf32>
    %23 = tpu.reciprocal %22 {approx = true} : vector<2x8x1xf32> -> vector<2x8x1xf32>
    %24 = arith.truncf %20 : vector<2x8x8xf32> to vector<2x8x8xbf16>
    "tpu.trace_start"() <{level = 10 : i32, message = "bqk,bkd->bqd"}> : () -> ()
    %cst_11 = arith.constant dense<0.000000e+00> : vector<2x8x32xf32>
    %25 = tpu.matmul %24, %14, %cst_11 {dimension_numbers = #tpu.dot_dimension_numbers<[2], [1], [1], [2], [0, 0, 0, 1, 1, 2], [0], [0]>} : vector<2x8x8xbf16>, vector<2x8x32xbf16>, vector<2x8x32xf32> -> vector<2x8x32xf32>
    "tpu.trace_stop"() : () -> ()
    %26 = vector.broadcast %23 : vector<2x8x1xf32> to vector<2x8x32xf32>
    %27 = arith.mulf %25, %26 : vector<2x8x32xf32>
    %28 = vector.extract_strided_slice %11 {offsets = [0, 0, 32], sizes = [2, 8, 32], strides = [1, 1, 1]} : vector<2x8x384xbf16> to vector<2x8x32xbf16>
    %29 = vector.extract_strided_slice %11 {offsets = [0, 0, 160], sizes = [2, 8, 32], strides = [1, 1, 1]} : vector<2x8x384xbf16> to vector<2x8x32xbf16>
    %30 = vector.extract_strided_slice %11 {offsets = [0, 0, 288], sizes = [2, 8, 32], strides = [1, 1, 1]} : vector<2x8x384xbf16> to vector<2x8x32xbf16>
    "tpu.trace_start"() <{level = 10 : i32, message = "bqd,bkd->bqk"}> : () -> ()
    %cst_12 = arith.constant dense<0.000000e+00> : vector<2x8x8xf32>
    %31 = tpu.matmul %28, %29, %cst_12 {dimension_numbers = #tpu.dot_dimension_numbers<[2], [2], [1], [1], [0, 0, 0, 1, 1, 1], [0], [0]>} : vector<2x8x32xbf16>, vector<2x8x32xbf16>, vector<2x8x8xf32> -> vector<2x8x8xf32>
    "tpu.trace_stop"() : () -> ()
    %cst_13 = arith.constant dense<0xFF800000> : vector<2x8xf32>
    %32 = vector.multi_reduction <maximumf>, %31, %cst_13 [2] : vector<2x8x8xf32> to vector<2x8xf32>
    %33 = vector.shape_cast %32 : vector<2x8xf32> to vector<2x8x1xf32>
    %34 = vector.broadcast %33 : vector<2x8x1xf32> to vector<2x8x8xf32>
    %35 = arith.subf %31, %34 : vector<2x8x8xf32>
    %36 = math.exp %35 : vector<2x8x8xf32>
    %cst_14 = arith.constant dense<0.000000e+00> : vector<2x8xf32>
    %37 = vector.multi_reduction <add>, %36, %cst_14 [2] : vector<2x8x8xf32> to vector<2x8xf32>
    %38 = vector.shape_cast %37 : vector<2x8xf32> to vector<2x8x1xf32>
    %39 = tpu.reciprocal %38 {approx = true} : vector<2x8x1xf32> -> vector<2x8x1xf32>
    %40 = arith.truncf %36 : vector<2x8x8xf32> to vector<2x8x8xbf16>
    "tpu.trace_start"() <{level = 10 : i32, message = "bqk,bkd->bqd"}> : () -> ()
    %cst_15 = arith.constant dense<0.000000e+00> : vector<2x8x32xf32>
    %41 = tpu.matmul %40, %30, %cst_15 {dimension_numbers = #tpu.dot_dimension_numbers<[2], [1], [1], [2], [0, 0, 0, 1, 1, 2], [0], [0]>} : vector<2x8x8xbf16>, vector<2x8x32xbf16>, vector<2x8x32xf32> -> vector<2x8x32xf32>
    "tpu.trace_stop"() : () -> ()
    %42 = vector.broadcast %39 : vector<2x8x1xf32> to vector<2x8x32xf32>
    %43 = arith.mulf %41, %42 : vector<2x8x32xf32>
    %44 = vector.extract_strided_slice %11 {offsets = [0, 0, 64], sizes = [2, 8, 32], strides = [1, 1, 1]} : vector<2x8x384xbf16> to vector<2x8x32xbf16>
    %45 = vector.extract_strided_slice %11 {offsets = [0, 0, 192], sizes = [2, 8, 32], strides = [1, 1, 1]} : vector<2x8x384xbf16> to vector<2x8x32xbf16>
    %46 = vector.extract_strided_slice %11 {offsets = [0, 0, 320], sizes = [2, 8, 32], strides = [1, 1, 1]} : vector<2x8x384xbf16> to vector<2x8x32xbf16>
    "tpu.trace_start"() <{level = 10 : i32, message = "bqd,bkd->bqk"}> : () -> ()
    %cst_16 = arith.constant dense<0.000000e+00> : vector<2x8x8xf32>
    %47 = tpu.matmul %44, %45, %cst_16 {dimension_numbers = #tpu.dot_dimension_numbers<[2], [2], [1], [1], [0, 0, 0, 1, 1, 1], [0], [0]>} : vector<2x8x32xbf16>, vector<2x8x32xbf16>, vector<2x8x8xf32> -> vector<2x8x8xf32>
    "tpu.trace_stop"() : () -> ()
    %cst_17 = arith.constant dense<0xFF800000> : vector<2x8xf32>
    %48 = vector.multi_reduction <maximumf>, %47, %cst_17 [2] : vector<2x8x8xf32> to vector<2x8xf32>
    %49 = vector.shape_cast %48 : vector<2x8xf32> to vector<2x8x1xf32>
    %50 = vector.broadcast %49 : vector<2x8x1xf32> to vector<2x8x8xf32>
    %51 = arith.subf %47, %50 : vector<2x8x8xf32>
    %52 = math.exp %51 : vector<2x8x8xf32>
    %cst_18 = arith.constant dense<0.000000e+00> : vector<2x8xf32>
    %53 = vector.multi_reduction <add>, %52, %cst_18 [2] : vector<2x8x8xf32> to vector<2x8xf32>
    %54 = vector.shape_cast %53 : vector<2x8xf32> to vector<2x8x1xf32>
    %55 = tpu.reciprocal %54 {approx = true} : vector<2x8x1xf32> -> vector<2x8x1xf32>
    %56 = arith.truncf %52 : vector<2x8x8xf32> to vector<2x8x8xbf16>
    "tpu.trace_start"() <{level = 10 : i32, message = "bqk,bkd->bqd"}> : () -> ()
    %cst_19 = arith.constant dense<0.000000e+00> : vector<2x8x32xf32>
    %57 = tpu.matmul %56, %46, %cst_19 {dimension_numbers = #tpu.dot_dimension_numbers<[2], [1], [1], [2], [0, 0, 0, 1, 1, 2], [0], [0]>} : vector<2x8x8xbf16>, vector<2x8x32xbf16>, vector<2x8x32xf32> -> vector<2x8x32xf32>
    "tpu.trace_stop"() : () -> ()
    %58 = vector.broadcast %55 : vector<2x8x1xf32> to vector<2x8x32xf32>
    %59 = arith.mulf %57, %58 : vector<2x8x32xf32>
    %60 = vector.extract_strided_slice %11 {offsets = [0, 0, 96], sizes = [2, 8, 32], strides = [1, 1, 1]} : vector<2x8x384xbf16> to vector<2x8x32xbf16>
    %61 = vector.extract_strided_slice %11 {offsets = [0, 0, 224], sizes = [2, 8, 32], strides = [1, 1, 1]} : vector<2x8x384xbf16> to vector<2x8x32xbf16>
    %62 = vector.extract_strided_slice %11 {offsets = [0, 0, 352], sizes = [2, 8, 32], strides = [1, 1, 1]} : vector<2x8x384xbf16> to vector<2x8x32xbf16>
    "tpu.trace_start"() <{level = 10 : i32, message = "bqd,bkd->bqk"}> : () -> ()
    %cst_20 = arith.constant dense<0.000000e+00> : vector<2x8x8xf32>
    %63 = tpu.matmul %60, %61, %cst_20 {dimension_numbers = #tpu.dot_dimension_numbers<[2], [2], [1], [1], [0, 0, 0, 1, 1, 1], [0], [0]>} : vector<2x8x32xbf16>, vector<2x8x32xbf16>, vector<2x8x8xf32> -> vector<2x8x8xf32>
    "tpu.trace_stop"() : () -> ()
    %cst_21 = arith.constant dense<0xFF800000> : vector<2x8xf32>
    %64 = vector.multi_reduction <maximumf>, %63, %cst_21 [2] : vector<2x8x8xf32> to vector<2x8xf32>
    %65 = vector.shape_cast %64 : vector<2x8xf32> to vector<2x8x1xf32>
    %66 = vector.broadcast %65 : vector<2x8x1xf32> to vector<2x8x8xf32>
    %67 = arith.subf %63, %66 : vector<2x8x8xf32>
    %68 = math.exp %67 : vector<2x8x8xf32>
    %cst_22 = arith.constant dense<0.000000e+00> : vector<2x8xf32>
    %69 = vector.multi_reduction <add>, %68, %cst_22 [2] : vector<2x8x8xf32> to vector<2x8xf32>
    %70 = vector.shape_cast %69 : vector<2x8xf32> to vector<2x8x1xf32>
    %71 = tpu.reciprocal %70 {approx = true} : vector<2x8x1xf32> -> vector<2x8x1xf32>
    %72 = arith.truncf %68 : vector<2x8x8xf32> to vector<2x8x8xbf16>
    "tpu.trace_start"() <{level = 10 : i32, message = "bqk,bkd->bqd"}> : () -> ()
    %cst_23 = arith.constant dense<0.000000e+00> : vector<2x8x32xf32>
    %73 = tpu.matmul %72, %62, %cst_23 {dimension_numbers = #tpu.dot_dimension_numbers<[2], [1], [1], [2], [0, 0, 0, 1, 1, 2], [0], [0]>} : vector<2x8x8xbf16>, vector<2x8x32xbf16>, vector<2x8x32xf32> -> vector<2x8x32xf32>
    "tpu.trace_stop"() : () -> ()
    %74 = vector.broadcast %71 : vector<2x8x1xf32> to vector<2x8x32xf32>
    %75 = arith.mulf %73, %74 : vector<2x8x32xf32>
    %76 = tpu.concatenate %27, %43, %59, %75 in 2 : vector<2x8x32xf32>, vector<2x8x32xf32>, vector<2x8x32xf32>, vector<2x8x32xf32> -> vector<2x8x128xf32>
    %77 = vector.shape_cast %76 : vector<2x8x128xf32> to vector<16x128xf32>
    %78 = arith.truncf %77 : vector<16x128xf32> to vector<16x128xbf16>
    %c0_24 = arith.constant 0 : index
    %c0_25 = arith.constant 0 : index
    %c0_26 = arith.constant 0 : index
    %79 = vector.load %arg4[%c0_24, %c0_25, %c0_26] : memref<2x128x128xbf16, #tpu.memory_space<vmem>>, vector<1x128x128xbf16>
    %80 = vector.shape_cast %79 : vector<1x128x128xbf16> to vector<128x128xbf16>
    %cst_27 = arith.constant dense<0.000000e+00> : vector<16x128xf32>
    %81 = tpu.matmul %78, %80, %cst_27 {dimension_numbers = #tpu.dot_dimension_numbers<[1], [0], [0], [1], [0, 0, 1, 1], [], []>} : vector<16x128xbf16>, vector<128x128xbf16>, vector<16x128xf32> -> vector<16x128xf32>
    %c0_28 = arith.constant 0 : index
    %c0_29 = arith.constant 0 : index
    %c0_30 = arith.constant 0 : index
    %82 = vector.load %arg5[%c0_28, %c0_29, %c0_30] : memref<2x1x128xf32, #tpu.memory_space<vmem>>, vector<1x1x128xf32>
    %83 = vector.shape_cast %82 : vector<1x1x128xf32> to vector<1x128xf32>
    %84 = vector.broadcast %83 : vector<1x128xf32> to vector<16x128xf32>
    %85 = arith.addf %81, %84 : vector<16x128xf32>
    %c0_31 = arith.constant 0 : index
    %c0_32 = arith.constant 0 : index
    %c0_33 = arith.constant 0 : index
    %86 = vector.load %arg10[%c0_31, %c0_32, %c0_33] : memref<2x1x128xf32, #tpu.memory_space<vmem>>, vector<1x1x128xf32>
    %87 = vector.shape_cast %86 : vector<1x1x128xf32> to vector<1x128xf32>
    %c0_34 = arith.constant 0 : index
    %c0_35 = arith.constant 0 : index
    %c0_36 = arith.constant 0 : index
    %88 = vector.load %arg11[%c0_34, %c0_35, %c0_36] : memref<2x1x128xf32, #tpu.memory_space<vmem>>, vector<1x1x128xf32>
    %89 = vector.shape_cast %88 : vector<1x1x128xf32> to vector<1x128xf32>
    %90 = arith.addf %1, %85 : vector<16x128xf32>
    %cst_37 = arith.constant dense<0.000000e+00> : vector<16xf32>
    %91 = vector.multi_reduction <add>, %90, %cst_37 [1] : vector<16x128xf32> to vector<16xf32>
    %92 = vector.shape_cast %91 : vector<16xf32> to vector<16x1xf32>
    %cst_38 = arith.constant 7.812500e-03 : f32
    %93 = vector.broadcast %cst_38 : f32 to vector<16x1xf32>
    %94 = arith.mulf %92, %93 : vector<16x1xf32>
    %95 = arith.mulf %90, %90 : vector<16x128xf32>
    %cst_39 = arith.constant dense<0.000000e+00> : vector<16xf32>
    %96 = vector.multi_reduction <add>, %95, %cst_39 [1] : vector<16x128xf32> to vector<16xf32>
    %97 = vector.shape_cast %96 : vector<16xf32> to vector<16x1xf32>
    %cst_40 = arith.constant 7.812500e-03 : f32
    %98 = vector.broadcast %cst_40 : f32 to vector<16x1xf32>
    %99 = arith.mulf %97, %98 : vector<16x1xf32>
    %100 = arith.mulf %94, %94 : vector<16x1xf32>
    %101 = arith.subf %99, %100 : vector<16x1xf32>
    %102 = vector.broadcast %94 : vector<16x1xf32> to vector<16x128xf32>
    %103 = arith.subf %90, %102 : vector<16x128xf32>
    %cst_41 = arith.constant 9.99999974E-6 : f32
    %104 = vector.broadcast %cst_41 : f32 to vector<16x1xf32>
    %105 = arith.addf %101, %104 : vector<16x1xf32>
    %106 = math.rsqrt %105 : vector<16x1xf32>
    %107 = vector.broadcast %106 : vector<16x1xf32> to vector<16x128xf32>
    %108 = arith.mulf %103, %107 : vector<16x128xf32>
    %109 = vector.broadcast %87 : vector<1x128xf32> to vector<16x128xf32>
    %110 = arith.mulf %108, %109 : vector<16x128xf32>
    %111 = vector.broadcast %89 : vector<1x128xf32> to vector<16x128xf32>
    %112 = arith.addf %110, %111 : vector<16x128xf32>
    %113 = arith.truncf %112 : vector<16x128xf32> to vector<16x128xbf16>
    %c0_42 = arith.constant 0 : index
    %c0_43 = arith.constant 0 : index
    %c0_44 = arith.constant 0 : index
    %114 = vector.load %arg6[%c0_42, %c0_43, %c0_44] : memref<2x128x256xbf16, #tpu.memory_space<vmem>>, vector<1x128x256xbf16>
    %115 = vector.shape_cast %114 : vector<1x128x256xbf16> to vector<128x256xbf16>
    %cst_45 = arith.constant dense<0.000000e+00> : vector<16x256xf32>
    %116 = tpu.matmul %113, %115, %cst_45 {dimension_numbers = #tpu.dot_dimension_numbers<[1], [0], [0], [1], [0, 0, 1, 1], [], []>} : vector<16x128xbf16>, vector<128x256xbf16>, vector<16x256xf32> -> vector<16x256xf32>
    %c0_46 = arith.constant 0 : index
    %c0_47 = arith.constant 0 : index
    %c0_48 = arith.constant 0 : index
    %117 = vector.load %arg7[%c0_46, %c0_47, %c0_48] : memref<2x1x256xf32, #tpu.memory_space<vmem>>, vector<1x1x256xf32>
    %118 = vector.shape_cast %117 : vector<1x1x256xf32> to vector<1x256xf32>
    %119 = vector.broadcast %118 : vector<1x256xf32> to vector<16x256xf32>
    %120 = arith.addf %116, %119 : vector<16x256xf32>
    %cst_49 = arith.constant 0.000000e+00 : f32
    %121 = vector.broadcast %cst_49 : f32 to vector<16x256xf32>
    %122 = arith.maximumf %120, %121 : vector<16x256xf32>
    %123 = arith.truncf %122 : vector<16x256xf32> to vector<16x256xbf16>
    %c0_50 = arith.constant 0 : index
    %c0_51 = arith.constant 0 : index
    %c0_52 = arith.constant 0 : index
    %124 = vector.load %arg8[%c0_50, %c0_51, %c0_52] : memref<2x256x128xbf16, #tpu.memory_space<vmem>>, vector<1x256x128xbf16>
    %125 = vector.shape_cast %124 : vector<1x256x128xbf16> to vector<256x128xbf16>
    %cst_53 = arith.constant dense<0.000000e+00> : vector<16x128xf32>
    %126 = tpu.matmul %123, %125, %cst_53 {dimension_numbers = #tpu.dot_dimension_numbers<[1], [0], [0], [1], [0, 0, 1, 1], [], []>} : vector<16x256xbf16>, vector<256x128xbf16>, vector<16x128xf32> -> vector<16x128xf32>
    %c0_54 = arith.constant 0 : index
    %c0_55 = arith.constant 0 : index
    %c0_56 = arith.constant 0 : index
    %127 = vector.load %arg9[%c0_54, %c0_55, %c0_56] : memref<2x1x128xf32, #tpu.memory_space<vmem>>, vector<1x1x128xf32>
    %128 = vector.shape_cast %127 : vector<1x1x128xf32> to vector<1x128xf32>
    %129 = vector.broadcast %128 : vector<1x128xf32> to vector<16x128xf32>
    %130 = arith.addf %126, %129 : vector<16x128xf32>
    %c0_57 = arith.constant 0 : index
    %c0_58 = arith.constant 0 : index
    %c0_59 = arith.constant 0 : index
    %131 = vector.load %arg12[%c0_57, %c0_58, %c0_59] : memref<2x1x128xf32, #tpu.memory_space<vmem>>, vector<1x1x128xf32>
    %132 = vector.shape_cast %131 : vector<1x1x128xf32> to vector<1x128xf32>
    %c0_60 = arith.constant 0 : index
    %c0_61 = arith.constant 0 : index
    %c0_62 = arith.constant 0 : index
    %133 = vector.load %arg13[%c0_60, %c0_61, %c0_62] : memref<2x1x128xf32, #tpu.memory_space<vmem>>, vector<1x1x128xf32>
    %134 = vector.shape_cast %133 : vector<1x1x128xf32> to vector<1x128xf32>
    %135 = arith.addf %112, %130 : vector<16x128xf32>
    %cst_63 = arith.constant dense<0.000000e+00> : vector<16xf32>
    %136 = vector.multi_reduction <add>, %135, %cst_63 [1] : vector<16x128xf32> to vector<16xf32>
    %137 = vector.shape_cast %136 : vector<16xf32> to vector<16x1xf32>
    %cst_64 = arith.constant 7.812500e-03 : f32
    %138 = vector.broadcast %cst_64 : f32 to vector<16x1xf32>
    %139 = arith.mulf %137, %138 : vector<16x1xf32>
    %140 = arith.mulf %135, %135 : vector<16x128xf32>
    %cst_65 = arith.constant dense<0.000000e+00> : vector<16xf32>
    %141 = vector.multi_reduction <add>, %140, %cst_65 [1] : vector<16x128xf32> to vector<16xf32>
    %142 = vector.shape_cast %141 : vector<16xf32> to vector<16x1xf32>
    %cst_66 = arith.constant 7.812500e-03 : f32
    %143 = vector.broadcast %cst_66 : f32 to vector<16x1xf32>
    %144 = arith.mulf %142, %143 : vector<16x1xf32>
    %145 = arith.mulf %139, %139 : vector<16x1xf32>
    %146 = arith.subf %144, %145 : vector<16x1xf32>
    %147 = vector.broadcast %139 : vector<16x1xf32> to vector<16x128xf32>
    %148 = arith.subf %135, %147 : vector<16x128xf32>
    %cst_67 = arith.constant 9.99999974E-6 : f32
    %149 = vector.broadcast %cst_67 : f32 to vector<16x1xf32>
    %150 = arith.addf %146, %149 : vector<16x1xf32>
    %151 = math.rsqrt %150 : vector<16x1xf32>
    %152 = vector.broadcast %151 : vector<16x1xf32> to vector<16x128xf32>
    %153 = arith.mulf %148, %152 : vector<16x128xf32>
    %154 = vector.broadcast %132 : vector<1x128xf32> to vector<16x128xf32>
    %155 = arith.mulf %153, %154 : vector<16x128xf32>
    %156 = vector.broadcast %134 : vector<1x128xf32> to vector<16x128xf32>
    %157 = arith.addf %155, %156 : vector<16x128xf32>
    %158 = arith.truncf %157 : vector<16x128xf32> to vector<16x128xbf16>
    %c1 = arith.constant 1 : index
    %c0_68 = arith.constant 0 : index
    %c0_69 = arith.constant 0 : index
    %159 = vector.load %arg2[%c1, %c0_68, %c0_69] : memref<2x128x384xbf16, #tpu.memory_space<vmem>>, vector<1x128x384xbf16>
    %160 = vector.shape_cast %159 : vector<1x128x384xbf16> to vector<128x384xbf16>
    %cst_70 = arith.constant dense<0.000000e+00> : vector<16x384xf32>
    %161 = tpu.matmul %158, %160, %cst_70 {dimension_numbers = #tpu.dot_dimension_numbers<[1], [0], [0], [1], [0, 0, 1, 1], [], []>} : vector<16x128xbf16>, vector<128x384xbf16>, vector<16x384xf32> -> vector<16x384xf32>
    %c1_71 = arith.constant 1 : index
    %c0_72 = arith.constant 0 : index
    %c0_73 = arith.constant 0 : index
    %162 = vector.load %arg3[%c1_71, %c0_72, %c0_73] : memref<2x1x384xf32, #tpu.memory_space<vmem>>, vector<1x1x384xf32>
    %163 = vector.shape_cast %162 : vector<1x1x384xf32> to vector<1x384xf32>
    %164 = vector.broadcast %163 : vector<1x384xf32> to vector<16x384xf32>
    %165 = arith.addf %161, %164 : vector<16x384xf32>
    %166 = arith.truncf %165 : vector<16x384xf32> to vector<16x384xbf16>
    %167 = vector.shape_cast %166 : vector<16x384xbf16> to vector<2x8x384xbf16>
    %168 = vector.extract_strided_slice %167 {offsets = [0, 0, 0], sizes = [2, 8, 32], strides = [1, 1, 1]} : vector<2x8x384xbf16> to vector<2x8x32xbf16>
    %169 = vector.extract_strided_slice %167 {offsets = [0, 0, 128], sizes = [2, 8, 32], strides = [1, 1, 1]} : vector<2x8x384xbf16> to vector<2x8x32xbf16>
    %170 = vector.extract_strided_slice %167 {offsets = [0, 0, 256], sizes = [2, 8, 32], strides = [1, 1, 1]} : vector<2x8x384xbf16> to vector<2x8x32xbf16>
    "tpu.trace_start"() <{level = 10 : i32, message = "bqd,bkd->bqk"}> : () -> ()
    %cst_74 = arith.constant dense<0.000000e+00> : vector<2x8x8xf32>
    %171 = tpu.matmul %168, %169, %cst_74 {dimension_numbers = #tpu.dot_dimension_numbers<[2], [2], [1], [1], [0, 0, 0, 1, 1, 1], [0], [0]>} : vector<2x8x32xbf16>, vector<2x8x32xbf16>, vector<2x8x8xf32> -> vector<2x8x8xf32>
    "tpu.trace_stop"() : () -> ()
    %cst_75 = arith.constant dense<0xFF800000> : vector<2x8xf32>
    %172 = vector.multi_reduction <maximumf>, %171, %cst_75 [2] : vector<2x8x8xf32> to vector<2x8xf32>
    %173 = vector.shape_cast %172 : vector<2x8xf32> to vector<2x8x1xf32>
    %174 = vector.broadcast %173 : vector<2x8x1xf32> to vector<2x8x8xf32>
    %175 = arith.subf %171, %174 : vector<2x8x8xf32>
    %176 = math.exp %175 : vector<2x8x8xf32>
    %cst_76 = arith.constant dense<0.000000e+00> : vector<2x8xf32>
    %177 = vector.multi_reduction <add>, %176, %cst_76 [2] : vector<2x8x8xf32> to vector<2x8xf32>
    %178 = vector.shape_cast %177 : vector<2x8xf32> to vector<2x8x1xf32>
    %179 = tpu.reciprocal %178 {approx = true} : vector<2x8x1xf32> -> vector<2x8x1xf32>
    %180 = arith.truncf %176 : vector<2x8x8xf32> to vector<2x8x8xbf16>
    "tpu.trace_start"() <{level = 10 : i32, message = "bqk,bkd->bqd"}> : () -> ()
    %cst_77 = arith.constant dense<0.000000e+00> : vector<2x8x32xf32>
    %181 = tpu.matmul %180, %170, %cst_77 {dimension_numbers = #tpu.dot_dimension_numbers<[2], [1], [1], [2], [0, 0, 0, 1, 1, 2], [0], [0]>} : vector<2x8x8xbf16>, vector<2x8x32xbf16>, vector<2x8x32xf32> -> vector<2x8x32xf32>
    "tpu.trace_stop"() : () -> ()
    %182 = vector.broadcast %179 : vector<2x8x1xf32> to vector<2x8x32xf32>
    %183 = arith.mulf %181, %182 : vector<2x8x32xf32>
    %184 = vector.extract_strided_slice %167 {offsets = [0, 0, 32], sizes = [2, 8, 32], strides = [1, 1, 1]} : vector<2x8x384xbf16> to vector<2x8x32xbf16>
    %185 = vector.extract_strided_slice %167 {offsets = [0, 0, 160], sizes = [2, 8, 32], strides = [1, 1, 1]} : vector<2x8x384xbf16> to vector<2x8x32xbf16>
    %186 = vector.extract_strided_slice %167 {offsets = [0, 0, 288], sizes = [2, 8, 32], strides = [1, 1, 1]} : vector<2x8x384xbf16> to vector<2x8x32xbf16>
    "tpu.trace_start"() <{level = 10 : i32, message = "bqd,bkd->bqk"}> : () -> ()
    %cst_78 = arith.constant dense<0.000000e+00> : vector<2x8x8xf32>
    %187 = tpu.matmul %184, %185, %cst_78 {dimension_numbers = #tpu.dot_dimension_numbers<[2], [2], [1], [1], [0, 0, 0, 1, 1, 1], [0], [0]>} : vector<2x8x32xbf16>, vector<2x8x32xbf16>, vector<2x8x8xf32> -> vector<2x8x8xf32>
    "tpu.trace_stop"() : () -> ()
    %cst_79 = arith.constant dense<0xFF800000> : vector<2x8xf32>
    %188 = vector.multi_reduction <maximumf>, %187, %cst_79 [2] : vector<2x8x8xf32> to vector<2x8xf32>
    %189 = vector.shape_cast %188 : vector<2x8xf32> to vector<2x8x1xf32>
    %190 = vector.broadcast %189 : vector<2x8x1xf32> to vector<2x8x8xf32>
    %191 = arith.subf %187, %190 : vector<2x8x8xf32>
    %192 = math.exp %191 : vector<2x8x8xf32>
    %cst_80 = arith.constant dense<0.000000e+00> : vector<2x8xf32>
    %193 = vector.multi_reduction <add>, %192, %cst_80 [2] : vector<2x8x8xf32> to vector<2x8xf32>
    %194 = vector.shape_cast %193 : vector<2x8xf32> to vector<2x8x1xf32>
    %195 = tpu.reciprocal %194 {approx = true} : vector<2x8x1xf32> -> vector<2x8x1xf32>
    %196 = arith.truncf %192 : vector<2x8x8xf32> to vector<2x8x8xbf16>
    "tpu.trace_start"() <{level = 10 : i32, message = "bqk,bkd->bqd"}> : () -> ()
    %cst_81 = arith.constant dense<0.000000e+00> : vector<2x8x32xf32>
    %197 = tpu.matmul %196, %186, %cst_81 {dimension_numbers = #tpu.dot_dimension_numbers<[2], [1], [1], [2], [0, 0, 0, 1, 1, 2], [0], [0]>} : vector<2x8x8xbf16>, vector<2x8x32xbf16>, vector<2x8x32xf32> -> vector<2x8x32xf32>
    "tpu.trace_stop"() : () -> ()
    %198 = vector.broadcast %195 : vector<2x8x1xf32> to vector<2x8x32xf32>
    %199 = arith.mulf %197, %198 : vector<2x8x32xf32>
    %200 = vector.extract_strided_slice %167 {offsets = [0, 0, 64], sizes = [2, 8, 32], strides = [1, 1, 1]} : vector<2x8x384xbf16> to vector<2x8x32xbf16>
    %201 = vector.extract_strided_slice %167 {offsets = [0, 0, 192], sizes = [2, 8, 32], strides = [1, 1, 1]} : vector<2x8x384xbf16> to vector<2x8x32xbf16>
    %202 = vector.extract_strided_slice %167 {offsets = [0, 0, 320], sizes = [2, 8, 32], strides = [1, 1, 1]} : vector<2x8x384xbf16> to vector<2x8x32xbf16>
    "tpu.trace_start"() <{level = 10 : i32, message = "bqd,bkd->bqk"}> : () -> ()
    %cst_82 = arith.constant dense<0.000000e+00> : vector<2x8x8xf32>
    %203 = tpu.matmul %200, %201, %cst_82 {dimension_numbers = #tpu.dot_dimension_numbers<[2], [2], [1], [1], [0, 0, 0, 1, 1, 1], [0], [0]>} : vector<2x8x32xbf16>, vector<2x8x32xbf16>, vector<2x8x8xf32> -> vector<2x8x8xf32>
    "tpu.trace_stop"() : () -> ()
    %cst_83 = arith.constant dense<0xFF800000> : vector<2x8xf32>
    %204 = vector.multi_reduction <maximumf>, %203, %cst_83 [2] : vector<2x8x8xf32> to vector<2x8xf32>
    %205 = vector.shape_cast %204 : vector<2x8xf32> to vector<2x8x1xf32>
    %206 = vector.broadcast %205 : vector<2x8x1xf32> to vector<2x8x8xf32>
    %207 = arith.subf %203, %206 : vector<2x8x8xf32>
    %208 = math.exp %207 : vector<2x8x8xf32>
    %cst_84 = arith.constant dense<0.000000e+00> : vector<2x8xf32>
    %209 = vector.multi_reduction <add>, %208, %cst_84 [2] : vector<2x8x8xf32> to vector<2x8xf32>
    %210 = vector.shape_cast %209 : vector<2x8xf32> to vector<2x8x1xf32>
    %211 = tpu.reciprocal %210 {approx = true} : vector<2x8x1xf32> -> vector<2x8x1xf32>
    %212 = arith.truncf %208 : vector<2x8x8xf32> to vector<2x8x8xbf16>
    "tpu.trace_start"() <{level = 10 : i32, message = "bqk,bkd->bqd"}> : () -> ()
    %cst_85 = arith.constant dense<0.000000e+00> : vector<2x8x32xf32>
    %213 = tpu.matmul %212, %202, %cst_85 {dimension_numbers = #tpu.dot_dimension_numbers<[2], [1], [1], [2], [0, 0, 0, 1, 1, 2], [0], [0]>} : vector<2x8x8xbf16>, vector<2x8x32xbf16>, vector<2x8x32xf32> -> vector<2x8x32xf32>
    "tpu.trace_stop"() : () -> ()
    %214 = vector.broadcast %211 : vector<2x8x1xf32> to vector<2x8x32xf32>
    %215 = arith.mulf %213, %214 : vector<2x8x32xf32>
    %216 = vector.extract_strided_slice %167 {offsets = [0, 0, 96], sizes = [2, 8, 32], strides = [1, 1, 1]} : vector<2x8x384xbf16> to vector<2x8x32xbf16>
    %217 = vector.extract_strided_slice %167 {offsets = [0, 0, 224], sizes = [2, 8, 32], strides = [1, 1, 1]} : vector<2x8x384xbf16> to vector<2x8x32xbf16>
    %218 = vector.extract_strided_slice %167 {offsets = [0, 0, 352], sizes = [2, 8, 32], strides = [1, 1, 1]} : vector<2x8x384xbf16> to vector<2x8x32xbf16>
    "tpu.trace_start"() <{level = 10 : i32, message = "bqd,bkd->bqk"}> : () -> ()
    %cst_86 = arith.constant dense<0.000000e+00> : vector<2x8x8xf32>
    %219 = tpu.matmul %216, %217, %cst_86 {dimension_numbers = #tpu.dot_dimension_numbers<[2], [2], [1], [1], [0, 0, 0, 1, 1, 1], [0], [0]>} : vector<2x8x32xbf16>, vector<2x8x32xbf16>, vector<2x8x8xf32> -> vector<2x8x8xf32>
    "tpu.trace_stop"() : () -> ()
    %cst_87 = arith.constant dense<0xFF800000> : vector<2x8xf32>
    %220 = vector.multi_reduction <maximumf>, %219, %cst_87 [2] : vector<2x8x8xf32> to vector<2x8xf32>
    %221 = vector.shape_cast %220 : vector<2x8xf32> to vector<2x8x1xf32>
    %222 = vector.broadcast %221 : vector<2x8x1xf32> to vector<2x8x8xf32>
    %223 = arith.subf %219, %222 : vector<2x8x8xf32>
    %224 = math.exp %223 : vector<2x8x8xf32>
    %cst_88 = arith.constant dense<0.000000e+00> : vector<2x8xf32>
    %225 = vector.multi_reduction <add>, %224, %cst_88 [2] : vector<2x8x8xf32> to vector<2x8xf32>
    %226 = vector.shape_cast %225 : vector<2x8xf32> to vector<2x8x1xf32>
    %227 = tpu.reciprocal %226 {approx = true} : vector<2x8x1xf32> -> vector<2x8x1xf32>
    %228 = arith.truncf %224 : vector<2x8x8xf32> to vector<2x8x8xbf16>
    "tpu.trace_start"() <{level = 10 : i32, message = "bqk,bkd->bqd"}> : () -> ()
    %cst_89 = arith.constant dense<0.000000e+00> : vector<2x8x32xf32>
    %229 = tpu.matmul %228, %218, %cst_89 {dimension_numbers = #tpu.dot_dimension_numbers<[2], [1], [1], [2], [0, 0, 0, 1, 1, 2], [0], [0]>} : vector<2x8x8xbf16>, vector<2x8x32xbf16>, vector<2x8x32xf32> -> vector<2x8x32xf32>
    "tpu.trace_stop"() : () -> ()
    %230 = vector.broadcast %227 : vector<2x8x1xf32> to vector<2x8x32xf32>
    %231 = arith.mulf %229, %230 : vector<2x8x32xf32>
    %232 = tpu.concatenate %183, %199, %215, %231 in 2 : vector<2x8x32xf32>, vector<2x8x32xf32>, vector<2x8x32xf32>, vector<2x8x32xf32> -> vector<2x8x128xf32>
    %233 = vector.shape_cast %232 : vector<2x8x128xf32> to vector<16x128xf32>
    %234 = arith.truncf %233 : vector<16x128xf32> to vector<16x128xbf16>
    %c1_90 = arith.constant 1 : index
    %c0_91 = arith.constant 0 : index
    %c0_92 = arith.constant 0 : index
    %235 = vector.load %arg4[%c1_90, %c0_91, %c0_92] : memref<2x128x128xbf16, #tpu.memory_space<vmem>>, vector<1x128x128xbf16>
    %236 = vector.shape_cast %235 : vector<1x128x128xbf16> to vector<128x128xbf16>
    %cst_93 = arith.constant dense<0.000000e+00> : vector<16x128xf32>
    %237 = tpu.matmul %234, %236, %cst_93 {dimension_numbers = #tpu.dot_dimension_numbers<[1], [0], [0], [1], [0, 0, 1, 1], [], []>} : vector<16x128xbf16>, vector<128x128xbf16>, vector<16x128xf32> -> vector<16x128xf32>
    %c1_94 = arith.constant 1 : index
    %c0_95 = arith.constant 0 : index
    %c0_96 = arith.constant 0 : index
    %238 = vector.load %arg5[%c1_94, %c0_95, %c0_96] : memref<2x1x128xf32, #tpu.memory_space<vmem>>, vector<1x1x128xf32>
    %239 = vector.shape_cast %238 : vector<1x1x128xf32> to vector<1x128xf32>
    %240 = vector.broadcast %239 : vector<1x128xf32> to vector<16x128xf32>
    %241 = arith.addf %237, %240 : vector<16x128xf32>
    %c1_97 = arith.constant 1 : index
    %c0_98 = arith.constant 0 : index
    %c0_99 = arith.constant 0 : index
    %242 = vector.load %arg10[%c1_97, %c0_98, %c0_99] : memref<2x1x128xf32, #tpu.memory_space<vmem>>, vector<1x1x128xf32>
    %243 = vector.shape_cast %242 : vector<1x1x128xf32> to vector<1x128xf32>
    %c1_100 = arith.constant 1 : index
    %c0_101 = arith.constant 0 : index
    %c0_102 = arith.constant 0 : index
    %244 = vector.load %arg11[%c1_100, %c0_101, %c0_102] : memref<2x1x128xf32, #tpu.memory_space<vmem>>, vector<1x1x128xf32>
    %245 = vector.shape_cast %244 : vector<1x1x128xf32> to vector<1x128xf32>
    %246 = arith.addf %157, %241 : vector<16x128xf32>
    %cst_103 = arith.constant dense<0.000000e+00> : vector<16xf32>
    %247 = vector.multi_reduction <add>, %246, %cst_103 [1] : vector<16x128xf32> to vector<16xf32>
    %248 = vector.shape_cast %247 : vector<16xf32> to vector<16x1xf32>
    %cst_104 = arith.constant 7.812500e-03 : f32
    %249 = vector.broadcast %cst_104 : f32 to vector<16x1xf32>
    %250 = arith.mulf %248, %249 : vector<16x1xf32>
    %251 = arith.mulf %246, %246 : vector<16x128xf32>
    %cst_105 = arith.constant dense<0.000000e+00> : vector<16xf32>
    %252 = vector.multi_reduction <add>, %251, %cst_105 [1] : vector<16x128xf32> to vector<16xf32>
    %253 = vector.shape_cast %252 : vector<16xf32> to vector<16x1xf32>
    %cst_106 = arith.constant 7.812500e-03 : f32
    %254 = vector.broadcast %cst_106 : f32 to vector<16x1xf32>
    %255 = arith.mulf %253, %254 : vector<16x1xf32>
    %256 = arith.mulf %250, %250 : vector<16x1xf32>
    %257 = arith.subf %255, %256 : vector<16x1xf32>
    %258 = vector.broadcast %250 : vector<16x1xf32> to vector<16x128xf32>
    %259 = arith.subf %246, %258 : vector<16x128xf32>
    %cst_107 = arith.constant 9.99999974E-6 : f32
    %260 = vector.broadcast %cst_107 : f32 to vector<16x1xf32>
    %261 = arith.addf %257, %260 : vector<16x1xf32>
    %262 = math.rsqrt %261 : vector<16x1xf32>
    %263 = vector.broadcast %262 : vector<16x1xf32> to vector<16x128xf32>
    %264 = arith.mulf %259, %263 : vector<16x128xf32>
    %265 = vector.broadcast %243 : vector<1x128xf32> to vector<16x128xf32>
    %266 = arith.mulf %264, %265 : vector<16x128xf32>
    %267 = vector.broadcast %245 : vector<1x128xf32> to vector<16x128xf32>
    %268 = arith.addf %266, %267 : vector<16x128xf32>
    %269 = arith.truncf %268 : vector<16x128xf32> to vector<16x128xbf16>
    %c1_108 = arith.constant 1 : index
    %c0_109 = arith.constant 0 : index
    %c0_110 = arith.constant 0 : index
    %270 = vector.load %arg6[%c1_108, %c0_109, %c0_110] : memref<2x128x256xbf16, #tpu.memory_space<vmem>>, vector<1x128x256xbf16>
    %271 = vector.shape_cast %270 : vector<1x128x256xbf16> to vector<128x256xbf16>
    %cst_111 = arith.constant dense<0.000000e+00> : vector<16x256xf32>
    %272 = tpu.matmul %269, %271, %cst_111 {dimension_numbers = #tpu.dot_dimension_numbers<[1], [0], [0], [1], [0, 0, 1, 1], [], []>} : vector<16x128xbf16>, vector<128x256xbf16>, vector<16x256xf32> -> vector<16x256xf32>
    %c1_112 = arith.constant 1 : index
    %c0_113 = arith.constant 0 : index
    %c0_114 = arith.constant 0 : index
    %273 = vector.load %arg7[%c1_112, %c0_113, %c0_114] : memref<2x1x256xf32, #tpu.memory_space<vmem>>, vector<1x1x256xf32>
    %274 = vector.shape_cast %273 : vector<1x1x256xf32> to vector<1x256xf32>
    %275 = vector.broadcast %274 : vector<1x256xf32> to vector<16x256xf32>
    %276 = arith.addf %272, %275 : vector<16x256xf32>
    %cst_115 = arith.constant 0.000000e+00 : f32
    %277 = vector.broadcast %cst_115 : f32 to vector<16x256xf32>
    %278 = arith.maximumf %276, %277 : vector<16x256xf32>
    %279 = arith.truncf %278 : vector<16x256xf32> to vector<16x256xbf16>
    %c1_116 = arith.constant 1 : index
    %c0_117 = arith.constant 0 : index
    %c0_118 = arith.constant 0 : index
    %280 = vector.load %arg8[%c1_116, %c0_117, %c0_118] : memref<2x256x128xbf16, #tpu.memory_space<vmem>>, vector<1x256x128xbf16>
    %281 = vector.shape_cast %280 : vector<1x256x128xbf16> to vector<256x128xbf16>
    %cst_119 = arith.constant dense<0.000000e+00> : vector<16x128xf32>
    %282 = tpu.matmul %279, %281, %cst_119 {dimension_numbers = #tpu.dot_dimension_numbers<[1], [0], [0], [1], [0, 0, 1, 1], [], []>} : vector<16x256xbf16>, vector<256x128xbf16>, vector<16x128xf32> -> vector<16x128xf32>
    %c1_120 = arith.constant 1 : index
    %c0_121 = arith.constant 0 : index
    %c0_122 = arith.constant 0 : index
    %283 = vector.load %arg9[%c1_120, %c0_121, %c0_122] : memref<2x1x128xf32, #tpu.memory_space<vmem>>, vector<1x1x128xf32>
    %284 = vector.shape_cast %283 : vector<1x1x128xf32> to vector<1x128xf32>
    %285 = vector.broadcast %284 : vector<1x128xf32> to vector<16x128xf32>
    %286 = arith.addf %282, %285 : vector<16x128xf32>
    %c1_123 = arith.constant 1 : index
    %c0_124 = arith.constant 0 : index
    %c0_125 = arith.constant 0 : index
    %287 = vector.load %arg12[%c1_123, %c0_124, %c0_125] : memref<2x1x128xf32, #tpu.memory_space<vmem>>, vector<1x1x128xf32>
    %288 = vector.shape_cast %287 : vector<1x1x128xf32> to vector<1x128xf32>
    %c1_126 = arith.constant 1 : index
    %c0_127 = arith.constant 0 : index
    %c0_128 = arith.constant 0 : index
    %289 = vector.load %arg13[%c1_126, %c0_127, %c0_128] : memref<2x1x128xf32, #tpu.memory_space<vmem>>, vector<1x1x128xf32>
    %290 = vector.shape_cast %289 : vector<1x1x128xf32> to vector<1x128xf32>
    %291 = arith.addf %268, %286 : vector<16x128xf32>
    %cst_129 = arith.constant dense<0.000000e+00> : vector<16xf32>
    %292 = vector.multi_reduction <add>, %291, %cst_129 [1] : vector<16x128xf32> to vector<16xf32>
    %293 = vector.shape_cast %292 : vector<16xf32> to vector<16x1xf32>
    %cst_130 = arith.constant 7.812500e-03 : f32
    %294 = vector.broadcast %cst_130 : f32 to vector<16x1xf32>
    %295 = arith.mulf %293, %294 : vector<16x1xf32>
    %296 = arith.mulf %291, %291 : vector<16x128xf32>
    %cst_131 = arith.constant dense<0.000000e+00> : vector<16xf32>
    %297 = vector.multi_reduction <add>, %296, %cst_131 [1] : vector<16x128xf32> to vector<16xf32>
    %298 = vector.shape_cast %297 : vector<16xf32> to vector<16x1xf32>
    %cst_132 = arith.constant 7.812500e-03 : f32
    %299 = vector.broadcast %cst_132 : f32 to vector<16x1xf32>
    %300 = arith.mulf %298, %299 : vector<16x1xf32>
    %301 = arith.mulf %295, %295 : vector<16x1xf32>
    %302 = arith.subf %300, %301 : vector<16x1xf32>
    %303 = vector.broadcast %295 : vector<16x1xf32> to vector<16x128xf32>
    %304 = arith.subf %291, %303 : vector<16x128xf32>
    %cst_133 = arith.constant 9.99999974E-6 : f32
    %305 = vector.broadcast %cst_133 : f32 to vector<16x1xf32>
    %306 = arith.addf %302, %305 : vector<16x1xf32>
    %307 = math.rsqrt %306 : vector<16x1xf32>
    %308 = vector.broadcast %307 : vector<16x1xf32> to vector<16x128xf32>
    %309 = arith.mulf %304, %308 : vector<16x128xf32>
    %310 = vector.broadcast %288 : vector<1x128xf32> to vector<16x128xf32>
    %311 = arith.mulf %309, %310 : vector<16x128xf32>
    %312 = vector.broadcast %290 : vector<1x128xf32> to vector<16x128xf32>
    %313 = arith.addf %311, %312 : vector<16x128xf32>
    %314 = vector.shape_cast %313 : vector<16x128xf32> to vector<2x8x128xf32>
    %cst_134 = arith.constant dense<0.000000e+00> : vector<2x128xf32>
    %315 = vector.multi_reduction <add>, %314, %cst_134 [1] : vector<2x8x128xf32> to vector<2x128xf32>
    %cst_135 = arith.constant 8.000000e+00 : f32
    %316 = vector.broadcast %cst_135 : f32 to vector<2x128xf32>
    %317 = arith.divf %315, %316 : vector<2x128xf32>
    %c0_136 = arith.constant 0 : index
    %c0_137 = arith.constant 0 : index
    %318 = vector.load %arg14[%c0_136, %c0_137] : memref<2x128xf32, #tpu.memory_space<vmem>>, vector<2x128xf32>
    tpu.vector_store %arg14[%c0_136, %c0_137], %317 {strides = array<i32>} : memref<2x128xf32, #tpu.memory_space<vmem>>, vector<2x128xf32>,
    return
  }
  func.func @transform_0(%arg0: i32) -> (i32, i32, i32) {
    %c0_i32 = arith.constant 0 : i32
    %c0_i32_0 = arith.constant 0 : i32
    %c0_i32_1 = arith.constant 0 : i32
    return %arg0, %c0_i32, %c0_i32_0 : i32, i32, i32
  }
  func.func @transform_1(%arg0: i32) -> (i32, i32, i32) {
    %c0_i32 = arith.constant 0 : i32
    %c0_i32_0 = arith.constant 0 : i32
    %c0_i32_1 = arith.constant 0 : i32
    %c0_i32_2 = arith.constant 0 : i32
    return %c0_i32, %c0_i32_0, %c0_i32_1 : i32, i32, i32
  }
  func.func @transform_2(%arg0: i32) -> (i32, i32, i32) {
    %c0_i32 = arith.constant 0 : i32
    %c0_i32_0 = arith.constant 0 : i32
    %c0_i32_1 = arith.constant 0 : i32
    %c0_i32_2 = arith.constant 0 : i32
    return %c0_i32, %c0_i32_0, %c0_i32_1 : i32, i32, i32
  }
  func.func @transform_3(%arg0: i32) -> (i32, i32, i32) {
    %c0_i32 = arith.constant 0 : i32
    %c0_i32_0 = arith.constant 0 : i32
    %c0_i32_1 = arith.constant 0 : i32
    %c0_i32_2 = arith.constant 0 : i32
    return %c0_i32, %c0_i32_0, %c0_i32_1 : i32, i32, i32
  }
  func.func @transform_4(%arg0: i32) -> (i32, i32, i32) {
    %c0_i32 = arith.constant 0 : i32
    %c0_i32_0 = arith.constant 0 : i32
    %c0_i32_1 = arith.constant 0 : i32
    %c0_i32_2 = arith.constant 0 : i32
    return %c0_i32, %c0_i32_0, %c0_i32_1 : i32, i32, i32
  }
  func.func @transform_5(%arg0: i32) -> (i32, i32, i32) {
    %c0_i32 = arith.constant 0 : i32
    %c0_i32_0 = arith.constant 0 : i32
    %c0_i32_1 = arith.constant 0 : i32
    %c0_i32_2 = arith.constant 0 : i32
    return %c0_i32, %c0_i32_0, %c0_i32_1 : i32, i32, i32
  }
  func.func @transform_6(%arg0: i32) -> (i32, i32, i32) {
    %c0_i32 = arith.constant 0 : i32
    %c0_i32_0 = arith.constant 0 : i32
    %c0_i32_1 = arith.constant 0 : i32
    %c0_i32_2 = arith.constant 0 : i32
    return %c0_i32, %c0_i32_0, %c0_i32_1 : i32, i32, i32
  }
  func.func @transform_7(%arg0: i32) -> (i32, i32, i32) {
    %c0_i32 = arith.constant 0 : i32
    %c0_i32_0 = arith.constant 0 : i32
    %c0_i32_1 = arith.constant 0 : i32
    %c0_i32_2 = arith.constant 0 : i32
    return %c0_i32, %c0_i32_0, %c0_i32_1 : i32, i32, i32
  }
  func.func @transform_8(%arg0: i32) -> (i32, i32, i32) {
    %c0_i32 = arith.constant 0 : i32
    %c0_i32_0 = arith.constant 0 : i32
    %c0_i32_1 = arith.constant 0 : i32
    %c0_i32_2 = arith.constant 0 : i32
    return %c0_i32, %c0_i32_0, %c0_i32_1 : i32, i32, i32
  }
  func.func @transform_9(%arg0: i32) -> (i32, i32, i32) {
    %c0_i32 = arith.constant 0 : i32
    %c0_i32_0 = arith.constant 0 : i32
    %c0_i32_1 = arith.constant 0 : i32
    %c0_i32_2 = arith.constant 0 : i32
    return %c0_i32, %c0_i32_0, %c0_i32_1 : i32, i32, i32
  }
  func.func @transform_10(%arg0: i32) -> (i32, i32, i32) {
    %c0_i32 = arith.constant 0 : i32
    %c0_i32_0 = arith.constant 0 : i32
    %c0_i32_1 = arith.constant 0 : i32
    %c0_i32_2 = arith.constant 0 : i32
    return %c0_i32, %c0_i32_0, %c0_i32_1 : i32, i32, i32
  }
  func.func @transform_11(%arg0: i32) -> (i32, i32, i32) {
    %c0_i32 = arith.constant 0 : i32
    %c0_i32_0 = arith.constant 0 : i32
    %c0_i32_1 = arith.constant 0 : i32
    %c0_i32_2 = arith.constant 0 : i32
    return %c0_i32, %c0_i32_0, %c0_i32_1 : i32, i32, i32
  }
  func.func @transform_12(%arg0: i32) -> (i32, i32, i32) {
    %c0_i32 = arith.constant 0 : i32
    %c0_i32_0 = arith.constant 0 : i32
    %c0_i32_1 = arith.constant 0 : i32
    %c0_i32_2 = arith.constant 0 : i32
    return %c0_i32, %c0_i32_0, %c0_i32_1 : i32, i32, i32
  }
  func.func @transform_13(%arg0: i32) -> (i32, i32) {
    %c0_i32 = arith.constant 0 : i32
    %c0_i32_0 = arith.constant 0 : i32
    return %arg0, %c0_i32 : i32, i32
  }
}

</mosaic_0001>

<bundles_post_ra>
// kernel: tpu_custom_call.1
= control target key start
LH: loop header
LB: loop body
LE: loop exit
PB: predicated region body
PF: predicated region fallthrough
CT: control target
= control target key end

     0   :  { %18 = vsyncpa [#allocation3], 0  ;;  %s5362_s0 = inlined_call_operand.hbm [shape: f32[2,8,128], index: 0, kind: input, shape index: {}]   ;;  %s5363_s1 = inlined_call_operand.hbm [shape: bf16[2,128,384], index: 1, kind: input, shape index: {}]   ;;  %s5364_s2 = inlined_call_operand.hbm [shape: f32[2,1,384], index: 2, kind: input, shape index: {}]   ;;  %s5365_s3 = inlined_call_operand.hbm [shape: bf16[2,128,128], index: 3, kind: input, shape index: {}]   ;;  %s5366_s4 = inlined_call_operand.vmem [shape: f32[2,1,128], index: 4, kind: input, shape index: {}]   ;;  %s5367_s5 = inlined_call_operand.hbm [shape: bf16[2,128,256], index: 5, kind: input, shape index: {}]   ;;  %s5368_s6 = inlined_call_operand.vmem [shape: f32[2,1,256], index: 6, kind: input, shape index: {}]   ;;  %s5369_s7 = inlined_call_operand.hbm [shape: bf16[2,256,128], index: 7, kind: input, shape index: {}]   ;;  %s5370_s8 = inlined_call_operand.vmem [shape: f32[2,1,128], index: 8, kind: input, shape index: {}]   ;;  %s5371_s9 = inlined_call_operand.vmem [shape: f32[2,1,128], index: 9, kind: input, shape index: {}]   ;;  %s5372_s10 = inlined_call_operand.vmem [shape: f32[2,1,128], index: 10, kind: input, shape index: {}]   ;;  %s5373_s11 = inlined_call_operand.vmem [shape: f32[2,1,128], index: 11, kind: input, shape index: {}]   ;;  %s5374_s12 = inlined_call_operand.vmem [shape: f32[2,1,128], index: 12, kind: input, shape index: {}]   ;;  %s5375_s13 = inlined_call_operand.hbm [shape: f32[2,128], index: 13, kind: output, shape index: {}]  }
   0x1   :  { %19 = vsyncpa [#allocation6], 0 }
   0x2   :  { %20 = vsyncpa [#allocation9], 0 }
   0x3   :  { %21 = vsyncpa [#allocation12], 0 }
   0x4   :  { %22 = vsyncpa [#allocation4], 0  ;;  %s4697_s25 = smov [#allocation5]  }
   0x5   :  { %s40_s26 = sshll.u32 %s4697_s25, 4  ;;  %s41_s26 = int_to_ptr.vmem [resolvable:$true] %s40_s26 }
   0x6   :  { %s4555_s27 = scalar_lea.vmem %s41_s26, 6144  ;;  %p4560_p1 = scmp.lt.s32.totalorder %s41_s26, %s41_s26 }
   0x7   :  { %p4556_p0 = scmp.ne.s32.totalorder %s41_s26, %s4555_s27  ;;  %p4561_p2 = scmp.lt.s32.totalorder %s4555_s27, %s4555_s27 }
   0x9   :  { %p4562_p3 = por %p4561_p2, %p4560_p1 }
   0xb   :  { %p4563_p4 = pnand %p4562_p3, %p4556_p0 }
   0xd   :  { %4566 = shalt.err (!%p4563_p4)
}
   0xe   :  { %s4698_s28 = smov 192   ;;  %s4699_s29 = smov 12  }
   0xf   :  { %46 = dma.hbm_to_vmem [thread:$0]  %s5363_s1, 6144, %s41_s26, [#allocation6], %s4698_s28, %s4698_s28, %s4699_s29  }
  0x10   :  { %s4700_s15 = smov [#allocation8]  }
  0x11   :  { %s64_s16 = sshll.u32 %s4700_s15, 4  ;;  %s65_s16 = int_to_ptr.vmem [resolvable:$true] %s64_s16 }
  0x12   :  { %s4575_s17 = scalar_lea.vmem %s65_s16, 2048  ;;  %p4580_p6 = scmp.lt.s32.totalorder %s65_s16, %s65_s16 }
  0x13   :  { %p4576_p5 = scmp.ne.s32.totalorder %s65_s16, %s4575_s17  ;;  %p4581_p7 = scmp.lt.s32.totalorder %s4575_s17, %s4575_s17 }
  0x15   :  { %p4582_p8 = por %p4581_p7, %p4580_p6 }
  0x17   :  { %p4583_p9 = pnand %p4582_p8, %p4576_p5 }
  0x19   :  { %4586 = shalt.err (!%p4583_p9)
}
  0x1a   :  { %s4701_s18 = smov 64   ;;  %s4702_s19 = smov 4  }
  0x1b   :  { %70 = dma.hbm_to_vmem [thread:$0]  %s5365_s3, 2048, %s65_s16, [#allocation9], %s4701_s18, %s4701_s18, %s4702_s19  }
  0x1c   :  { %s4703_s1 = smov [#allocation2]  }
  0x1d   :  { %s28_s22 = sshll.u32 %s4703_s1, 4  ;;  %s29_s22 = int_to_ptr.vmem [resolvable:$true] %s28_s22 }
  0x1e   :  { %s4595_s23 = scalar_lea.vmem %s29_s22, 256  ;;  %p4600_p11 = scmp.lt.s32.totalorder %s29_s22, %s29_s22 }
  0x1f   :  { %p4596_p10 = scmp.ne.s32.totalorder %s29_s22, %s4595_s23  ;;  %p4601_p12 = scmp.lt.s32.totalorder %s4595_s23, %s4595_s23 }
  0x21   :  { %p4602_p13 = por %p4601_p12, %p4600_p11 }
  0x23   :  { %p4603_p0 = pnand %p4602_p13, %p4596_p10 }
  0x25   :  { %4606 = shalt.err (!%p4603_p0)
}
  0x26   :  { %s4704_s24 = smov 128   ;;  %s4705_s25 = smov 8  }
  0x27   :  { %34 = dma.hbm_to_vmem [thread:$0]  %s5362_s0, 256, %s29_s22, [#allocation3], %s4704_s24, %s4704_s24, %s4705_s25  }
  0x28   :  { %s4706_s3 = smov [#allocation7]  }
  0x29   :  { %s52_s28 = sshll.u32 %s4706_s3, 4  ;;  %s53_s28 = int_to_ptr.vmem [resolvable:$true] %s52_s28 }
  0x2a   :  { %s4615_s29 = scalar_lea.vmem %s53_s28, 96  ;;  %p4620_p2 = scmp.lt.s32.totalorder %s53_s28, %s53_s28 }
  0x2b   :  { %p4616_p1 = scmp.ne.s32.totalorder %s53_s28, %s4615_s29  ;;  %p4621_p3 = scmp.lt.s32.totalorder %s4615_s29, %s4615_s29 }
  0x2d   :  { %p4622_p4 = por %p4621_p3, %p4620_p2 }
  0x2f   :  { %p4623_p5 = pnand %p4622_p4, %p4616_p1 }
  0x31   :  { %4626 = shalt.err (!%p4623_p5)
}
  0x32   :  { %s4707_s30 = smov 48   ;;  %s4708_s14 = smov 3  }
  0x33   :  { %58 = dma.hbm_to_vmem [thread:$0]  %s5364_s2, 96, %s53_s28, [#allocation6], %s4707_s30, %s4707_s30, %s4708_s14  }
  0x34   :  { %s4709_s17 = smov [#allocation10]   ;;  %s4710_s21 = smov [#allocation11]  }
  0x35   :  { %s78_s20 = sshll.u32 %s4709_s17, 4  ;;  %s92_s0 = sshll.u32 %s4710_s21, 4  ;;  %s79_s20 = int_to_ptr.vmem [resolvable:$true] %s78_s20  ;;  %s93_s0 = int_to_ptr.vmem [resolvable:$true] %s92_s0 }
  0x36   :  { %s4635_s1 = scalar_lea.vmem %s79_s20, 4096  ;;  %p4640_p7 = scmp.lt.s32.totalorder %s79_s20, %s79_s20 }
  0x37   :  { %p4636_p6 = scmp.ne.s32.totalorder %s79_s20, %s4635_s1  ;;  %p4641_p8 = scmp.lt.s32.totalorder %s4635_s1, %s4635_s1 }
  0x39   :  { %p4642_p9 = por %p4641_p8, %p4640_p7 }
  0x3b   :  { %p4643_p10 = pnand %p4642_p9, %p4636_p6 }
  0x3d   :  { %4646 = shalt.err (!%p4643_p10)
}
  0x3e   :  { %84 = dma.hbm_to_vmem [thread:$0]  %s5367_s5, 4096, %s79_s20, [#allocation9], %s4704_s24, %s4704_s24, %s4705_s25  }
  0x3f   :  { %s4655_s2 = scalar_lea.vmem %s93_s0, 4096  ;;  %p4660_p12 = scmp.lt.s32.totalorder %s93_s0, %s93_s0 }
  0x40   :  { %p4656_p11 = scmp.ne.s32.totalorder %s93_s0, %s4655_s2  ;;  %p4661_p13 = scmp.lt.s32.totalorder %s4655_s2, %s4655_s2 }
  0x42   :  { %p4662_p0 = por %p4661_p13, %p4660_p12 }
  0x44   :  { %p4663_p1 = pnand %p4662_p0, %p4656_p11 }
  0x46   :  { %4666 = shalt.err (!%p4663_p1)
}
  0x47   :  { %98 = dma.hbm_to_vmem [thread:$0]  %s5369_s7, 4096, %s93_s0, [#allocation12], %s4701_s18, %s4701_s18, %s4702_s19  }
  0x48   :  { %4687 = dma.done.wait [#allocation3], 256  }
  0x49   :  { %4688 = vsyncadd [#allocation3], 4294967040 }
  0x4a   :  { %4689 = dma.done.wait [#allocation6], 6240  }
  0x4b   :  { %4690 = vsyncadd [#allocation6], 4294961056 }
  0x4c   :  { %4691 = dma.done.wait [#allocation9], 6144  }
  0x4d   :  { %4692 = vsyncadd [#allocation9], 4294961152 }
  0x4e   :  { %4693 = dma.done.wait [#allocation12], 4096  }
  0x4f   :  { %4694 = vsyncadd [#allocation12], 4294963200  ;;  %v4711_v0 = vmov 0   ;;  %v4712_v1 = vmov 0.0   ;;  %v4305_v2 = vld [vmem:[#allocation5 + $0xac] ss:$12 sps:$4 sm:$0xff]   ;;  %v165_v29 = vlaneseq }
  0x50   :  { %340 = vmatprep.mubr.bf16.mxu0 %v4711_v0  ;;  %3983 = vmatprep.subr.bf16.mxu1 %v4712_v1  ;;  %v4307_v3 = vld [vmem:[#allocation5 + $0xa8] ss:$12 sps:$4 sm:$0xff]   ;;  %v4310_v5 = vld [vmem:[#allocation5 + $0x90] ss:$12 sps:$4 sm:$0xff]   ;;  %v4313_v7 = vld [vmem:[#allocation5 + $0x78] ss:$12 sps:$4 sm:$0xff]  }
  0x51   :  { %308 = vmatprep.subr.bf16.mxu0 %v4305_v2  ;;  %v4308_v4 = vld [vmem:[#allocation5 + $0x94] ss:$12 sps:$4 sm:$0xff]   ;;  %v4311_v6 = vld [vmem:[#allocation5 + $0x7c] ss:$12 sps:$4 sm:$0xff]   ;;  %v4314_v8 = vld [vmem:[#allocation5 + $0x64] ss:$12 sps:$4 sm:$0xff]  }
  0x52   :  { %309 = vmatpush1.bf16.msra.mxu0 %v4307_v3  ;;  %v4316_v9 = vld [vmem:[#allocation5 + $0x60] ss:$12 sps:$4 sm:$0xff]   ;;  %v4329_v11 = vld [vmem:[#allocation5 + $0xb0] ss:$12 sps:$4 sm:$0xff]   ;;  %v4330_v12 = vld [vmem:[#allocation5 + $0x98] ss:$12 sps:$4 sm:$0xff]  }
  0x53   :  { %310 = vmatprep.subr.bf16.mxu0 %v4308_v4  ;;  %v4317_v10 = vld [vmem:[#allocation5 + $0x4c] ss:$12 sps:$4 sm:$0xff]   ;;  %3984 = vmatpush3.bf16.msra.mxu1 %v4329_v11  ;;  %v4319_v13 = vld [vmem:[#allocation5 + $0x48] ss:$12 sps:$4 sm:$0xff]   ;;  %v4322_v15 = vld [vmem:[#allocation5 + $0x30] ss:$12 sps:$4 sm:$0xff]  }
  0x54   :  { %3985 = vmatprep.subr.bf16.mxu1 %v4712_v1  ;;  %v4320_v14 = vld [vmem:[#allocation5 + $0x34] ss:$12 sps:$4 sm:$0xff]   ;;  %v4323_v16 = vld [vmem:[#allocation5 + $0x1c] ss:$12 sps:$4 sm:$0xff]   ;;  %v4325_v19 = vld [vmem:[#allocation5 + $0x18] ss:$12 sps:$4 sm:$0xff]  }
  0x55   :  { %v4331_v17 = vld [vmem:[#allocation5 + $0x80] ss:$12 sps:$4 sm:$0xff]   ;;  %v4332_v18 = vld [vmem:[#allocation5 + $0x68] ss:$12 sps:$4 sm:$0xff]   ;;  %v4326_v20 = vld [vmem:[#allocation5 + $0x4] ss:$12 sps:$4 sm:$0xff]  }
  0x56   :  { %311 = vmatpush1.bf16.msra.mxu0 %v4310_v5  ;;  %v4333_v21 = vld [vmem:[#allocation5 + $0x50] ss:$12 sps:$4 sm:$0xff]   ;;  %v4328_v22 = vld [vmem:[#allocation5] ss:$12 sps:$4 sm:$0xff]   ;;  %v4334_v25 = vld [vmem:[#allocation5 + $0x38] ss:$12 sps:$4 sm:$0xff]  }
  0x57   :  { %312 = vmatprep.subr.bf16.mxu0 %v4311_v6  ;;  %3986 = vmatpush3.bf16.msra.mxu1 %v4330_v12  ;;  %v128_v23 = vld [vmem:[#allocation2] sm:$0xff]  ;;  %v129_v24 = vld [vmem:[#allocation2 + $0x8] sm:$0xff]  ;;  %v4335_v27 = vld [vmem:[#allocation5 + $0x20] ss:$12 sps:$4 sm:$0xff]   ;;  %vm4713_vm0 = vmmov 0   ;;  %v4834_v30 = vshrl.u32 %v165_v29, 7 }
  0x58   :  { %3987 = vmatprep.subr.bf16.mxu1 %v4712_v1  ;;  %v130_v26 = vpack.c.bf16 %v129_v24, %v128_v23  ;;  %v4336_v28 = vld [vmem:[#allocation5 + $0x8] ss:$12 sps:$4 sm:$0xff]   ;;  %3999 = vmatprep.mubr.msk.bf16.mxu1 %vm4713_vm0, %v4712_v1  ;;  %v163_v33 = vld [vmem:[#allocation7] sm:$0x7]  ;;  %vm409_vm1 = vcmask 261120   ;;  %s4714_s5 = smov 96  }
  0x59   :  { %v4837_v31 = vsub.s32 0, %v4834_v30  ;;  %v4840_v32 = vsub.s32 1, %v4834_v30  ;;  %v175_v51 = vsub.s32 2, %v4834_v30  ;;  %vm529_vm2 = vcmask 1043456   ;;  %s4715_s7 = smov 32  }
  0x5a   :  { %313 = vmatpush1.bf16.msra.mxu0 %v4313_v7  ;;  %vm503_vm3 = vcmask 64512   ;;  %vm1315_vm4 = vcmask 523264   ;;  %vm1318_vm5 = vcmask 785408   ;;  %vm3614_vm6 = vcmask 1041409  }
  0x5b   :  { %314 = vmatprep.subr.bf16.mxu0 %v4314_v8  ;;  %3988 = vmatpush3.bf16.msra.mxu1 %v4331_v17  ;;  %v168_v34 = vrot.slane %v163_v33, %v4837_v31  ;;  %v172_v35 = vrot.slane %v163_v33, %v4840_v32  ;;  %v176_v52 = vrot.slane %v163_v33, %v175_v51 }
  0x5c   :  { %3989 = vmatprep.subr.bf16.mxu1 %v4712_v1 }
  0x5e   :  { %315 = vmatpush1.bf16.msra.mxu0 %v4316_v9 }
  0x5f   :  { %316 = vmatprep.subr.bf16.mxu0 %v4317_v10  ;;  %3990 = vmatpush3.bf16.msra.mxu1 %v4332_v18 }
  0x60   :  { %3991 = vmatprep.subr.bf16.mxu1 %v4712_v1 }
  0x62   :  { %317 = vmatpush1.bf16.msra.mxu0 %v4319_v13 }
  0x63   :  { %318 = vmatprep.subr.bf16.mxu0 %v4320_v14  ;;  %3992 = vmatpush3.bf16.msra.mxu1 %v4333_v21 }
  0x64   :  { %3993 = vmatprep.subr.bf16.mxu1 %v4712_v1 }
  0x66   :  { %319 = vmatpush1.bf16.msra.mxu0 %v4322_v15 }
  0x67   :  { %320 = vmatprep.subr.bf16.mxu0 %v4323_v16  ;;  %3994 = vmatpush3.bf16.msra.mxu1 %v4334_v25 }
  0x68   :  { %3995 = vmatprep.subr.bf16.mxu1 %v4712_v1 }
  0x6a   :  { %321 = vmatpush1.bf16.msra.mxu0 %v4325_v19 }
  0x6b   :  { %322 = vmatprep.subr.bf16.mxu0 %v4326_v20  ;;  %3996 = vmatpush3.bf16.msra.mxu1 %v4335_v27 }
  0x6c   :  { %3997 = vmatprep.subr.bf16.mxu1 %v4712_v1 }
  0x6e   :  { %323 = vmatpush1.bf16.msra.mxu0 %v4328_v22 }
  0x6f   :  { %4027 = vmatprep.subr.bf16.mxu0 %v4712_v1  ;;  %3998 = vmatpush3.bf16.msra.mxu1 %v4336_v28 }
  0x70   :  { %4003 = vmatprep.subr.bf16.mxu1 %v4712_v1 }
  0x71   :  { %341 = vmatmul.mubr.bf16.vlgmr.msra.gmra.mxu0 %v130_v26 }
  0x72   :  { %4029 = vmatprep.mubr.msk.bf16.mxu0 %vm4713_vm0, %v4712_v1  ;;  %4000 = vmatmul.mubr.bf16.vlgmr.msra.gmra.mxu1 %v130_v26 }
  0x73   :  { %4005 = vmatprep.mubr.msk.bf16.mxu1 %vm4713_vm0, %v4712_v1 }
 0x131   :  { %v342_v36 = vpop.f32.mrf.mxu0 }
 0x132   :  { %v343_v38 = vadd.f32 %v342_v36, %v168_v34  ;;  %v385_v53 = vpop.f32.mrf.mxu1 }
 0x133   :  { %v344_v37 = vpop.f32.mrf.mxu0  ;;  %v386_v54 = vadd.f32 %v385_v53, %v176_v52 }
 0x134   :  { %v345_v39 = vadd.f32 %v344_v37, %v172_v35  ;;  %v4001_v55 = vpop.f32.mrf.mxu1  ;;  %v4884_v12 = vpack.c.bf16 %v343_v38, %v343_v38 }
 0x135   :  { %v346_v40 = vpop.f32.mrf.mxu0  ;;  %v4873_v56 = vpack.c.bf16 %v386_v54, %v386_v54 }
 0x136   :  { %v4844_v41 = vpack.c.bf16 %v345_v39, %v343_v38  ;;  %v347_v43 = vadd.f32 %v346_v40, %v168_v34  ;;  %v388_v57 = vpop.f32.mrf.mxu1 }
 0x137   :  { %v348_v42 = vpop.f32.mrf.mxu0  ;;  %v389_v58 = vadd.f32 %v388_v57, %v176_v52  ;;  %v531_v59 = vsel %vm529_vm2, %v4873_v56, 0 }
 0x138   :  { %v349_v44 = vadd.f32 %v348_v42, %v172_v35  ;;  %621 = vrot.lane.b32.xlu1 %v4844_v41, %s4714_s5  ;;  %v408_v45 = vrot.slane %v4844_v41, 4  ;;  %v4855_v48 = vpack.c.bf16 %v347_v43, %v347_v43  ;;  %v4002_v60 = vpop.f32.mrf.mxu1 }
 0x139   :  { %v4893_v24 = vpack.c.bf16 %v389_v58, %v389_v58 }
 0x13a   :  { %v4849_v46 = vpack.c.bf16 %v349_v44, %v347_v43  ;;  %v414_v47 = vsel %vm409_vm1, %v408_v45, 0 }
 0x13b   :  { %4004 = vmatpush3.bf16.xpose.msra.mxu1 %v414_v47  ;;  %v577_v27 = vsel %vm529_vm2, %v4893_v24, 0 }
 0x13c   :  { %673 = vrot.lane.b32.xlu1 %v4849_v46, %s4714_s5  ;;  %4009 = vmatprep.subr.bf16.mxu1 %v4712_v1  ;;  %v456_v49 = vrot.slane %v4849_v46, 4 }
 0x13e   :  { %v461_v50 = vsel %vm409_vm1, %v456_v49, 0 }
 0x140   :  { %677 = vrot.lane.b32.xlu1 %v4855_v48, %s4714_s5 }
 0x142   :  { %4006 = vmatmul.mubr.msk.bf16.vlgmr.msra.gmra.mxu1 %vm409_vm1, %v4844_v41 }
 0x143   :  { %4010 = vmatpush3.bf16.xpose.msra.mxu1 %v461_v50  ;;  %4011 = vmatprep.mubr.msk.bf16.mxu1 %vm4713_vm0, %v4712_v1 }
 0x144   :  { %4015 = vmatprep.subr.bf16.mxu1 %v4712_v1  ;;  %747 = vrot.lane.b32.xlu1 %v4873_v56, %s4714_s5 }
 0x14a   :  { %4012 = vmatmul.mubr.msk.bf16.vlgmr.msra.gmra.mxu1 %vm409_vm1, %v4849_v46 }
 0x14b   :  { %4017 = vmatprep.mubr.msk.bf16.mxu1 %vm4713_vm0, %v4712_v1  ;;  %4016 = vmatpush3.bf16.msra.mxu1 %v531_v59 }
 0x14c   :  { %4021 = vmatprep.subr.bf16.mxu1 %v4712_v1 }
 0x1aa   :  { %v622_v61 = vpop.permute.xlu1 %621 }
 0x1ab   :  { %v623_v62 = vrot.slane %v622_v61, 4 }
 0x1ad   :  { %v631_v63 = vsel %vm409_vm1, %v623_v62, 0 }
 0x1ae   :  { %4028 = vmatpush3.bf16.xpose.msra.mxu0 %v631_v63  ;;  %v674_v13 = vpop.permute.xlu1 %673 }
 0x1af   :  { %4039 = vmatprep.subr.bf16.mxu0 %v4712_v1  ;;  %v675_v28 = vrot.slane %v674_v13, 4 }
 0x1b1   :  { %v683_v34 = vsel %vm409_vm1, %v675_v28, 0 }
 0x1b2   :  { %v678_v17 = vpop.permute.xlu1 %677 }
 0x1b6   :  { %v748_v20 = vpop.permute.xlu1 %747 }
 0x1b7   :  { %v753_v23 = vsel %vm529_vm2, %v748_v20, 0 }
 0x202   :  { %v450_v2 = vpop.f32.mrf.mxu1 }
 0x203   :  { %v504_v3 = vsel %vm503_vm3, %v450_v2, -inf }
 0x204   :  { %505 = vmax.xlane.f32.xlu0 %v504_v3  ;;  %v4007_v4 = vpop.f32.mrf.mxu1 }
 0x206   :  { %v453_v5 = vpop.f32.mrf.mxu1 }
 0x208   :  { %v4008_v6 = vpop.f32.mrf.mxu1 }
 0x20a   :  { %v497_v7 = vpop.f32.mrf.mxu1 }
 0x20b   :  { %v507_v8 = vsel %vm503_vm3, %v497_v7, -inf }
 0x20c   :  { %508 = vmax.xlane.f32.xlu0 %v507_v8  ;;  %v4013_v9 = vpop.f32.mrf.mxu1 }
 0x20e   :  { %v500_v10 = vpop.f32.mrf.mxu1 }
 0x210   :  { %v4014_v11 = vpop.f32.mrf.mxu1 }
 0x222   :  { %625 = vrot.lane.b32.xlu0 %v4884_v12, %s4714_s5 }
 0x28d   :  { %v506_v14 = vpop.xlane.xlu0 %505 }
 0x28e   :  { %v510_v15 = vsub.f32 %v450_v2, %v506_v14 }
 0x290   :  { %v512_v16 = vmul.f32 1.442695, %v510_v15 }
 0x292   :  { %4465 = vpow2.f32 %v512_v16 }
 0x295   :  { %v509_v18 = vpop.xlane.xlu0 %508 }
 0x296   :  { %v511_v19 = vsub.f32 %v497_v7, %v509_v18 }
 0x298   :  { %v514_v21 = vmul.f32 1.442695, %v511_v19 }
 0x299   :  { %v626_v22 = vpop.permute.xlu0 %625 }
 0x29a   :  { %4467 = vpow2.f32 %v514_v21  ;;  %4030 = vmatmul.mubr.msk.bf16.vlgmr.msra.gmra.mxu0 %vm409_vm1, %v626_v22 }
 0x29b   :  { %4040 = vmatpush3.bf16.msra.mxu0 %v753_v23  ;;  %4041 = vmatprep.mubr.msk.bf16.mxu0 %vm4713_vm0, %v4712_v1 }
 0x29c   :  { %4051 = vmatprep.subr.bf16.mxu0 %v4712_v1 }
 0x29f   :  { %v4895_v25 = vpop.eup %4465 }
 0x2a0   :  { %v524_v26 = vpack.c.bf16 %v4895_v25, %v4895_v25 }
 0x2a2   :  { %4018 = vmatmul.mubr.msk.bf16.vlgmr.msra.gmra.mxu1 %vm503_vm3, %v524_v26 }
 0x2a3   :  { %4022 = vmatpush3.bf16.msra.mxu1 %v577_v27  ;;  %4023 = vmatprep.mubr.msk.bf16.mxu1 %vm4713_vm0, %v4712_v1 }
 0x2a4   :  { %4033 = vmatprep.subr.bf16.mxu1 %v4712_v1 }
 0x2a7   :  { %v4905_v29 = vpop.eup %4467 }
 0x2a8   :  { %v525_v33 = vpack.c.bf16 %v4905_v29, %v4905_v29 }
 0x2aa   :  { %4024 = vmatmul.mubr.msk.bf16.vlgmr.msra.gmra.mxu1 %vm503_vm3, %v525_v33 }
 0x2ab   :  { %4034 = vmatpush3.bf16.xpose.msra.mxu1 %v683_v34  ;;  %4035 = vmatprep.mubr.msk.bf16.mxu1 %vm4713_vm0, %v4712_v1 }
 0x2ac   :  { %4045 = vmatprep.subr.bf16.mxu1 %v4712_v1 }
 0x2b2   :  { %4036 = vmatmul.mubr.msk.bf16.vlgmr.msra.gmra.mxu1 %vm409_vm1, %v678_v17 }
 0x2b3   :  { %4047 = vmatprep.mubr.msk.bf16.mxu1 %vm4713_vm0, %v4712_v1 }
 0x35a   :  { %v667_v35 = vpop.f32.mrf.mxu0 }
 0x35b   :  { %v725_v36 = vsel %vm503_vm3, %v667_v35, -inf }
 0x35c   :  { %726 = vmax.xlane.f32.xlu1 %v725_v36  ;;  %v4031_v37 = vpop.f32.mrf.mxu0 }
 0x35e   :  { %v670_v38 = vpop.f32.mrf.mxu0 }
 0x360   :  { %v4032_v39 = vpop.f32.mrf.mxu0 }
 0x362   :  { %v4918_v40 = vpop.f32.mrf.mxu1 }
 0x364   :  { %v4019_v42 = vpop.f32.mrf.mxu1 }
 0x366   :  { %v570_v43 = vpop.f32.mrf.mxu1 }
 0x368   :  { %v4020_v44 = vpop.f32.mrf.mxu1 }
 0x36a   :  { %v4920_v45 = vpop.f32.mrf.mxu1 }
 0x36c   :  { %v4025_v47 = vpop.f32.mrf.mxu1 }
 0x36d   :  { %845 = vrot.lane.b32.xlu1 %v4844_v41, %s4701_s18 }
 0x36e   :  { %v616_v49 = vpop.f32.mrf.mxu1 }
 0x370   :  { %v4026_v50 = vpop.f32.mrf.mxu1 }
 0x371   :  { %896 = vrot.lane.b32.xlu1 %v4849_v46, %s4701_s18 }
 0x372   :  { %v719_v52 = vpop.f32.mrf.mxu1 }
 0x373   :  { %v728_v53 = vsel %vm503_vm3, %v719_v52, -inf }
 0x374   :  { %729 = vmax.xlane.f32.xlu0 %v728_v53  ;;  %v4037_v54 = vpop.f32.mrf.mxu1 }
 0x375   :  { %848 = vrot.lane.b32.xlu1 %v4884_v12, %s4701_s18 }
 0x376   :  { %v722_v55 = vpop.f32.mrf.mxu1 }
 0x378   :  { %v4038_v57 = vpop.f32.mrf.mxu1 }
 0x379   :  { %899 = vrot.lane.b32.xlu1 %v4855_v48, %s4701_s18 }
 0x37d   :  { %1017 = vrot.lane.b32.xlu1 %v4893_v24, %s4701_s18 }
 0x38a   :  { %795 = vrot.lane.b32.xlu0 %v4893_v24, %s4714_s5 }
 0x38e   :  { %969 = vrot.lane.b32.xlu0 %v4873_v56, %s4701_s18 }
 0x3e5   :  { %v727_v58 = vpop.xlane.xlu1 %726 }
 0x3e6   :  { %v731_v59 = vsub.f32 %v667_v35, %v727_v58 }
 0x3e8   :  { %v733_v60 = vmul.f32 1.442695, %v731_v59 }
 0x3e9   :  { %v846_v61 = vpop.permute.xlu1 %845 }
 0x3ea   :  { %4469 = vpow2.f32 %v733_v60  ;;  %v847_v62 = vrot.slane %v846_v61, 4 }
 0x3ec   :  { %v854_v3 = vsel %vm409_vm1, %v847_v62, 0 }
 0x3ed   :  { %v897_v4 = vpop.permute.xlu1 %896 }
 0x3ee   :  { %v898_v14 = vrot.slane %v897_v4, 4 }
 0x3f0   :  { %v905_v18 = vsel %vm409_vm1, %v898_v14, 0 }
 0x3f1   :  { %v849_v8 = vpop.permute.xlu1 %848 }
 0x3f5   :  { %v900_v17 = vpop.permute.xlu1 %899 }
 0x3f7   :  { %v4937_v63 = vpop.eup %4469 }
 0x3f8   :  { %v745_v2 = vpack.c.bf16 %v4937_v63, %v4937_v63 }
 0x3f9   :  { %v1018_v19 = vpop.permute.xlu1 %1017 }
 0x3fa   :  { %4042 = vmatmul.mubr.msk.bf16.vlgmr.msra.gmra.mxu0 %vm503_vm3, %v745_v2  ;;  %v1023_v20 = vsel %vm529_vm2, %v1018_v19, 0 }
 0x3fb   :  { %4052 = vmatpush3.bf16.xpose.msra.mxu0 %v854_v3  ;;  %4053 = vmatprep.mubr.msk.bf16.mxu0 %vm4713_vm0, %v4712_v1 }
 0x3fc   :  { %4063 = vmatprep.subr.bf16.mxu0 %v4712_v1 }
 0x3fd   :  { %v730_v5 = vpop.xlane.xlu0 %729 }
 0x3fe   :  { %v732_v6 = vsub.f32 %v719_v52, %v730_v5 }
 0x400   :  { %v735_v7 = vmul.f32 1.442695, %v732_v6 }
 0x401   :  { %v796_v9 = vpop.permute.xlu0 %795 }
 0x402   :  { %4471 = vpow2.f32 %v735_v7  ;;  %v801_v10 = vsel %vm529_vm2, %v796_v9, 0  ;;  %4054 = vmatmul.mubr.msk.bf16.vlgmr.msra.gmra.mxu0 %vm409_vm1, %v849_v8 }
 0x403   :  { %4046 = vmatpush3.bf16.msra.mxu1 %v801_v10  ;;  %4065 = vmatprep.mubr.msk.bf16.mxu0 %vm4713_vm0, %v4712_v1 }
 0x404   :  { %4057 = vmatprep.subr.bf16.mxu1 %v4712_v1 }
 0x405   :  { %v970_v11 = vpop.permute.xlu0 %969 }
 0x406   :  { %v975_v13 = vsel %vm529_vm2, %v970_v11, 0 }
 0x407   :  { %4064 = vmatpush3.bf16.msra.mxu0 %v975_v13 }
 0x408   :  { %4075 = vmatprep.subr.bf16.mxu0 %v4712_v1 }
 0x40f   :  { %v4953_v15 = vpop.eup %4471 }
 0x410   :  { %v746_v16 = vpack.c.bf16 %v4953_v15, %v4953_v15 }
 0x412   :  { %4048 = vmatmul.mubr.msk.bf16.vlgmr.msra.gmra.mxu1 %vm503_vm3, %v746_v16 }
 0x413   :  { %4058 = vmatpush3.bf16.xpose.msra.mxu1 %v905_v18  ;;  %4059 = vmatprep.mubr.msk.bf16.mxu1 %vm4713_vm0, %v4712_v1 }
 0x414   :  { %4069 = vmatprep.subr.bf16.mxu1 %v4712_v1 }
 0x41a   :  { %4060 = vmatmul.mubr.msk.bf16.vlgmr.msra.gmra.mxu1 %vm409_vm1, %v900_v17 }
 0x41b   :  { %4070 = vmatpush3.bf16.msra.mxu1 %v1023_v20  ;;  %4071 = vmatprep.mubr.msk.bf16.mxu1 %vm4713_vm0, %v4712_v1 }
 0x41c   :  { %4081 = vmatprep.subr.bf16.mxu1 %v4712_v1 }
 0x4ba   :  { %v4967_v21 = vpop.f32.mrf.mxu0 }
 0x4bc   :  { %v4043_v22 = vpop.f32.mrf.mxu0 }
 0x4be   :  { %v792_v23 = vpop.f32.mrf.mxu0 }
 0x4c0   :  { %v4044_v26 = vpop.f32.mrf.mxu0 }
 0x4c2   :  { %v890_v27 = vpop.f32.mrf.mxu0 }
 0x4c3   :  { %v947_v28 = vsel %vm503_vm3, %v890_v27, -inf }
 0x4c4   :  { %948 = vmax.xlane.f32.xlu1 %v947_v28  ;;  %v4055_v33 = vpop.f32.mrf.mxu0  ;;  %v737_v28 = vsel %vm503_vm3, %v4937_v63, 0.0 }
 0x4c6   :  { %v893_v34 = vpop.f32.mrf.mxu0 }
 0x4c8   :  { %v4056_v35 = vpop.f32.mrf.mxu0 }
 0x4d2   :  { %v4970_v36 = vpop.f32.mrf.mxu1 }
 0x4d4   :  { %v4049_v37 = vpop.f32.mrf.mxu1 }
 0x4d5   :  { %1067 = vrot.lane.b32.xlu1 %v4844_v41, %s4715_s7 }
 0x4d6   :  { %v840_v38 = vpop.f32.mrf.mxu1 }
 0x4d8   :  { %v4050_v39 = vpop.f32.mrf.mxu1 }
 0x4d9   :  { %1070 = vrot.lane.b32.xlu1 %v4884_v12, %s4715_s7 }
 0x4da   :  { %v941_v42 = vpop.f32.mrf.mxu1 }
 0x4db   :  { %v950_v43 = vsel %vm503_vm3, %v941_v42, -inf }
 0x4dc   :  { %951 = vmax.xlane.f32.xlu0 %v950_v43  ;;  %v4061_v44 = vpop.f32.mrf.mxu1  ;;  %v516_v43 = vsel %vm503_vm3, %v4895_v25, 0.0 }
 0x4de   :  { %v944_v47 = vpop.f32.mrf.mxu1 }
 0x4e0   :  { %v4062_v49 = vpop.f32.mrf.mxu1 }
 0x4f2   :  { %1118 = vrot.lane.b32.xlu0 %v4849_v46, %s4715_s7 }
 0x4f6   :  { %1121 = vrot.lane.b32.xlu0 %v4855_v48, %s4715_s7 }
 0x54d   :  { %v949_v50 = vpop.xlane.xlu1 %948 }
 0x54e   :  { %v953_v41 = vsub.f32 %v890_v27, %v949_v50 }
 0x550   :  { %v955_v52 = vmul.f32 1.442695, %v953_v41 }
 0x551   :  { %v1068_v53 = vpop.permute.xlu1 %1067 }
 0x552   :  { %4473 = vpow2.f32 %v955_v52  ;;  %v1069_v54 = vrot.slane %v1068_v53, 4 }
 0x554   :  { %v1076_v57 = vsel %vm409_vm1, %v1069_v54, 0  ;;  %v519_v54 = vsel %vm503_vm3, %v4905_v29, 0.0 }
 0x555   :  { %v1071_v59 = vpop.permute.xlu1 %1070 }
 0x55f   :  { %v4474_v12 = vpop.eup %4473 }
 0x560   :  { %v967_v55 = vpack.c.bf16 %v4474_v12, %v4474_v12  ;;  %v959_v34 = vsel %vm503_vm3, %v4474_v12, 0.0 }
 0x562   :  { %4066 = vmatmul.mubr.msk.bf16.vlgmr.msra.gmra.mxu0 %vm503_vm3, %v967_v55 }
 0x563   :  { %4076 = vmatpush3.bf16.xpose.msra.mxu0 %v1076_v57  ;;  %4077 = vmatprep.mubr.msk.bf16.mxu0 %vm4713_vm0, %v4712_v1 }
 0x564   :  { %4087 = vmatprep.subr.bf16.mxu0 %v4712_v1 }
 0x565   :  { %v952_v46 = vpop.xlane.xlu0 %951 }
 0x566   :  { %v954_v48 = vsub.f32 %v941_v42, %v952_v46 }
 0x568   :  { %v957_v58 = vmul.f32 1.442695, %v954_v48 }
 0x569   :  { %v1119_v60 = vpop.permute.xlu0 %1118 }
 0x56a   :  { %4475 = vpow2.f32 %v957_v58  ;;  %4078 = vmatmul.mubr.msk.bf16.vlgmr.msra.gmra.mxu0 %vm409_vm1, %v1071_v59  ;;  %v1120_v61 = vrot.slane %v1119_v60, 4 }
 0x56b   :  { %4089 = vmatprep.mubr.msk.bf16.mxu0 %vm4713_vm0, %v4712_v1 }
 0x56c   :  { %v1127_v3 = vsel %vm409_vm1, %v1120_v61, 0 }
 0x56d   :  { %v1122_v4 = vpop.permute.xlu0 %1121 }
 0x577   :  { %v4476_v62 = vpop.eup %4475 }
 0x578   :  { %v968_v2 = vpack.c.bf16 %v4476_v62, %v4476_v62  ;;  %v962_v33 = vsel %vm503_vm3, %v4476_v62, 0.0 }
 0x57a   :  { %4072 = vmatmul.mubr.msk.bf16.vlgmr.msra.gmra.mxu1 %vm503_vm3, %v968_v2 }
 0x57b   :  { %4082 = vmatpush3.bf16.xpose.msra.mxu1 %v1127_v3  ;;  %4083 = vmatprep.mubr.msk.bf16.mxu1 %vm4713_vm0, %v4712_v1 }
 0x57c   :  { %4093 = vmatprep.subr.bf16.mxu1 %v4712_v1 }
 0x582   :  { %4084 = vmatmul.mubr.msk.bf16.vlgmr.msra.gmra.mxu1 %vm409_vm1, %v1122_v4 }
 0x583   :  { %4095 = vmatprep.mubr.msk.bf16.mxu1 %vm4713_vm0, %v4712_v1 }
 0x622   :  { %v4997_v5 = vpop.f32.mrf.mxu0 }
 0x624   :  { %v4067_v6 = vpop.f32.mrf.mxu0 }
 0x625   :  { %v4337_v6 = vld [vmem:[#allocation8 + $0x38] sm:$0xff]  }
 0x626   :  { %v1014_v7 = vpop.f32.mrf.mxu0 }
 0x627   :  { %v4338_v7 = vld [vmem:[#allocation8 + $0x30] sm:$0xff]  }
 0x628   :  { %v4068_v8 = vpop.f32.mrf.mxu0 }
 0x629   :  { %v4342_v8 = vld [vmem:[#allocation8 + $0x10] sm:$0xff]  }
 0x62a   :  { %v1112_v9 = vpop.f32.mrf.mxu0 }
 0x62b   :  { %v1169_v10 = vsel %vm503_vm3, %v1112_v9, -inf }
 0x62c   :  { %1170 = vmax.xlane.f32.xlu1 %v1169_v10  ;;  %v4079_v11 = vpop.f32.mrf.mxu0 }
 0x62e   :  { %v1115_v13 = vpop.f32.mrf.mxu0 }
 0x630   :  { %v4080_v14 = vpop.f32.mrf.mxu0 }
 0x63a   :  { %v5000_v16 = vpop.f32.mrf.mxu1 }
 0x63c   :  { %v4073_v17 = vpop.f32.mrf.mxu1 }
 0x63d   :  { %1239 = vrot.lane.b32.xlu1 %v4893_v24, %s4715_s7  ;;  %v740_v24 = vsel %vm503_vm3, %v4953_v15, 0.0  ;;  %v4344_v17 = vld [vmem:[#allocation8] sm:$0xff]  }
 0x63e   :  { %v1062_v18 = vpop.f32.mrf.mxu1 }
 0x640   :  { %v4074_v19 = vpop.f32.mrf.mxu1 }
 0x642   :  { %v1163_v20 = vpop.f32.mrf.mxu1 }
 0x643   :  { %v1172_v22 = vsel %vm503_vm3, %v1163_v20, -inf }
 0x644   :  { %1173 = vmax.xlane.f32.xlu0 %v1172_v22  ;;  %v4085_v23 = vpop.f32.mrf.mxu1 }
 0x646   :  { %v1166_v26 = vpop.f32.mrf.mxu1 }
 0x648   :  { %v4086_v27 = vpop.f32.mrf.mxu1 }
 0x65a   :  { %1191 = vrot.lane.b32.xlu0 %v4873_v56, %s4715_s7 }
 0x661   :  { %738 = vadd.xlane.f32.xlu1 %v737_v28 }
 0x665   :  { %963 = vadd.xlane.f32.xlu1 %v962_v33 }
 0x679   :  { %741 = vadd.xlane.f32.xlu0 %v740_v24 }
 0x67d   :  { %960 = vadd.xlane.f32.xlu0 %v959_v34 }
 0x6b5   :  { %v1171_v35 = vpop.xlane.xlu1 %1170 }
 0x6b6   :  { %v1175_v37 = vsub.f32 %v1112_v9, %v1171_v35  ;;  %v4343_v9 = vld [vmem:[#allocation8 + $0x8] sm:$0xff]  }
 0x6b8   :  { %v1177_v38 = vmul.f32 1.442695, %v1175_v37 }
 0x6b9   :  { %v1240_v39 = vpop.permute.xlu1 %1239 }
 0x6ba   :  { %4477 = vpow2.f32 %v1177_v38  ;;  %v1245_v56 = vsel %vm529_vm2, %v1240_v39, 0 }
 0x6bb   :  { %4094 = vmatpush3.bf16.msra.mxu1 %v1245_v56 }
 0x6c7   :  { %v4478_v63 = vpop.eup %4477 }
 0x6c8   :  { %v1181_v42 = vsel %vm503_vm3, %v4478_v63, 0.0  ;;  %v1189_v41 = vpack.c.bf16 %v4478_v63, %v4478_v63 }
 0x6c9   :  { %1182 = vadd.xlane.f32.xlu0 %v1181_v42 }
 0x6cd   :  { %517 = vadd.xlane.f32.xlu0 %v516_v43  ;;  %v1174_v15 = vpop.xlane.xlu0 %1173 }
 0x6ce   :  { %v1176_v44 = vsub.f32 %v1163_v20, %v1174_v15 }
 0x6d0   :  { %v1179_v47 = vmul.f32 1.442695, %v1176_v44 }
 0x6d1   :  { %v1192_v49 = vpop.permute.xlu0 %1191 }
 0x6d2   :  { %4479 = vpow2.f32 %v1179_v47  ;;  %v1197_v50 = vsel %vm529_vm2, %v1192_v49, 0 }
 0x6d3   :  { %4088 = vmatpush3.bf16.msra.mxu0 %v1197_v50 }
 0x6d4   :  { %4099 = vmatprep.subr.bf16.mxu0 %v4712_v1 }
 0x6d6   :  { %4090 = vmatmul.mubr.msk.bf16.vlgmr.msra.gmra.mxu0 %vm503_vm3, %v1189_v41 }
 0x6d7   :  { %4115 = vmatprep.mubr.msk.bf16.mxu0 %vm4713_vm0, %v4712_v1  ;;  %4100 = vmatpush3.bf16.msra.mxu0 %v4337_v6  ;;  %v4347_v6 = vld [vmem:[#allocation10 + $0x74] ss:$8 sps:$4 sm:$0xff]  }
 0x6d8   :  { %4101 = vmatprep.subr.bf16.mxu0 %v4712_v1  ;;  %1589 = vmatprep.subr.bf16.mxu1 %v4347_v6  ;;  %v4384_v6 = vld [vmem:[#allocation11] sm:$0xff]  }
 0x6db   :  { %4102 = vmatpush3.bf16.msra.mxu0 %v4338_v7  ;;  %v4345_v7 = vld [vmem:[#allocation10 + $0x70] ss:$8 sps:$4 sm:$0xff]  }
 0x6dc   :  { %4103 = vmatprep.subr.bf16.mxu0 %v4712_v1 }
 0x6df   :  { %v4480_v52 = vpop.eup %4479 }
 0x6e0   :  { %v1184_v25 = vsel %vm503_vm3, %v4480_v52, 0.0  ;;  %v1190_v53 = vpack.c.bf16 %v4480_v52, %v4480_v52 }
 0x6e1   :  { %1185 = vadd.xlane.f32.xlu1 %v1184_v25 }
 0x6e2   :  { %4096 = vmatmul.mubr.msk.bf16.vlgmr.msra.gmra.mxu1 %vm503_vm3, %v1190_v53 }
 0x6e3   :  { %1621 = vmatprep.mubr.bf16.mxu1 %v4711_v0  ;;  %1590 = vmatpush1.bf16.msra.mxu1 %v4345_v7  ;;  %v1497_v7 = vld [vmem:[%s5368_s6] sm:$0x3] }
 0x6e5   :  { %520 = vadd.xlane.f32.xlu1 %v519_v54 }
 0x6ea   :  { %v739_v12 = vpop.xlane.xlu1 %738 }
 0x6eb   :  { %4481 = vrcp.f32 %v739_v12 }
 0x6ee   :  { %v964_v55 = vpop.xlane.xlu1 %963 }
 0x6f8   :  { %v4482_v48 = vpop.eup %4481 }
 0x6f9   :  { %v843_v59 = vmul.f32 %v4482_v48, %v4967_v21  ;;  %v4339_v21 = vld [vmem:[#allocation8 + $0x28] sm:$0xff]  }
 0x6fa   :  { %4104 = vmatpush3.bf16.msra.mxu0 %v4339_v21  ;;  %v4350_v21 = vld [vmem:[#allocation10 + $0x64] ss:$8 sps:$4 sm:$0xff]  }
 0x6fb   :  { %4105 = vmatprep.subr.bf16.mxu0 %v4712_v1  ;;  %1591 = vmatprep.subr.bf16.mxu1 %v4350_v21 }
 0x702   :  { %v742_v57 = vpop.xlane.xlu0 %741 }
 0x703   :  { %4483 = vrcp.f32 %v742_v57 }
 0x704   :  { %4485 = vrcp.f32 %v964_v55 }
 0x706   :  { %v961_v46 = vpop.xlane.xlu0 %960 }
 0x707   :  { %4487 = vrcp.f32 %v961_v46 }
 0x710   :  { %v4484_v58 = vpop.eup %4483 }
 0x711   :  { %v844_v60 = vmul.f32 %v4484_v58, %v4970_v36  ;;  %v4486_v61 = vpop.eup %4485  ;;  %v4340_v36 = vld [vmem:[#allocation8 + $0x20] sm:$0xff]   ;;  %v4545_v58 = vld [vmem:[#allocation2] sm:$0xff] }
 0x712   :  { %v1066_v3 = vmul.f32 %v4486_v61, %v5000_v16  ;;  %4106 = vmatpush3.bf16.msra.mxu0 %v4340_v36  ;;  %v4348_v36 = vld [vmem:[#allocation10 + $0x60] ss:$8 sps:$4 sm:$0xff]  }
 0x713   :  { %v4275_v62 = vpack.i.bf16 %v844_v60, %v843_v59  ;;  %4107 = vmatprep.subr.bf16.mxu0 %v4712_v1  ;;  %1592 = vmatpush1.bf16.msra.mxu1 %v4348_v36  ;;  %v1506_v36 = vrot.slane %v1497_v7, %v4840_v32 }
 0x714   :  { %v4488_v2 = vpop.eup %4487 }
 0x715   :  { %4276 = vrot.lane.b32.xlu0 %v4275_v62, %s4715_s7  ;;  %v1065_v29 = vmul.f32 %v4488_v2, %v4997_v5  ;;  %v4341_v5 = vld [vmem:[#allocation8 + $0x18] sm:$0xff]  }
 0x716   :  { %4108 = vmatpush3.bf16.msra.mxu0 %v4341_v5  ;;  %v4546_v2 = vld [vmem:[#allocation2 + $0x8] sm:$0xff] }
 0x717   :  { %v4280_v4 = vpack.i.bf16 %v1066_v3, %v1065_v29  ;;  %4109 = vmatprep.subr.bf16.mxu0 %v4712_v1  ;;  %v4353_v5 = vld [vmem:[#allocation10 + $0x54] ss:$8 sps:$4 sm:$0xff]  }
 0x718   :  { %1593 = vmatprep.subr.bf16.mxu1 %v4353_v5  ;;  %v1502_v5 = vrot.slane %v1497_v7, %v4837_v31 }
 0x719   :  { %4281 = vrot.lane.b32.xlu1 %v4280_v4, %s4701_s18 }
 0x71a   :  { %4110 = vmatpush3.bf16.msra.mxu0 %v4342_v8  ;;  %v4351_v8 = vld [vmem:[#allocation10 + $0x50] ss:$8 sps:$4 sm:$0xff]  }
 0x71b   :  { %4111 = vmatprep.subr.bf16.mxu0 %v4712_v1  ;;  %1594 = vmatpush1.bf16.msra.mxu1 %v4351_v8 }
 0x71e   :  { %4112 = vmatpush3.bf16.msra.mxu0 %v4343_v9  ;;  %v4354_v9 = vld [vmem:[#allocation10 + $0x40] ss:$8 sps:$4 sm:$0xff]  }
 0x71f   :  { %4113 = vmatprep.subr.bf16.mxu0 %v4712_v1 }
 0x722   :  { %4114 = vmatpush3.bf16.msra.mxu0 %v4344_v17  ;;  %v4365_v17 = vld [vmem:[#allocation10 + $0x14] ss:$8 sps:$4 sm:$0xff]  }
 0x752   :  { %v1183_v10 = vpop.xlane.xlu0 %1182 }
 0x753   :  { %4489 = vrcp.f32 %v1183_v10  ;;  %v4356_v10 = vld [vmem:[#allocation10 + $0x44] ss:$8 sps:$4 sm:$0xff]  }
 0x754   :  { %1595 = vmatprep.subr.bf16.mxu1 %v4356_v10 }
 0x755   :  { %1596 = vmatpush1.bf16.msra.mxu1 %v4354_v9 }
 0x756   :  { %v518_v34 = vpop.xlane.xlu0 %517 }
 0x760   :  { %v4490_v19 = vpop.eup %4489 }
 0x76a   :  { %v1186_v11 = vpop.xlane.xlu1 %1185 }
 0x76b   :  { %4491 = vrcp.f32 %v1186_v11  ;;  %v4359_v11 = vld [vmem:[#allocation10 + $0x34] ss:$8 sps:$4 sm:$0xff]  }
 0x76c   :  { %4493 = vrcp.f32 %v518_v34  ;;  %1597 = vmatprep.subr.bf16.mxu1 %v4359_v11  ;;  %v4376_v34 = vld [vmem:[#allocation11 + $0x20] sm:$0xff]  }
 0x76e   :  { %v521_v35 = vpop.xlane.xlu1 %520 }
 0x76f   :  { %4495 = vrcp.f32 %v521_v35  ;;  %v4377_v35 = vld [vmem:[#allocation11 + $0x58] sm:$0xff]  }
 0x778   :  { %v4492_v20 = vpop.eup %4491 }
 0x779   :  { %v4494_v38 = vpop.eup %4493 }
 0x77a   :  { %v619_v44 = vmul.f32 %v4494_v38, %v4918_v40 }
 0x77c   :  { %v4496_v56 = vpop.eup %4495 }
 0x77d   :  { %v620_v47 = vmul.f32 %v4496_v56, %v4920_v45  ;;  %v3682_v45 = vld [vmem:[%s5366_s4] ss:$0 sm:$0xff] }
 0x787   :  { %v4277_v37 = vpop.permute.xlu0 %4276 }
 0x788   :  { %v4279_v63 = vunpack.i.h.bf16 %v4277_v37  ;;  %v4278_v42 = vunpack.i.l.bf16 %v4277_v37  ;;  %v4378_v37 = vld [vmem:[#allocation11 + $0x18] sm:$0xff]  }
 0x78a   :  { %v1314_v50 = vsel %vm409_vm1, %v620_v47, %v4279_v63  ;;  %v1313_v41 = vsel %vm409_vm1, %v619_v44, %v4278_v42 }
 0x78b   :  { %v4282_v39 = vpop.permute.xlu1 %4281 }
 0x78c   :  { %v4284_v43 = vunpack.i.h.bf16 %v4282_v39  ;;  %v4283_v15 = vunpack.i.l.bf16 %v4282_v39 }
 0x78e   :  { %v1316_v53 = vsel %vm1315_vm4, %v1313_v41, %v4283_v15  ;;  %v1317_v54 = vsel %vm1315_vm4, %v1314_v50, %v4284_v43 }
 0x796   :  { %v1233_v13 = vpop.f32.mrf.mxu0 }
 0x797   :  { %v1287_v23 = vmul.f32 %v4490_v19, %v1233_v13  ;;  %v4357_v13 = vld [vmem:[#allocation10 + $0x30] ss:$8 sps:$4 sm:$0xff]   ;;  %v4368_v19 = vld [vmem:[#allocation10 + $0x4] ss:$8 sps:$4 sm:$0xff]  }
 0x798   :  { %v4091_v14 = vpop.f32.mrf.mxu0  ;;  %1598 = vmatpush1.bf16.msra.mxu1 %v4357_v13 }
 0x799   :  { %v4362_v14 = vld [vmem:[#allocation10 + $0x24] ss:$8 sps:$4 sm:$0xff]  }
 0x79a   :  { %v1236_v16 = vpop.f32.mrf.mxu0  ;;  %1599 = vmatprep.subr.bf16.mxu1 %v4362_v14 }
 0x79b   :  { %v4360_v16 = vld [vmem:[#allocation10 + $0x20] ss:$8 sps:$4 sm:$0xff]  }
 0x79c   :  { %v4092_v18 = vpop.f32.mrf.mxu0  ;;  %1600 = vmatpush1.bf16.msra.mxu1 %v4360_v16 }
 0x79d   :  { %v4363_v18 = vld [vmem:[#allocation10 + $0x10] ss:$8 sps:$4 sm:$0xff]   ;;  %1601 = vmatprep.subr.bf16.mxu1 %v4365_v17 }
 0x7a0   :  { %1602 = vmatpush1.bf16.msra.mxu1 %v4363_v18 }
 0x7a1   :  { %1603 = vmatprep.subr.bf16.mxu1 %v4368_v19 }
 0x7a2   :  { %v1281_v22 = vpop.f32.mrf.mxu1 }
 0x7a3   :  { %v1288_v26 = vmul.f32 %v4492_v20, %v1281_v22  ;;  %v4366_v20 = vld [vmem:[#allocation10] ss:$8 sps:$4 sm:$0xff]   ;;  %v4369_v22 = vld [vmem:[#allocation11 + $0x78] sm:$0xff]  }
 0x7a4   :  { %v4097_v27 = vpop.f32.mrf.mxu1  ;;  %1604 = vmatpush1.bf16.msra.mxu1 %v4366_v20  ;;  %3889 = vmatprep.subr.bf16.mxu0 %v4369_v22 }
 0x7a5   :  { %v4285_v28 = vpack.i.bf16 %v1288_v26, %v1287_v23  ;;  %v4370_v23 = vld [vmem:[#allocation11 + $0x38] sm:$0xff]   ;;  %v4371_v26 = vld [vmem:[#allocation11 + $0x70] sm:$0xff]  }
 0x7a6   :  { %v1284_v33 = vpop.f32.mrf.mxu1  ;;  %v4372_v27 = vld [vmem:[#allocation11 + $0x30] sm:$0xff]  }
 0x7a7   :  { %4286 = vrot.lane.b32.xlu1 %v4285_v28, %s4714_s5  ;;  %v4373_v28 = vld [vmem:[#allocation11 + $0x68] sm:$0xff]  }
 0x7a8   :  { %v4098_v24 = vpop.f32.mrf.mxu1  ;;  %v4374_v33 = vld [vmem:[#allocation11 + $0x28] sm:$0xff]  }
 0x7a9   :  { %v4375_v24 = vld [vmem:[#allocation11 + $0x60] sm:$0xff]  }
 0x819   :  { %v4287_v49 = vpop.permute.xlu1 %4286 }
 0x81a   :  { %v4289_v52 = vunpack.i.h.bf16 %v4287_v49  ;;  %v4288_v25 = vunpack.i.l.bf16 %v4287_v49 }
 0x81c   :  { %v1320_v12 = vsel %vm1318_vm5, %v1317_v54, %v4289_v52  ;;  %v1319_v55 = vsel %vm1318_vm5, %v1316_v53, %v4288_v25 }
 0x81d   :  { %v1321_v40 = vpack.c.bf16 %v1320_v12, %v1319_v55  ;;  %v3691_v55 = vld [vmem:[%s5371_s9] ss:$0 sm:$0xff] }
 0x81f   :  { %4116 = vmatmul.mubr.bf16.vlgmr.msra.gmra.mxu0 %v1321_v40 }
 0x820   :  { %3890 = vmatpush3.bf16.msra.mxu0 %v4370_v23 }
 0x821   :  { %3891 = vmatprep.subr.bf16.mxu0 %v4371_v26 }
 0x824   :  { %3892 = vmatpush3.bf16.msra.mxu0 %v4372_v27  ;;  %v3709_v27 = vld [vmem:[%s5370_s8] ss:$0 sm:$0xff] }
 0x825   :  { %3893 = vmatprep.subr.bf16.mxu0 %v4373_v28 }
 0x828   :  { %3894 = vmatpush3.bf16.msra.mxu0 %v4374_v33 }
 0x829   :  { %3895 = vmatprep.subr.bf16.mxu0 %v4375_v24 }
 0x82c   :  { %3896 = vmatpush3.bf16.msra.mxu0 %v4376_v34 }
 0x82d   :  { %3897 = vmatprep.subr.bf16.mxu0 %v4377_v35 }
 0x830   :  { %3898 = vmatpush3.bf16.msra.mxu0 %v4378_v37 }
 0x8df   :  { %v1427_v57 = vpop.f32.mrf.mxu0 }
 0x8e0   :  { %v1428_v46 = vadd.f32 %v3682_v45, %v1427_v57 }
 0x8e1   :  { %v4117_v48 = vpop.f32.mrf.mxu0 }
 0x8e2   :  { %v5052_v59 = vadd.f32 %v4545_v58, %v1428_v46  ;;  %v3692_v48 = vld [vmem:[%s5372_s10] ss:$0 sm:$0xff] }
 0x8e3   :  { %v1430_v60 = vpop.f32.mrf.mxu0 }
 0x8e4   :  { %v1431_v61 = vadd.f32 %v3682_v45, %v1430_v60  ;;  %1438 = vadd.xlane.f32.xlu0 %v5052_v59  ;;  %v1444_v3 = vmul.f32 %v5052_v59, %v5052_v59 }
 0x8e5   :  { %v4118_v62 = vpop.f32.mrf.mxu0 }
 0x8e6   :  { %v5055_v29 = vadd.f32 %v4546_v2, %v1431_v61  ;;  %v4380_v2 = vld [vmem:[#allocation11 + $0x10] sm:$0xff]  }
 0x8e8   :  { %1446 = vadd.xlane.f32.xlu0 %v1444_v3  ;;  %1440 = vadd.xlane.f32.xlu1 %v5055_v29  ;;  %v1445_v4 = vmul.f32 %v5055_v29, %v5055_v29  ;;  %v4381_v3 = vld [vmem:[#allocation11 + $0x48] sm:$0xff]  }
 0x8ec   :  { %1448 = vadd.xlane.f32.xlu0 %v1445_v4  ;;  %v4383_v4 = vld [vmem:[#allocation11 + $0x40] sm:$0xff]  }
 0x96d   :  { %v1439_v38 = vpop.xlane.xlu0 %1438 }
 0x96e   :  { %v1442_v39 = vmul.f32 0.0078125, %v1439_v38 }
 0x970   :  { %v1452_v42 = vmul.f32 %v1442_v39, %v1442_v39  ;;  %v1456_v53 = vsub.f32 %v5052_v59, %v1442_v39  ;;  %v4379_v59 = vld [vmem:[#allocation11 + $0x50] sm:$0xff]  }
 0x971   :  { %v1447_v56 = vpop.xlane.xlu0 %1446  ;;  %v1441_v63 = vpop.xlane.xlu1 %1440  ;;  %3899 = vmatprep.subr.bf16.mxu0 %v4379_v59  ;;  %v4413_v59 = vld [vmem:[#allocation5 + $0xc0] ss:$12 sps:$4 sm:$0xff]  }
 0x972   :  { %v1450_v43 = vmul.f32 0.0078125, %v1447_v56  ;;  %v1443_v15 = vmul.f32 0.0078125, %v1441_v63  ;;  %3900 = vmatpush3.bf16.msra.mxu0 %v4380_v2  ;;  %v4416_v2 = vld [vmem:[#allocation5 + $0xc8] ss:$12 sps:$4 sm:$0xff]  }
 0x973   :  { %3901 = vmatprep.subr.bf16.mxu0 %v4381_v3 }
 0x974   :  { %v1454_v44 = vsub.f32 %v1450_v43, %v1452_v42  ;;  %v1453_v50 = vmul.f32 %v1443_v15, %v1443_v15  ;;  %v1457_v40 = vsub.f32 %v5055_v29, %v1443_v15  ;;  %v4382_v29 = vld [vmem:[#allocation11 + $0x8] sm:$0xff]  }
 0x975   :  { %v1449_v47 = vpop.xlane.xlu0 %1448  ;;  %v4387_v43 = vld [vmem:[#allocation5 + $0x16c] ss:$12 sps:$4 sm:$0xff]   ;;  %v4385_v15 = vld [vmem:[#allocation5 + $0x168] ss:$12 sps:$4 sm:$0xff]  }
 0x976   :  { %v1458_v49 = vadd.f32 1e-05, %v1454_v44  ;;  %v1451_v41 = vmul.f32 0.0078125, %v1449_v47  ;;  %3902 = vmatpush3.bf16.msra.mxu0 %v4382_v29  ;;  %v4388_v44 = vld [vmem:[#allocation5 + $0x170] ss:$12 sps:$4 sm:$0xff]   ;;  %2040 = vmatprep.subr.bf16.mxu1 %v4387_v43 }
 0x977   :  { %3903 = vmatprep.subr.bf16.mxu0 %v4383_v4  ;;  %v4391_v47 = vld [vmem:[#allocation5 + $0x154] ss:$12 sps:$4 sm:$0xff]  }
 0x978   :  { %4497 = vrsqrt.f32 %v1458_v49  ;;  %v1455_v52 = vsub.f32 %v1451_v41, %v1453_v50  ;;  %v4389_v49 = vld [vmem:[#allocation5 + $0x150] ss:$12 sps:$4 sm:$0xff]   ;;  %v4392_v50 = vld [vmem:[#allocation5 + $0x158] ss:$12 sps:$4 sm:$0xff]  }
 0x979   :  { %v4395_v41 = vld [vmem:[#allocation5 + $0x13c] ss:$12 sps:$4 sm:$0xff]  }
 0x97a   :  { %v1459_v25 = vadd.f32 1e-05, %v1455_v52  ;;  %3904 = vmatpush3.bf16.msra.mxu0 %v4384_v6  ;;  %v4393_v52 = vld [vmem:[#allocation5 + $0x138] ss:$12 sps:$4 sm:$0xff]  }
 0x97b   :  { %4119 = vmatprep.subr.bf16.mxu0 %v4712_v1 }
 0x97c   :  { %4499 = vrsqrt.f32 %v1459_v25  ;;  %v4396_v25 = vld [vmem:[#allocation5 + $0x140] ss:$12 sps:$4 sm:$0xff]  }
 0x985   :  { %v4498_v54 = vpop.eup %4497 }
 0x986   :  { %v1462_v12 = vmul.f32 %v4498_v54, %v1456_v53  ;;  %v4397_v53 = vld [vmem:[#allocation5 + $0x120] ss:$12 sps:$4 sm:$0xff]   ;;  %v4399_v54 = vld [vmem:[#allocation5 + $0x124] ss:$12 sps:$4 sm:$0xff]  }
 0x988   :  { %v1470_v46 = vmul.f32 %v3691_v55, %v1462_v12  ;;  %v4400_v12 = vld [vmem:[#allocation5 + $0x128] ss:$12 sps:$4 sm:$0xff]  }
 0x989   :  { %v4500_v45 = vpop.eup %4499 }
 0x98a   :  { %v1463_v57 = vmul.f32 %v4500_v45, %v1457_v40  ;;  %v1478_v60 = vadd.f32 %v3692_v48, %v1470_v46  ;;  %v4401_v40 = vld [vmem:[#allocation5 + $0x108] ss:$12 sps:$4 sm:$0xff]   ;;  %v4404_v45 = vld [vmem:[#allocation5 + $0x110] ss:$12 sps:$4 sm:$0xff]  }
 0x98b   :  { %v4405_v46 = vld [vmem:[#allocation5 + $0xf0] ss:$12 sps:$4 sm:$0xff]  }
 0x98c   :  { %v1471_v58 = vmul.f32 %v3691_v55, %v1463_v57  ;;  %v4403_v55 = vld [vmem:[#allocation5 + $0x10c] ss:$12 sps:$4 sm:$0xff]   ;;  %v4407_v57 = vld [vmem:[#allocation5 + $0xf4] ss:$12 sps:$4 sm:$0xff]  }
 0x98e   :  { %v1479_v61 = vadd.f32 %v3692_v48, %v1471_v58  ;;  %v4408_v48 = vld [vmem:[#allocation5 + $0xf8] ss:$12 sps:$4 sm:$0xff]   ;;  %v4411_v58 = vld [vmem:[#allocation5 + $0xdc] ss:$12 sps:$4 sm:$0xff]  }
 0x990   :  { %v1480_v62 = vpack.c.bf16 %v1479_v61, %v1478_v60 }
 0x992   :  { %1622 = vmatmul.mubr.bf16.vlgmr.msra.gmra.mxu1 %v1480_v62  ;;  %v4415_v62 = vld [vmem:[#allocation5 + $0xc4] ss:$12 sps:$4 sm:$0xff]  }
 0x993   :  { %2072 = vmatprep.mubr.bf16.mxu1 %v4711_v0  ;;  %2041 = vmatpush1.bf16.msra.mxu1 %v4385_v15 }
 0x994   :  { %2042 = vmatprep.subr.bf16.mxu1 %v4391_v47 }
 0x997   :  { %2043 = vmatpush1.bf16.msra.mxu1 %v4389_v49 }
 0x998   :  { %2044 = vmatprep.subr.bf16.mxu1 %v4395_v41 }
 0x99b   :  { %2045 = vmatpush1.bf16.msra.mxu1 %v4393_v52 }
 0x99c   :  { %2046 = vmatprep.subr.bf16.mxu1 %v4399_v54 }
 0x99f   :  { %2047 = vmatpush1.bf16.msra.mxu1 %v4397_v53 }
 0x9a0   :  { %2048 = vmatprep.subr.bf16.mxu1 %v4403_v55 }
 0x9a3   :  { %2049 = vmatpush1.bf16.msra.mxu1 %v4401_v40 }
 0x9a4   :  { %2050 = vmatprep.subr.bf16.mxu1 %v4407_v57 }
 0x9a7   :  { %2051 = vmatpush1.bf16.msra.mxu1 %v4405_v46 }
 0x9a8   :  { %2052 = vmatprep.subr.bf16.mxu1 %v4411_v58 }
 0xa52   :  { %v1623_v21 = vpop.f32.mrf.mxu1 }
 0xa53   :  { %v1624_v13 = vadd.f32 %v1623_v21, %v1502_v5 }
 0xa54   :  { %v1625_v8 = vpop.f32.mrf.mxu1 }
 0xa55   :  { %v1626_v10 = vadd.f32 %v1625_v8, %v1506_v36  ;;  %v1632_v20 = vmax.f32 %v1624_v13, 0.0 }
 0xa56   :  { %v1627_v9 = vpop.f32.mrf.mxu1 }
 0xa57   :  { %v1628_v11 = vadd.f32 %v1627_v9, %v1502_v5  ;;  %v1633_v18 = vmax.f32 %v1626_v10, 0.0 }
 0xa58   :  { %v1629_v14 = vpop.f32.mrf.mxu1 }
 0xa59   :  { %v1630_v16 = vadd.f32 %v1629_v14, %v1506_v36  ;;  %v1634_v17 = vmax.f32 %v1628_v11, 0.0 }
 0xa5b   :  { %v1635_v19 = vmax.f32 %v1630_v16, 0.0  ;;  %v1636_v23 = vpack.c.bf16 %v1634_v17, %v1632_v20 }
 0xa5d   :  { %v1637_v22 = vpack.c.bf16 %v1635_v19, %v1633_v18  ;;  %v3726_v19 = vld [vmem:[%s5373_s11] ss:$0 sm:$0xff] }
 0xa5f   :  { %1805 = vmatprep.mubr.bf16.mxu0 %v1637_v22 }
 0xa60   :  { %1806 = vmatmul.mubr.bf16.vlgmr.msra.gmra.mxu0 %v1636_v23 }
 0xa61   :  { %4135 = vmatprep.mubr.msk.bf16.mxu0 %vm4713_vm0, %v4712_v1  ;;  %4120 = vmatpush3.bf16.msra.mxu0 %v4388_v44 }
 0xa62   :  { %4121 = vmatprep.subr.bf16.mxu0 %v4712_v1 }
 0xa65   :  { %4122 = vmatpush3.bf16.msra.mxu0 %v4392_v50 }
 0xa66   :  { %4123 = vmatprep.subr.bf16.mxu0 %v4712_v1 }
 0xa69   :  { %4124 = vmatpush3.bf16.msra.mxu0 %v4396_v25 }
 0xa6a   :  { %4125 = vmatprep.subr.bf16.mxu0 %v4712_v1 }
 0xa6d   :  { %4126 = vmatpush3.bf16.msra.mxu0 %v4400_v12 }
 0xa6e   :  { %4127 = vmatprep.subr.bf16.mxu0 %v4712_v1 }
 0xa71   :  { %4128 = vmatpush3.bf16.msra.mxu0 %v4404_v45 }
 0xa72   :  { %4129 = vmatprep.subr.bf16.mxu0 %v4712_v1 }
 0xa75   :  { %4130 = vmatpush3.bf16.msra.mxu0 %v4408_v48 }
 0xa76   :  { %4131 = vmatprep.subr.bf16.mxu0 %v4712_v1 }
 0xb20   :  { %v3905_v26 = vpop.f32.mrf.mxu0 }
 0xb22   :  { %v3906_v28 = vpop.f32.mrf.mxu0 }
 0xb23   :  { %v3907_v33 = vadd.f32 %v3906_v28, %v3905_v26 }
 0xb24   :  { %v3908_v24 = vpop.f32.mrf.mxu0 }
 0xb25   :  { %v1808_v34 = vadd.f32 %v3907_v33, %v3709_v27 }
 0xb26   :  { %v3909_v35 = vpop.f32.mrf.mxu0 }
 0xb27   :  { %v3910_v37 = vadd.f32 %v3909_v35, %v3908_v24  ;;  %v5082_v38 = vadd.f32 %v1808_v34, %v1478_v60  ;;  %v4409_v60 = vld [vmem:[#allocation5 + $0xd8] ss:$12 sps:$4 sm:$0xff]  }
 0xb28   :  { %2053 = vmatpush1.bf16.msra.mxu1 %v4409_v60  ;;  %v1895_v35 = vld [vmem:[#allocation7 + $0x3] sm:$0x7] }
 0xb29   :  { %v1811_v39 = vadd.f32 %v3910_v37, %v3709_v27  ;;  %1818 = vadd.xlane.f32.xlu1 %v5082_v38  ;;  %v1824_v63 = vmul.f32 %v5082_v38, %v5082_v38  ;;  %2054 = vmatprep.subr.bf16.mxu1 %v4415_v62  ;;  %v3727_v27 = vld [vmem:[%s5374_s12] ss:$0 sm:$0xff]  ;;  %v1900_v37 = vrot.slane %v1895_v35, %v4837_v31 }
 0xb2a   :  { %v1908_v15 = vrot.slane %v1895_v35, %v175_v51 }
 0xb2b   :  { %v5085_v56 = vadd.f32 %v1811_v39, %v1479_v61  ;;  %v4412_v61 = vld [vmem:[#allocation5 + $0xe0] ss:$12 sps:$4 sm:$0xff]  }
 0xb2c   :  { %4132 = vmatpush3.bf16.msra.mxu0 %v4412_v61  ;;  %2055 = vmatpush1.bf16.msra.mxu1 %v4413_v59 }
 0xb2d   :  { %1820 = vadd.xlane.f32.xlu0 %v5085_v56  ;;  %1826 = vadd.xlane.f32.xlu1 %v1824_v63  ;;  %v1825_v42 = vmul.f32 %v5085_v56, %v5085_v56 }
 0xb2e   :  { %4133 = vmatprep.subr.bf16.mxu0 %v4712_v1  ;;  %4139 = vmatprep.subr.bf16.mxu1 %v4712_v1 }
 0xb30   :  { %4134 = vmatpush3.bf16.msra.mxu0 %v4416_v2 }
 0xb31   :  { %1828 = vadd.xlane.f32.xlu0 %v1825_v42  ;;  %4163 = vmatprep.subr.bf16.mxu0 %v4712_v1 }
 0xbb2   :  { %v1819_v3 = vpop.xlane.xlu1 %1818 }
 0xbb3   :  { %v1822_v29 = vmul.f32 0.0078125, %v1819_v3 }
 0xbb5   :  { %v1832_v7 = vmul.f32 %v1822_v29, %v1822_v29  ;;  %v1836_v16 = vsub.f32 %v5082_v38, %v1822_v29  ;;  %v1904_v38 = vrot.slane %v1895_v35, %v4840_v32 }
 0xbb6   :  { %v1821_v4 = vpop.xlane.xlu0 %1820  ;;  %v1827_v6 = vpop.xlane.xlu1 %1826 }
 0xbb7   :  { %v1823_v21 = vmul.f32 0.0078125, %v1821_v4  ;;  %v1830_v36 = vmul.f32 0.0078125, %v1827_v6 }
 0xbb9   :  { %v1834_v5 = vsub.f32 %v1830_v36, %v1832_v7  ;;  %v1833_v9 = vmul.f32 %v1823_v21, %v1823_v21  ;;  %v1837_v20 = vsub.f32 %v5085_v56, %v1823_v21 }
 0xbba   :  { %v1829_v8 = vpop.xlane.xlu0 %1828 }
 0xbbb   :  { %v1838_v10 = vadd.f32 1e-05, %v1834_v5  ;;  %v1831_v11 = vmul.f32 0.0078125, %v1829_v8 }
 0xbbd   :  { %4501 = vrsqrt.f32 %v1838_v10  ;;  %v1835_v13 = vsub.f32 %v1831_v11, %v1833_v9 }
 0xbbf   :  { %v1839_v14 = vadd.f32 1e-05, %v1835_v13 }
 0xbc1   :  { %4503 = vrsqrt.f32 %v1839_v14 }
 0xbca   :  { %v4502_v17 = vpop.eup %4501 }
 0xbcb   :  { %v1842_v18 = vmul.f32 %v4502_v17, %v1836_v16 }
 0xbcd   :  { %v1850_v26 = vmul.f32 %v3726_v19, %v1842_v18 }
 0xbce   :  { %v4504_v22 = vpop.eup %4503 }
 0xbcf   :  { %v1843_v23 = vmul.f32 %v4504_v22, %v1837_v20  ;;  %v5109_v33 = vadd.f32 %v3727_v27, %v1850_v26 }
 0xbd1   :  { %v1851_v28 = vmul.f32 %v3726_v19, %v1843_v23 }
 0xbd3   :  { %v5111_v24 = vadd.f32 %v3727_v27, %v1851_v28 }
 0xbd5   :  { %v1860_v34 = vpack.c.bf16 %v5111_v24, %v5109_v33 }
 0xbd7   :  { %2073 = vmatmul.mubr.bf16.vlgmr.msra.gmra.mxu1 %v1860_v34  ;;  %4136 = vmatmul.mubr.bf16.vlgmr.msra.gmra.mxu0 %v1860_v34 }
 0xbd8   :  { %4141 = vmatprep.mubr.msk.bf16.mxu1 %vm4713_vm0, %v4712_v1  ;;  %4165 = vmatprep.mubr.msk.bf16.mxu0 %vm4713_vm0, %v4712_v1 }
 0xc97   :  { %v2074_v39 = vpop.f32.mrf.mxu1  ;;  %v2117_v56 = vpop.f32.mrf.mxu0 }
 0xc98   :  { %v2075_v43 = vadd.f32 %v2074_v39, %v1900_v37  ;;  %v2118_v51 = vadd.f32 %v2117_v56, %v1908_v15 }
 0xc99   :  { %v2076_v63 = vpop.f32.mrf.mxu1  ;;  %v4137_v42 = vpop.f32.mrf.mxu0 }
 0xc9a   :  { %v2077_v44 = vadd.f32 %v2076_v63, %v1904_v38  ;;  %v5137_v57 = vpack.c.bf16 %v2118_v51, %v2118_v51  ;;  %v5150_v6 = vpack.c.bf16 %v2075_v43, %v2075_v43 }
 0xc9b   :  { %v2078_v47 = vpop.f32.mrf.mxu1  ;;  %v2120_v49 = vpop.f32.mrf.mxu0 }
 0xc9c   :  { %v5123_v50 = vpack.c.bf16 %v2077_v44, %v2075_v43  ;;  %v2121_v41 = vadd.f32 %v2120_v49, %v1908_v15  ;;  %v2079_v53 = vadd.f32 %v2078_v47, %v1900_v37  ;;  %v2260_v46 = vsel %vm529_vm2, %v5137_v57, 0 }
 0xc9d   :  { %v2080_v52 = vpop.f32.mrf.mxu1  ;;  %v4138_v25 = vpop.f32.mrf.mxu0 }
 0xc9e   :  { %v2081_v54 = vadd.f32 %v2080_v52, %v1904_v38  ;;  %v2140_v12 = vrot.slane %v5123_v50, 4  ;;  %v5154_v7 = vpack.c.bf16 %v2079_v53, %v2079_v53  ;;  %v5158_v21 = vpack.c.bf16 %v2121_v41, %v2121_v41 }
 0xca0   :  { %v5126_v55 = vpack.c.bf16 %v2081_v54, %v2079_v53  ;;  %v2145_v40 = vsel %vm409_vm1, %v2140_v12, 0  ;;  %v2306_v26 = vsel %vm529_vm2, %v5158_v21, 0 }
 0xca1   :  { %4140 = vmatpush3.bf16.xpose.msra.mxu1 %v2145_v40 }
 0xca2   :  { %4145 = vmatprep.subr.bf16.mxu1 %v4712_v1  ;;  %v2187_v30 = vrot.slane %v5126_v55, 4 }
 0xca4   :  { %v2192_v45 = vsel %vm409_vm1, %v2187_v30, 0 }
 0xca8   :  { %4142 = vmatmul.mubr.msk.bf16.vlgmr.msra.gmra.mxu1 %vm409_vm1, %v5123_v50 }
 0xca9   :  { %4146 = vmatpush3.bf16.xpose.msra.mxu1 %v2192_v45  ;;  %4147 = vmatprep.mubr.msk.bf16.mxu1 %vm4713_vm0, %v4712_v1 }
 0xcaa   :  { %4151 = vmatprep.subr.bf16.mxu1 %v4712_v1 }
 0xcb0   :  { %4148 = vmatmul.mubr.msk.bf16.vlgmr.msra.gmra.mxu1 %vm409_vm1, %v5126_v55 }
 0xcb1   :  { %4152 = vmatpush3.bf16.msra.mxu1 %v2260_v46  ;;  %4153 = vmatprep.mubr.msk.bf16.mxu1 %vm4713_vm0, %v4712_v1 }
 0xcb2   :  { %4157 = vmatprep.subr.bf16.mxu1 %v4712_v1 }
 0xd68   :  { %v2181_v48 = vpop.f32.mrf.mxu1 }
 0xd69   :  { %v2234_v58 = vsel %vm503_vm3, %v2181_v48, -inf }
 0xd6a   :  { %2235 = vmax.xlane.f32.xlu1 %v2234_v58  ;;  %v4143_v60 = vpop.f32.mrf.mxu1 }
 0xd6c   :  { %v2184_v61 = vpop.f32.mrf.mxu1 }
 0xd6e   :  { %v4144_v62 = vpop.f32.mrf.mxu1 }
 0xd70   :  { %v2228_v59 = vpop.f32.mrf.mxu1 }
 0xd71   :  { %v2237_v2 = vsel %vm503_vm3, %v2228_v59, -inf }
 0xd72   :  { %2238 = vmax.xlane.f32.xlu0 %v2237_v2  ;;  %v4149_v3 = vpop.f32.mrf.mxu1 }
 0xd74   :  { %v2231_v29 = vpop.f32.mrf.mxu1 }
 0xd76   :  { %v4150_v4 = vpop.f32.mrf.mxu1 }
 0xd7b   :  { %2350 = vrot.lane.b32.xlu1 %v5123_v50, %s4714_s5 }
 0xd7f   :  { %2354 = vrot.lane.b32.xlu1 %v5150_v6, %s4714_s5 }
 0xd83   :  { %2406 = vrot.lane.b32.xlu1 %v5154_v7, %s4714_s5 }
 0xd87   :  { %2524 = vrot.lane.b32.xlu1 %v5158_v21, %s4714_s5 }
 0xd88   :  { %2402 = vrot.lane.b32.xlu0 %v5126_v55, %s4714_s5 }
 0xd8c   :  { %2476 = vrot.lane.b32.xlu0 %v5137_v57, %s4714_s5 }
 0xdf3   :  { %v2236_v36 = vpop.xlane.xlu1 %2235 }
 0xdf4   :  { %v2240_v5 = vsub.f32 %v2181_v48, %v2236_v36 }
 0xdf6   :  { %v2242_v8 = vmul.f32 1.442695, %v2240_v5 }
 0xdf7   :  { %v2351_v9 = vpop.permute.xlu1 %2350 }
 0xdf8   :  { %4505 = vpow2.f32 %v2242_v8  ;;  %v2352_v10 = vrot.slane %v2351_v9, 4 }
 0xdfa   :  { %v2360_v11 = vsel %vm409_vm1, %v2352_v10, 0 }
 0xdfb   :  { %4164 = vmatpush3.bf16.xpose.msra.mxu0 %v2360_v11  ;;  %v2239_v13 = vpop.xlane.xlu0 %2238  ;;  %v2355_v18 = vpop.permute.xlu1 %2354 }
 0xdfc   :  { %v2241_v14 = vsub.f32 %v2228_v59, %v2239_v13  ;;  %4175 = vmatprep.subr.bf16.mxu0 %v4712_v1 }
 0xdfe   :  { %v2244_v16 = vmul.f32 1.442695, %v2241_v14 }
 0xdff   :  { %v2403_v17 = vpop.permute.xlu0 %2402  ;;  %v2407_v35 = vpop.permute.xlu1 %2406 }
 0xe00   :  { %4507 = vpow2.f32 %v2244_v16  ;;  %v2404_v27 = vrot.slane %v2403_v17, 4 }
 0xe02   :  { %4166 = vmatmul.mubr.msk.bf16.vlgmr.msra.gmra.mxu0 %vm409_vm1, %v2355_v18  ;;  %v2412_v37 = vsel %vm409_vm1, %v2404_v27, 0 }
 0xe03   :  { %v2477_v19 = vpop.permute.xlu0 %2476  ;;  %4177 = vmatprep.mubr.msk.bf16.mxu0 %vm4713_vm0, %v4712_v1  ;;  %v2525_v38 = vpop.permute.xlu1 %2524 }
 0xe04   :  { %v2482_v20 = vsel %vm529_vm2, %v2477_v19, 0  ;;  %v2530_v39 = vsel %vm529_vm2, %v2525_v38, 0 }
 0xe05   :  { %v5172_v22 = vpop.eup %4505  ;;  %4176 = vmatpush3.bf16.msra.mxu0 %v2482_v20 }
 0xe06   :  { %v2254_v23 = vpack.c.bf16 %v5172_v22, %v5172_v22  ;;  %4187 = vmatprep.subr.bf16.mxu0 %v4712_v1 }
 0xe08   :  { %4154 = vmatmul.mubr.msk.bf16.vlgmr.msra.gmra.mxu1 %vm503_vm3, %v2254_v23 }
 0xe09   :  { %4158 = vmatpush3.bf16.msra.mxu1 %v2306_v26  ;;  %4159 = vmatprep.mubr.msk.bf16.mxu1 %vm4713_vm0, %v4712_v1 }
 0xe0a   :  { %4169 = vmatprep.subr.bf16.mxu1 %v4712_v1 }
 0xe0d   :  { %v5183_v28 = vpop.eup %4507 }
 0xe0e   :  { %v2255_v34 = vpack.c.bf16 %v5183_v28, %v5183_v28 }
 0xe10   :  { %4160 = vmatmul.mubr.msk.bf16.vlgmr.msra.gmra.mxu1 %vm503_vm3, %v2255_v34 }
 0xe11   :  { %4170 = vmatpush3.bf16.xpose.msra.mxu1 %v2412_v37  ;;  %4171 = vmatprep.mubr.msk.bf16.mxu1 %vm4713_vm0, %v4712_v1 }
 0xe12   :  { %4181 = vmatprep.subr.bf16.mxu1 %v4712_v1 }
 0xe18   :  { %4172 = vmatmul.mubr.msk.bf16.vlgmr.msra.gmra.mxu1 %vm409_vm1, %v2407_v35 }
 0xe19   :  { %4182 = vmatpush3.bf16.msra.mxu1 %v2530_v39  ;;  %4183 = vmatprep.mubr.msk.bf16.mxu1 %vm4713_vm0, %v4712_v1 }
 0xe1a   :  { %4193 = vmatprep.subr.bf16.mxu1 %v4712_v1 }
 0xec2   :  { %v2396_v56 = vpop.f32.mrf.mxu0 }
 0xec3   :  { %v2454_v63 = vsel %vm503_vm3, %v2396_v56, -inf }
 0xec4   :  { %v4167_v42 = vpop.f32.mrf.mxu0  ;;  %2455 = vmax.xlane.f32.xlu0 %v2454_v63 }
 0xec6   :  { %v2399_v43 = vpop.f32.mrf.mxu0 }
 0xec8   :  { %v5198_v15 = vpop.f32.mrf.mxu1  ;;  %v4168_v44 = vpop.f32.mrf.mxu0 }
 0xeca   :  { %v4155_v47 = vpop.f32.mrf.mxu1 }
 0xecc   :  { %v2299_v49 = vpop.f32.mrf.mxu1 }
 0xece   :  { %v4156_v41 = vpop.f32.mrf.mxu1 }
 0xed0   :  { %v5200_v52 = vpop.f32.mrf.mxu1 }
 0xed2   :  { %v4161_v25 = vpop.f32.mrf.mxu1 }
 0xed4   :  { %v2345_v53 = vpop.f32.mrf.mxu1 }
 0xed6   :  { %v4162_v54 = vpop.f32.mrf.mxu1 }
 0xed8   :  { %v2448_v12 = vpop.f32.mrf.mxu1 }
 0xed9   :  { %v2457_v40 = vsel %vm503_vm3, %v2448_v12, -inf }
 0xeda   :  { %2574 = vrot.lane.b32.xlu0 %v5123_v50, %s4701_s18  ;;  %2458 = vmax.xlane.f32.xlu1 %v2457_v40  ;;  %v4173_v30 = vpop.f32.mrf.mxu1 }
 0xedc   :  { %v2451_v51 = vpop.f32.mrf.mxu1 }
 0xede   :  { %2577 = vrot.lane.b32.xlu0 %v5150_v6, %s4701_s18  ;;  %v4174_v45 = vpop.f32.mrf.mxu1 }
 0xee2   :  { %2698 = vrot.lane.b32.xlu0 %v5137_v57, %s4701_s18 }
 0xeeb   :  { %2625 = vrot.lane.b32.xlu1 %v5126_v55, %s4701_s18 }
 0xeef   :  { %2628 = vrot.lane.b32.xlu1 %v5154_v7, %s4701_s18 }
 0xef3   :  { %2746 = vrot.lane.b32.xlu1 %v5158_v21, %s4701_s18 }
 0xf4d   :  { %v2456_v46 = vpop.xlane.xlu0 %2455 }
 0xf4e   :  { %v2460_v48 = vsub.f32 %v2396_v56, %v2456_v46 }
 0xf50   :  { %v2462_v58 = vmul.f32 1.442695, %v2460_v48 }
 0xf51   :  { %v2575_v60 = vpop.permute.xlu0 %2574 }
 0xf52   :  { %4509 = vpow2.f32 %v2462_v58  ;;  %v2576_v61 = vrot.slane %v2575_v60, 4 }
 0xf54   :  { %v2583_v3 = vsel %vm409_vm1, %v2576_v61, 0 }
 0xf55   :  { %v2578_v2 = vpop.permute.xlu0 %2577 }
 0xf59   :  { %v2699_v5 = vpop.permute.xlu0 %2698 }
 0xf5a   :  { %v2704_v8 = vsel %vm529_vm2, %v2699_v5, 0 }
 0xf5f   :  { %v5215_v62 = vpop.eup %4509 }
 0xf60   :  { %v2474_v59 = vpack.c.bf16 %v5215_v62, %v5215_v62 }
 0xf62   :  { %4178 = vmatmul.mubr.msk.bf16.vlgmr.msra.gmra.mxu0 %vm503_vm3, %v2474_v59 }
 0xf63   :  { %4188 = vmatpush3.bf16.xpose.msra.mxu0 %v2583_v3  ;;  %v2459_v29 = vpop.xlane.xlu1 %2458  ;;  %4189 = vmatprep.mubr.msk.bf16.mxu0 %vm4713_vm0, %v4712_v1 }
 0xf64   :  { %v2461_v4 = vsub.f32 %v2448_v12, %v2459_v29  ;;  %4199 = vmatprep.subr.bf16.mxu0 %v4712_v1 }
 0xf66   :  { %v2464_v36 = vmul.f32 1.442695, %v2461_v4 }
 0xf67   :  { %v2626_v9 = vpop.permute.xlu1 %2625 }
 0xf68   :  { %4511 = vpow2.f32 %v2464_v36  ;;  %v2627_v10 = vrot.slane %v2626_v9, 4 }
 0xf6a   :  { %4190 = vmatmul.mubr.msk.bf16.vlgmr.msra.gmra.mxu0 %vm409_vm1, %v2578_v2  ;;  %v2634_v16 = vsel %vm409_vm1, %v2627_v10, 0 }
 0xf6b   :  { %4200 = vmatpush3.bf16.msra.mxu0 %v2704_v8  ;;  %4201 = vmatprep.mubr.msk.bf16.mxu0 %vm4713_vm0, %v4712_v1  ;;  %v2629_v14 = vpop.permute.xlu1 %2628 }
 0xf6c   :  { %4211 = vmatprep.subr.bf16.mxu0 %v4712_v1 }
 0xf6f   :  { %v2747_v17 = vpop.permute.xlu1 %2746 }
 0xf70   :  { %v2752_v18 = vsel %vm529_vm2, %v2747_v17, 0 }
 0xf75   :  { %v5229_v11 = vpop.eup %4511 }
 0xf76   :  { %v2475_v13 = vpack.c.bf16 %v5229_v11, %v5229_v11 }
 0xf78   :  { %4184 = vmatmul.mubr.msk.bf16.vlgmr.msra.gmra.mxu1 %vm503_vm3, %v2475_v13 }
 0xf79   :  { %4194 = vmatpush3.bf16.xpose.msra.mxu1 %v2634_v16  ;;  %4195 = vmatprep.mubr.msk.bf16.mxu1 %vm4713_vm0, %v4712_v1 }
 0xf7a   :  { %4205 = vmatprep.subr.bf16.mxu1 %v4712_v1 }
 0xf80   :  { %4196 = vmatmul.mubr.msk.bf16.vlgmr.msra.gmra.mxu1 %vm409_vm1, %v2629_v14 }
 0xf81   :  { %4206 = vmatpush3.bf16.msra.mxu1 %v2752_v18  ;;  %4207 = vmatprep.mubr.msk.bf16.mxu1 %vm4713_vm0, %v4712_v1 }
 0xf82   :  { %4217 = vmatprep.subr.bf16.mxu1 %v4712_v1 }
0x1022   :  { %v5243_v19 = vpop.f32.mrf.mxu0 }
0x1024   :  { %v4179_v20 = vpop.f32.mrf.mxu0 }
0x1026   :  { %v2521_v23 = vpop.f32.mrf.mxu0 }
0x1028   :  { %v4180_v26 = vpop.f32.mrf.mxu0 }
0x102a   :  { %v2619_v27 = vpop.f32.mrf.mxu0 }
0x102b   :  { %v2676_v34 = vsel %vm503_vm3, %v2619_v27, -inf }
0x102c   :  { %2677 = vmax.xlane.f32.xlu0 %v2676_v34  ;;  %v4191_v35 = vpop.f32.mrf.mxu0  ;;  %v2466_v34 = vsel %vm503_vm3, %v5215_v62, 0.0 }
0x102e   :  { %v2622_v37 = vpop.f32.mrf.mxu0 }
0x1030   :  { %v4192_v38 = vpop.f32.mrf.mxu0 }
0x1038   :  { %v5246_v39 = vpop.f32.mrf.mxu1 }
0x103a   :  { %v4185_v56 = vpop.f32.mrf.mxu1 }
0x103c   :  { %v2569_v63 = vpop.f32.mrf.mxu1 }
0x103e   :  { %v4186_v42 = vpop.f32.mrf.mxu1 }
0x1040   :  { %v2670_v43 = vpop.f32.mrf.mxu1 }
0x1041   :  { %v2679_v44 = vsel %vm503_vm3, %v2670_v43, -inf }
0x1042   :  { %2796 = vrot.lane.b32.xlu0 %v5123_v50, %s4715_s7  ;;  %2680 = vmax.xlane.f32.xlu1 %v2679_v44  ;;  %v4197_v47 = vpop.f32.mrf.mxu1 }
0x1044   :  { %v2673_v49 = vpop.f32.mrf.mxu1 }
0x1045   :  { %v2246_v49 = vsel %vm503_vm3, %v5172_v22, 0.0 }
0x1046   :  { %2799 = vrot.lane.b32.xlu0 %v5150_v6, %s4715_s7  ;;  %v4198_v41 = vpop.f32.mrf.mxu1 }
0x1053   :  { %2847 = vrot.lane.b32.xlu1 %v5126_v55, %s4715_s7 }
0x1057   :  { %2850 = vrot.lane.b32.xlu1 %v5154_v7, %s4715_s7 }
0x10b5   :  { %v2678_v25 = vpop.xlane.xlu0 %2677 }
0x10b6   :  { %v2682_v53 = vsub.f32 %v2619_v27, %v2678_v25 }
0x10b8   :  { %v2684_v54 = vmul.f32 1.442695, %v2682_v53 }
0x10b9   :  { %v2797_v12 = vpop.permute.xlu0 %2796 }
0x10ba   :  { %4513 = vpow2.f32 %v2684_v54  ;;  %v2798_v40 = vrot.slane %v2797_v12, 4 }
0x10bc   :  { %v2805_v51 = vsel %vm409_vm1, %v2798_v40, 0 }
0x10bd   :  { %v2800_v45 = vpop.permute.xlu0 %2799 }
0x10c7   :  { %v4514_v50 = vpop.eup %4513 }
0x10c8   :  { %v2696_v30 = vpack.c.bf16 %v4514_v50, %v4514_v50  ;;  %v2688_v35 = vsel %vm503_vm3, %v4514_v50, 0.0  ;;  %v2249_v50 = vsel %vm503_vm3, %v5183_v28, 0.0 }
0x10ca   :  { %4202 = vmatmul.mubr.msk.bf16.vlgmr.msra.gmra.mxu0 %vm503_vm3, %v2696_v30 }
0x10cb   :  { %4212 = vmatpush3.bf16.xpose.msra.mxu0 %v2805_v51  ;;  %v2681_v6 = vpop.xlane.xlu1 %2680  ;;  %4213 = vmatprep.mubr.msk.bf16.mxu0 %vm4713_vm0, %v4712_v1 }
0x10cc   :  { %v2683_v55 = vsub.f32 %v2670_v43, %v2681_v6  ;;  %4223 = vmatprep.subr.bf16.mxu0 %v4712_v1 }
0x10ce   :  { %v2686_v7 = vmul.f32 1.442695, %v2683_v55 }
0x10cf   :  { %v2848_v46 = vpop.permute.xlu1 %2847 }
0x10d0   :  { %4515 = vpow2.f32 %v2686_v7  ;;  %v2849_v48 = vrot.slane %v2848_v46, 4 }
0x10d2   :  { %4214 = vmatmul.mubr.msk.bf16.vlgmr.msra.gmra.mxu0 %vm409_vm1, %v2800_v45  ;;  %v2856_v61 = vsel %vm409_vm1, %v2849_v48, 0 }
0x10d3   :  { %4225 = vmatprep.mubr.msk.bf16.mxu0 %vm4713_vm0, %v4712_v1  ;;  %v2851_v59 = vpop.permute.xlu1 %2850 }
0x10dd   :  { %v4516_v58 = vpop.eup %4515 }
0x10de   :  { %v2697_v60 = vpack.c.bf16 %v4516_v58, %v4516_v58  ;;  %v2691_v37 = vsel %vm503_vm3, %v4516_v58, 0.0 }
0x10e0   :  { %4208 = vmatmul.mubr.msk.bf16.vlgmr.msra.gmra.mxu1 %vm503_vm3, %v2697_v60 }
0x10e1   :  { %4218 = vmatpush3.bf16.xpose.msra.mxu1 %v2856_v61  ;;  %4219 = vmatprep.mubr.msk.bf16.mxu1 %vm4713_vm0, %v4712_v1 }
0x10e2   :  { %4229 = vmatprep.subr.bf16.mxu1 %v4712_v1 }
0x10e8   :  { %4220 = vmatmul.mubr.msk.bf16.vlgmr.msra.gmra.mxu1 %vm409_vm1, %v2851_v59  ;;  %v4417_v59 = vld [vmem:[#allocation8 + $0x78] sm:$0xff]  }
0x10e9   :  { %4231 = vmatprep.mubr.msk.bf16.mxu1 %vm4713_vm0, %v4712_v1 }
0x118a   :  { %v5273_v2 = vpop.f32.mrf.mxu0 }
0x118c   :  { %v4203_v3 = vpop.f32.mrf.mxu0 }
0x118d   :  { %v4418_v3 = vld [vmem:[#allocation8 + $0x70] sm:$0xff]  }
0x118e   :  { %v2743_v29 = vpop.f32.mrf.mxu0 }
0x118f   :  { %v4420_v29 = vld [vmem:[#allocation8 + $0x60] sm:$0xff]  }
0x1190   :  { %v4204_v4 = vpop.f32.mrf.mxu0 }
0x1191   :  { %v4423_v4 = vld [vmem:[#allocation8 + $0x48] sm:$0xff]  }
0x1192   :  { %v2841_v36 = vpop.f32.mrf.mxu0 }
0x1193   :  { %v2898_v5 = vsel %vm503_vm3, %v2841_v36, -inf }
0x1194   :  { %2899 = vmax.xlane.f32.xlu0 %v2898_v5  ;;  %v4215_v8 = vpop.f32.mrf.mxu0 }
0x1196   :  { %v2844_v9 = vpop.f32.mrf.mxu0 }
0x1198   :  { %v4216_v10 = vpop.f32.mrf.mxu0 }
0x11a0   :  { %v2788_v13 = vpop.f32.mrf.mxu1 }
0x11a2   :  { %v4209_v14 = vpop.f32.mrf.mxu1 }
0x11a3   :  { %v4424_v14 = vld [vmem:[#allocation8 + $0x40] sm:$0xff]  }
0x11a4   :  { %v2791_v16 = vpop.f32.mrf.mxu1 }
0x11a6   :  { %v4210_v17 = vpop.f32.mrf.mxu1 }
0x11a8   :  { %v2892_v18 = vpop.f32.mrf.mxu1 }
0x11a9   :  { %v2901_v20 = vsel %vm503_vm3, %v2892_v18, -inf }
0x11aa   :  { %2920 = vrot.lane.b32.xlu0 %v5137_v57, %s4715_s7  ;;  %2902 = vmax.xlane.f32.xlu1 %v2901_v20  ;;  %v4221_v23 = vpop.f32.mrf.mxu1  ;;  %v2469_v57 = vsel %vm503_vm3, %v5229_v11, 0.0 }
0x11ac   :  { %v2895_v26 = vpop.f32.mrf.mxu1 }
0x11ae   :  { %v4222_v27 = vpop.f32.mrf.mxu1 }
0x11bb   :  { %2968 = vrot.lane.b32.xlu1 %v5158_v21, %s4715_s7 }
0x11c9   :  { %2467 = vadd.xlane.f32.xlu0 %v2466_v34 }
0x11cd   :  { %2689 = vadd.xlane.f32.xlu0 %v2688_v35 }
0x11d1   :  { %2692 = vadd.xlane.f32.xlu0 %v2691_v37 }
0x11df   :  { %2470 = vadd.xlane.f32.xlu1 %v2469_v57 }
0x121d   :  { %v2900_v38 = vpop.xlane.xlu0 %2899 }
0x121e   :  { %v2904_v56 = vsub.f32 %v2841_v36, %v2900_v38 }
0x1220   :  { %v2906_v63 = vmul.f32 1.442695, %v2904_v56 }
0x1221   :  { %v2921_v42 = vpop.permute.xlu0 %2920 }
0x1222   :  { %4517 = vpow2.f32 %v2906_v63  ;;  %v2926_v21 = vsel %vm529_vm2, %v2921_v42, 0 }
0x1223   :  { %4224 = vmatpush3.bf16.msra.mxu0 %v2926_v21 }
0x1224   :  { %4235 = vmatprep.subr.bf16.mxu0 %v4712_v1 }
0x122f   :  { %v4518_v62 = vpop.eup %4517 }
0x1230   :  { %v2910_v43 = vsel %vm503_vm3, %v4518_v62, 0.0  ;;  %v2918_v44 = vpack.c.bf16 %v4518_v62, %v4518_v62 }
0x1231   :  { %2911 = vadd.xlane.f32.xlu1 %v2910_v43 }
0x1232   :  { %4226 = vmatmul.mubr.msk.bf16.vlgmr.msra.gmra.mxu0 %vm503_vm3, %v2918_v44 }
0x1233   :  { %v2903_v47 = vpop.xlane.xlu1 %2902  ;;  %4251 = vmatprep.mubr.msk.bf16.mxu0 %vm4713_vm0, %v4712_v1  ;;  %4236 = vmatpush3.bf16.msra.mxu0 %v4417_v59  ;;  %v4434_v59 = vld [vmem:[#allocation10 + $0xc0] ss:$8 sps:$4 sm:$0xff]  }
0x1234   :  { %v2905_v11 = vsub.f32 %v2892_v18, %v2903_v47  ;;  %4237 = vmatprep.subr.bf16.mxu0 %v4712_v1 }
0x1235   :  { %2247 = vadd.xlane.f32.xlu1 %v2246_v49 }
0x1236   :  { %v2908_v41 = vmul.f32 1.442695, %v2905_v11 }
0x1237   :  { %v2969_v25 = vpop.permute.xlu1 %2968  ;;  %4238 = vmatpush3.bf16.msra.mxu0 %v4418_v3  ;;  %v4436_v3 = vld [vmem:[#allocation10 + $0xc4] ss:$8 sps:$4 sm:$0xff]  }
0x1238   :  { %4519 = vpow2.f32 %v2908_v41  ;;  %v2974_v53 = vsel %vm529_vm2, %v2969_v25, 0  ;;  %4239 = vmatprep.subr.bf16.mxu0 %v4712_v1 }
0x1239   :  { %4230 = vmatpush3.bf16.msra.mxu1 %v2974_v53 }
0x1245   :  { %v4520_v54 = vpop.eup %4519 }
0x1246   :  { %v2913_v12 = vsel %vm503_vm3, %v4520_v54, 0.0  ;;  %v2919_v40 = vpack.c.bf16 %v4520_v54, %v4520_v54 }
0x1247   :  { %2914 = vadd.xlane.f32.xlu0 %v2913_v12 }
0x1248   :  { %4232 = vmatmul.mubr.msk.bf16.vlgmr.msra.gmra.mxu1 %vm503_vm3, %v2919_v40 }
0x1249   :  { %3354 = vmatprep.mubr.bf16.mxu1 %v4711_v0 }
0x124b   :  { %2250 = vadd.xlane.f32.xlu0 %v2249_v50 }
0x1252   :  { %v2468_v22 = vpop.xlane.xlu0 %2467 }
0x1256   :  { %v2690_v30 = vpop.xlane.xlu0 %2689 }
0x1257   :  { %4521 = vrcp.f32 %v2690_v30 }
0x125a   :  { %v2693_v51 = vpop.xlane.xlu0 %2692 }
0x125b   :  { %4523 = vrcp.f32 %v2693_v51 }
0x125c   :  { %4525 = vrcp.f32 %v2468_v22 }
0x1264   :  { %v4522_v6 = vpop.eup %4521 }
0x1265   :  { %v2794_v45 = vmul.f32 %v4522_v6, %v5273_v2  ;;  %v4419_v2 = vld [vmem:[#allocation8 + $0x68] sm:$0xff]  }
0x1266   :  { %4240 = vmatpush3.bf16.msra.mxu0 %v4419_v2  ;;  %v4439_v2 = vld [vmem:[#allocation10 + $0xb4] ss:$8 sps:$4 sm:$0xff]  }
0x1267   :  { %4241 = vmatprep.subr.bf16.mxu0 %v4712_v1 }
0x1268   :  { %v4524_v55 = vpop.eup %4523  ;;  %v2471_v7 = vpop.xlane.xlu1 %2470 }
0x1269   :  { %4527 = vrcp.f32 %v2471_v7  ;;  %v2795_v46 = vmul.f32 %v4524_v55, %v2788_v13  ;;  %v4526_v0 = vpop.eup %4525 }
0x126a   :  { %v2572_v28 = vmul.f32 %v4526_v0, %v5243_v19  ;;  %4242 = vmatpush3.bf16.msra.mxu0 %v4420_v29  ;;  %v4421_v19 = vld [vmem:[#allocation8 + $0x58] sm:$0xff]  }
0x126b   :  { %v4295_v48 = vpack.i.bf16 %v2795_v46, %v2794_v45  ;;  %4243 = vmatprep.subr.bf16.mxu0 %v4712_v1  ;;  %v4437_v29 = vld [vmem:[#allocation10 + $0xb0] ss:$8 sps:$4 sm:$0xff]  }
0x126d   :  { %4296 = vrot.lane.b32.xlu0 %v4295_v48, %s4701_s18 }
0x126e   :  { %4244 = vmatpush3.bf16.msra.mxu0 %v4421_v19  ;;  %v4442_v19 = vld [vmem:[#allocation10 + $0xa4] ss:$8 sps:$4 sm:$0xff]  }
0x126f   :  { %4245 = vmatprep.subr.bf16.mxu0 %v4712_v1 }
0x1276   :  { %v4528_v58 = vpop.eup %4527 }
0x1277   :  { %v2573_v60 = vmul.f32 %v4528_v58, %v5246_v39  ;;  %v4422_v39 = vld [vmem:[#allocation8 + $0x50] sm:$0xff]  }
0x1278   :  { %4246 = vmatpush3.bf16.msra.mxu0 %v4422_v39  ;;  %v4425_v58 = vld [vmem:[#allocation10 + $0xf0] ss:$8 sps:$4 sm:$0xff]   ;;  %v4440_v39 = vld [vmem:[#allocation10 + $0xa0] ss:$8 sps:$4 sm:$0xff]  }
0x1279   :  { %v4290_v61 = vpack.i.bf16 %v2573_v60, %v2572_v28  ;;  %4247 = vmatprep.subr.bf16.mxu0 %v4712_v1  ;;  %v4430_v28 = vld [vmem:[#allocation10 + $0xe4] ss:$8 sps:$4 sm:$0xff]   ;;  %v4428_v60 = vld [vmem:[#allocation10 + $0xe0] ss:$8 sps:$4 sm:$0xff]  }
0x127b   :  { %4291 = vrot.lane.b32.xlu1 %v4290_v61, %s4715_s7  ;;  %v4431_v61 = vld [vmem:[#allocation10 + $0xd0] ss:$8 sps:$4 sm:$0xff]  }
0x127c   :  { %4248 = vmatpush3.bf16.msra.mxu0 %v4423_v4  ;;  %v4445_v4 = vld [vmem:[#allocation10 + $0x94] ss:$8 sps:$4 sm:$0xff]  }
0x127d   :  { %4249 = vmatprep.subr.bf16.mxu0 %v4712_v1 }
0x1280   :  { %4250 = vmatpush3.bf16.msra.mxu0 %v4424_v14  ;;  %v4452_v14 = vld [vmem:[#allocation11 + $0xb0] sm:$0xff]  }
0x12ba   :  { %v2912_v9 = vpop.xlane.xlu1 %2911 }
0x12bb   :  { %4529 = vrcp.f32 %v2912_v9  ;;  %v4449_v9 = vld [vmem:[#allocation11 + $0xf8] sm:$0xff]  }
0x12bc   :  { %3961 = vmatprep.subr.bf16.mxu0 %v4449_v9 }
0x12be   :  { %v2248_v35 = vpop.xlane.xlu1 %2247 }
0x12c8   :  { %v4530_v16 = vpop.eup %4529 }
0x12d0   :  { %v2915_v10 = vpop.xlane.xlu0 %2914 }
0x12d1   :  { %4531 = vrcp.f32 %v2915_v10  ;;  %v4450_v10 = vld [vmem:[#allocation11 + $0xb8] sm:$0xff]  }
0x12d2   :  { %4533 = vrcp.f32 %v2248_v35 }
0x12d4   :  { %v2251_v37 = vpop.xlane.xlu0 %2250 }
0x12d5   :  { %4535 = vrcp.f32 %v2251_v37 }
0x12de   :  { %v4532_v17 = vpop.eup %4531 }
0x12df   :  { %v4534_v38 = vpop.eup %4533  ;;  %v4297_v21 = vpop.permute.xlu0 %4296 }
0x12e0   :  { %v2348_v62 = vmul.f32 %v4534_v38, %v5198_v15  ;;  %v4299_v11 = vunpack.i.h.bf16 %v4297_v21  ;;  %v4298_v49 = vunpack.i.l.bf16 %v4297_v21 }
0x12e2   :  { %v4536_v56 = vpop.eup %4535 }
0x12e3   :  { %v2349_v43 = vmul.f32 %v4536_v56, %v5200_v52  ;;  %v3775_v52 = vld [vmem:[%s5366_s4 + $0x1] ss:$0 sm:$0xff] }
0x12ed   :  { %v4292_v57 = vpop.permute.xlu1 %4291 }
0x12ee   :  { %v4294_v63 = vunpack.i.h.bf16 %v4292_v57  ;;  %v4293_v42 = vunpack.i.l.bf16 %v4292_v57 }
0x12f0   :  { %v3043_v44 = vsel %vm409_vm1, %v2349_v43, %v4294_v63  ;;  %v3042_v47 = vsel %vm409_vm1, %v2348_v62, %v4293_v42 }
0x12f1   :  { %v3044_v54 = vsel %vm1315_vm4, %v3042_v47, %v4298_v49  ;;  %v3045_v12 = vsel %vm1315_vm4, %v3043_v44, %v4299_v11  ;;  %v3786_v49 = vld [vmem:[%s5371_s9 + $0x1] ss:$0 sm:$0xff] }
0x12f2   :  { %v2962_v36 = vpop.f32.mrf.mxu0 }
0x12f3   :  { %v3016_v20 = vmul.f32 %v4530_v16, %v2962_v36  ;;  %v4443_v36 = vld [vmem:[#allocation10 + $0x90] ss:$8 sps:$4 sm:$0xff]   ;;  %v4453_v16 = vld [vmem:[#allocation11 + $0xe8] sm:$0xff]  }
0x12f4   :  { %v4227_v5 = vpop.f32.mrf.mxu0 }
0x12f5   :  { %v4448_v5 = vld [vmem:[#allocation10 + $0x84] ss:$8 sps:$4 sm:$0xff]  }
0x12f6   :  { %v2965_v8 = vpop.f32.mrf.mxu0 }
0x12f7   :  { %v4446_v8 = vld [vmem:[#allocation10 + $0x80] ss:$8 sps:$4 sm:$0xff]  }
0x12f8   :  { %v4228_v13 = vpop.f32.mrf.mxu0 }
0x12f9   :  { %v4451_v13 = vld [vmem:[#allocation11 + $0xf0] sm:$0xff]  }
0x1308   :  { %v3010_v18 = vpop.f32.mrf.mxu1 }
0x1309   :  { %v3017_v23 = vmul.f32 %v4532_v17, %v3010_v18  ;;  %v4454_v17 = vld [vmem:[#allocation11 + $0xa8] sm:$0xff]   ;;  %v4455_v18 = vld [vmem:[#allocation11 + $0xe0] sm:$0xff]  }
0x130a   :  { %v4233_v26 = vpop.f32.mrf.mxu1 }
0x130b   :  { %v4300_v27 = vpack.i.bf16 %v3017_v23, %v3016_v20  ;;  %v4456_v20 = vld [vmem:[#allocation11 + $0xa0] sm:$0xff]   ;;  %v4457_v23 = vld [vmem:[#allocation11 + $0xd8] sm:$0xff]  }
0x130c   :  { %v3013_v34 = vpop.f32.mrf.mxu1  ;;  %v4458_v26 = vld [vmem:[#allocation11 + $0x98] sm:$0xff]  }
0x130d   :  { %4301 = vrot.lane.b32.xlu1 %v4300_v27, %s4714_s5 }
0x130e   :  { %v4234_v1 = vpop.f32.mrf.mxu1 }
0x137f   :  { %v4302_v41 = vpop.permute.xlu1 %4301 }
0x1380   :  { %v4304_v25 = vunpack.i.h.bf16 %v4302_v41  ;;  %v4303_v53 = vunpack.i.l.bf16 %v4302_v41 }
0x1382   :  { %v3047_v40 = vsel %vm1318_vm5, %v3045_v12, %v4304_v25  ;;  %v3046_v50 = vsel %vm1318_vm5, %v3044_v54, %v4303_v53 }
0x1383   :  { %v3048_v15 = vpack.c.bf16 %v3047_v40, %v3046_v50  ;;  %v3787_v40 = vld [vmem:[%s5372_s10 + $0x1] ss:$0 sm:$0xff] }
0x1385   :  { %4252 = vmatmul.mubr.bf16.vlgmr.msra.gmra.mxu0 %v3048_v15 }
0x1386   :  { %3962 = vmatpush3.bf16.msra.mxu0 %v4450_v10 }
0x1387   :  { %3963 = vmatprep.subr.bf16.mxu0 %v4451_v13 }
0x138a   :  { %3964 = vmatpush3.bf16.msra.mxu0 %v4452_v14 }
0x138b   :  { %3965 = vmatprep.subr.bf16.mxu0 %v4453_v16 }
0x138e   :  { %3966 = vmatpush3.bf16.msra.mxu0 %v4454_v17 }
0x138f   :  { %3967 = vmatprep.subr.bf16.mxu0 %v4455_v18 }
0x1392   :  { %3968 = vmatpush3.bf16.msra.mxu0 %v4456_v20 }
0x1393   :  { %3969 = vmatprep.subr.bf16.mxu0 %v4457_v23 }
0x1396   :  { %3970 = vmatpush3.bf16.msra.mxu0 %v4458_v26 }
0x1445   :  { %v3156_v22 = vpop.f32.mrf.mxu0 }
0x1446   :  { %v3157_v30 = vadd.f32 %v3775_v52, %v3156_v22 }
0x1447   :  { %v4253_v51 = vpop.f32.mrf.mxu0 }
0x1448   :  { %v5326_v6 = vadd.f32 %v3157_v30, %v5109_v33  ;;  %v4427_v33 = vld [vmem:[#allocation10 + $0xf4] ss:$8 sps:$4 sm:$0xff]  }
0x1449   :  { %v3159_v55 = vpop.f32.mrf.mxu0  ;;  %3322 = vmatprep.subr.bf16.mxu1 %v4427_v33  ;;  %v4459_v30 = vld [vmem:[#allocation11 + $0xd0] sm:$0xff]  }
0x144a   :  { %v3160_v7 = vadd.f32 %v3775_v52, %v3159_v55  ;;  %3169 = vadd.xlane.f32.xlu1 %v5326_v6  ;;  %v3175_v0 = vmul.f32 %v5326_v6, %v5326_v6  ;;  %3323 = vmatpush1.bf16.msra.mxu1 %v4425_v58  ;;  %v4460_v51 = vld [vmem:[#allocation11 + $0x90] sm:$0xff]   ;;  %v4461_v55 = vld [vmem:[#allocation11 + $0xc8] sm:$0xff]  }
0x144b   :  { %v4254_v45 = vpop.f32.mrf.mxu0  ;;  %3324 = vmatprep.subr.bf16.mxu1 %v4430_v28  ;;  %3971 = vmatprep.subr.bf16.mxu0 %v4459_v30 }
0x144c   :  { %v5330_v46 = vadd.f32 %v3160_v7, %v5111_v24  ;;  %v4433_v24 = vld [vmem:[#allocation10 + $0xd4] ss:$8 sps:$4 sm:$0xff]   ;;  %3972 = vmatpush3.bf16.msra.mxu0 %v4460_v51  ;;  %v4462_v7 = vld [vmem:[#allocation11 + $0x88] sm:$0xff]   ;;  %v4464_v45 = vld [vmem:[#allocation11 + $0x80] sm:$0xff]  }
0x144d   :  { %3973 = vmatprep.subr.bf16.mxu0 %v4461_v55 }
0x144e   :  { %3171 = vadd.xlane.f32.xlu0 %v5330_v46  ;;  %v3176_v48 = vmul.f32 %v5330_v46, %v5330_v46  ;;  %3325 = vmatpush1.bf16.msra.mxu1 %v4428_v60 }
0x144f   :  { %3326 = vmatprep.subr.bf16.mxu1 %v4433_v24 }
0x1450   :  { %3179 = vadd.xlane.f32.xlu1 %v3176_v48  ;;  %3974 = vmatpush3.bf16.msra.mxu0 %v4462_v7 }
0x1452   :  { %3177 = vadd.xlane.f32.xlu0 %v3175_v0  ;;  %3327 = vmatpush1.bf16.msra.mxu1 %v4431_v61 }
0x1453   :  { %3328 = vmatprep.subr.bf16.mxu1 %v4436_v3 }
0x1456   :  { %3329 = vmatpush1.bf16.msra.mxu1 %v4434_v59 }
0x1457   :  { %3330 = vmatprep.subr.bf16.mxu1 %v4439_v2 }
0x145a   :  { %3331 = vmatpush1.bf16.msra.mxu1 %v4437_v29 }
0x145b   :  { %3332 = vmatprep.subr.bf16.mxu1 %v4442_v19 }
0x145e   :  { %3333 = vmatpush1.bf16.msra.mxu1 %v4440_v39 }
0x145f   :  { %3334 = vmatprep.subr.bf16.mxu1 %v4445_v4 }
0x1462   :  { %3335 = vmatpush1.bf16.msra.mxu1 %v4443_v36 }
0x1463   :  { %3336 = vmatprep.subr.bf16.mxu1 %v4448_v5 }
0x1466   :  { %3337 = vmatpush1.bf16.msra.mxu1 %v4446_v8 }
0x14d3   :  { %v3170_v27 = vpop.xlane.xlu1 %3169 }
0x14d4   :  { %v3173_v1 = vmul.f32 0.0078125, %v3170_v27 }
0x14d6   :  { %v3183_v63 = vmul.f32 %v3173_v1, %v3173_v1  ;;  %v3187_v41 = vsub.f32 %v5326_v6, %v3173_v1  ;;  %v4463_v6 = vld [vmem:[#allocation11 + $0xc0] sm:$0xff]  }
0x14d7   :  { %v3172_v34 = vpop.xlane.xlu0 %3171  ;;  %3975 = vmatprep.subr.bf16.mxu0 %v4463_v6 }
0x14d8   :  { %v3174_v35 = vmul.f32 0.0078125, %v3172_v34  ;;  %3976 = vmatpush3.bf16.msra.mxu0 %v4464_v45 }
0x14d9   :  { %v3180_v37 = vpop.xlane.xlu1 %3179 }
0x14da   :  { %v3184_v57 = vmul.f32 %v3174_v35, %v3174_v35  ;;  %v3182_v38 = vmul.f32 0.0078125, %v3180_v37  ;;  %v3188_v47 = vsub.f32 %v5330_v46, %v3174_v35  ;;  %v3788_v46 = vld [vmem:[%s5368_s6 + $0x2] sm:$0x3] }
0x14db   :  { %v3178_v56 = vpop.xlane.xlu0 %3177  ;;  %v3239_v0 = vrot.slane %v3788_v46, %v4840_v32  ;;  %v3235_v33 = vrot.slane %v3788_v46, %v4837_v31  ;;  %v3806_v31 = vld [vmem:[%s5370_s8 + $0x1] ss:$0 sm:$0xff] }
0x14dc   :  { %v3186_v42 = vsub.f32 %v3182_v38, %v3184_v57  ;;  %v3181_v21 = vmul.f32 0.0078125, %v3178_v56 }
0x14de   :  { %v3190_v62 = vadd.f32 1e-05, %v3186_v42  ;;  %v3185_v43 = vsub.f32 %v3181_v21, %v3183_v63 }
0x14e0   :  { %4537 = vrsqrt.f32 %v3190_v62  ;;  %v3189_v44 = vadd.f32 1e-05, %v3185_v43 }
0x14e2   :  { %4539 = vrsqrt.f32 %v3189_v44 }
0x14ed   :  { %v4538_v11 = vpop.eup %4537 }
0x14ee   :  { %v3194_v25 = vmul.f32 %v4538_v11, %v3188_v47  ;;  %v3825_v11 = vld [vmem:[%s5373_s11 + $0x1] ss:$0 sm:$0xff]  ;;  %s4716_s11 = smov [#allocation13]  }
0x14ef   :  { %v4540_v53 = vpop.eup %4539 }
0x14f0   :  { %v3193_v54 = vmul.f32 %v4540_v53, %v3187_v41  ;;  %v3202_v12 = vmul.f32 %v3786_v49, %v3194_v25  ;;  %v3826_v41 = vld [vmem:[%s5374_s12 + $0x1] ss:$0 sm:$0xff]  ;;  %s3624_s12 = sshll.u32 %s4716_s11, 4  ;;  %s3625_s12 = int_to_ptr.vmem [resolvable:$true] %s3624_s12 }
0x14f1   :  { %s4667_s19 = scalar_lea.vmem %s3625_s12, 32  ;;  %p4672_p3 = scmp.lt.s32.totalorder %s3625_s12, %s3625_s12 }
0x14f2   :  { %v3201_v50 = vmul.f32 %v3786_v49, %v3193_v54  ;;  %v3210_v52 = vadd.f32 %v3787_v40, %v3202_v12  ;;  %p4668_p2 = scmp.ne.s32.totalorder %s3625_s12, %s4667_s19  ;;  %p4673_p4 = scmp.lt.s32.totalorder %s4667_s19, %s4667_s19 }
0x14f4   :  { %v3209_v15 = vadd.f32 %v3787_v40, %v3201_v50  ;;  %p4674_p5 = por %p4673_p4, %p4672_p3 }
0x14f6   :  { %v3211_v22 = vpack.c.bf16 %v3210_v52, %v3209_v15  ;;  %p4675_p6 = pnand %p4674_p5, %p4668_p2 }
0x14f8   :  { %3355 = vmatmul.mubr.bf16.vlgmr.msra.gmra.mxu1 %v3211_v22 }
0x15b8   :  { %v3356_v48 = vpop.f32.mrf.mxu1 }
0x15b9   :  { %v3357_v61 = vadd.f32 %v3356_v48, %v3235_v33 }
0x15ba   :  { %v3358_v58 = vpop.f32.mrf.mxu1 }
0x15bb   :  { %v3359_v60 = vadd.f32 %v3358_v58, %v3239_v0  ;;  %v3365_v39 = vmax.f32 %v3357_v61, 0.0 }
0x15bc   :  { %v3360_v28 = vpop.f32.mrf.mxu1 }
0x15bd   :  { %v3361_v24 = vadd.f32 %v3360_v28, %v3235_v33  ;;  %v3366_v29 = vmax.f32 %v3359_v60, 0.0 }
0x15be   :  { %v3362_v59 = vpop.f32.mrf.mxu1 }
0x15bf   :  { %v3363_v3 = vadd.f32 %v3362_v59, %v3239_v0  ;;  %v3367_v2 = vmax.f32 %v3361_v24, 0.0 }
0x15c1   :  { %v3368_v19 = vmax.f32 %v3363_v3, 0.0  ;;  %v3369_v36 = vpack.c.bf16 %v3367_v2, %v3365_v39 }
0x15c3   :  { %v3370_v4 = vpack.c.bf16 %v3368_v19, %v3366_v29 }
0x15c5   :  { %3540 = vmatprep.mubr.bf16.mxu0 %v3370_v4 }
0x15c6   :  { %3541 = vmatmul.mubr.bf16.vlgmr.msra.gmra.mxu0 %v3369_v36 }
0x1686   :  { %v3977_v5 = vpop.f32.mrf.mxu0 }
0x1688   :  { %v3978_v32 = vpop.f32.mrf.mxu0 }
0x1689   :  { %v3979_v8 = vadd.f32 %v3978_v32, %v3977_v5 }
0x168a   :  { %v3980_v9 = vpop.f32.mrf.mxu0 }
0x168b   :  { %v3543_v10 = vadd.f32 %v3979_v8, %v3806_v31 }
0x168c   :  { %v3981_v13 = vpop.f32.mrf.mxu0 }
0x168d   :  { %v3982_v14 = vadd.f32 %v3981_v13, %v3980_v9  ;;  %v3553_v16 = vadd.f32 %v3543_v10, %v3209_v15 }
0x168f   :  { %v3546_v17 = vadd.f32 %v3982_v14, %v3806_v31  ;;  %3555 = vadd.xlane.f32.xlu0 %v3553_v16  ;;  %v3561_v20 = vmul.f32 %v3553_v16, %v3553_v16 }
0x1691   :  { %v3554_v18 = vadd.f32 %v3546_v17, %v3210_v52 }
0x1693   :  { %3557 = vadd.xlane.f32.xlu1 %v3554_v18  ;;  %3563 = vadd.xlane.f32.xlu0 %v3561_v20  ;;  %v3562_v23 = vmul.f32 %v3554_v18, %v3554_v18 }
0x1697   :  { %3565 = vadd.xlane.f32.xlu1 %v3562_v23 }
0x1718   :  { %v3556_v26 = vpop.xlane.xlu0 %3555 }
0x1719   :  { %v3559_v27 = vmul.f32 0.0078125, %v3556_v26 }
0x171b   :  { %v3569_v35 = vmul.f32 %v3559_v27, %v3559_v27  ;;  %v3573_v44 = vsub.f32 %v3553_v16, %v3559_v27 }
0x171c   :  { %v3558_v34 = vpop.xlane.xlu1 %3557  ;;  %v3564_v1 = vpop.xlane.xlu0 %3563 }
0x171d   :  { %v3560_v37 = vmul.f32 0.0078125, %v3558_v34  ;;  %v3567_v57 = vmul.f32 0.0078125, %v3564_v1 }
0x171f   :  { %v3571_v38 = vsub.f32 %v3567_v57, %v3569_v35  ;;  %v3570_v63 = vmul.f32 %v3560_v37, %v3560_v37  ;;  %v3574_v25 = vsub.f32 %v3554_v18, %v3560_v37 }
0x1720   :  { %v3566_v56 = vpop.xlane.xlu1 %3565 }
0x1721   :  { %v3575_v42 = vadd.f32 1e-05, %v3571_v38  ;;  %v3568_v21 = vmul.f32 0.0078125, %v3566_v56 }
0x1723   :  { %4541 = vrsqrt.f32 %v3575_v42  ;;  %v3572_v62 = vsub.f32 %v3568_v21, %v3570_v63 }
0x1725   :  { %v3576_v43 = vadd.f32 1e-05, %v3572_v62 }
0x1727   :  { %4543 = vrsqrt.f32 %v3576_v43 }
0x1730   :  { %v4542_v47 = vpop.eup %4541 }
0x1731   :  { %v3579_v49 = vmul.f32 %v4542_v47, %v3573_v44 }
0x1733   :  { %v3587_v53 = vmul.f32 %v3825_v11, %v3579_v49 }
0x1734   :  { %v4544_v54 = vpop.eup %4543 }
0x1735   :  { %v3580_v12 = vmul.f32 %v4544_v54, %v3574_v25  ;;  %v3595_v40 = vadd.f32 %v3826_v41, %v3587_v53 }
0x1737   :  { %v3588_v50 = vmul.f32 %v3825_v11, %v3580_v12  ;;  %v3597_v15 = vrot.slane %v3595_v40, 4 }
0x1739   :  { %v3596_v52 = vadd.f32 %v3826_v41, %v3588_v50  ;;  %v3598_v22 = vadd.f32 %v3597_v15, %v3595_v40 }
0x173b   :  { %v3599_v30 = vrot.slane %v3598_v22, 2  ;;  %v3603_v51 = vrot.slane %v3596_v52, 4 }
0x173d   :  { %v3600_v55 = vadd.f32 %v3599_v30, %v3598_v22  ;;  %v3604_v7 = vadd.f32 %v3603_v51, %v3596_v52 }
0x173f   :  { %v3601_v6 = vrot.slane %v3600_v55, 1  ;;  %v3605_v45 = vrot.slane %v3604_v7, 2 }
0x1741   :  { %v3606_v46 = vadd.f32 %v3605_v45, %v3604_v7  ;;  %v3602_v48 = vadd.f32 %v3601_v6, %v3600_v55 }
0x1743   :  { %v3607_v0 = vrot.slane %v3606_v46, 1  ;;  %v3610_v58 = vmul.f32 0.125, %v3602_v48 }
0x1745   :  { %v3608_v33 = vadd.f32 %v3607_v0, %v3606_v46 }
0x1747   :  { %v3611_v28 = vmul.f32 0.125, %v3608_v33 }
0x1749   :  { %v3615_v60 = vsel %vm3614_vm6, %v3611_v28, %v3610_v58 }
0x174a   :  { %3617 = vst [vmem:[#allocation13] sm:$0x3] %v3615_v60 }
0x174b   :  { %4678 = shalt.err (!%p4675_p6)
}
0x174c   :  { %3627 = dma.vmem_to_hbm [thread:$0]  %s3625_s12, 32, %s5375_s13, [#allocation4]  }
0x174d   :  { %4695 = dma.done.wait [#allocation4], 32  }
0x174e   :  { %4696 = vsyncadd [#allocation4], 4294967264 }
0x174f   :  { %3631 = vsyncpa [#allocation3], 1 }
0x1750   :  { %3632 = vsyncpa [#allocation6], 1 }
0x1751   :  { %3633 = vsyncpa [#allocation9], 1 }
0x1752   :  { %3634 = vsyncpa [#allocation12], 1 }
0x1753   :  { %3635 = vsyncpa [#allocation4], 1 }

</bundles_post_ra>
